<compile_context>
chip_gen: v6e
topology: v6e:2x2x1
jax: 0.10.0
libtpu: 0.0.40
codegen_flags: <defaults>
</compile_context>

<pallas_src>
import functools

import jax
import jax.numpy as jnp
from jax.experimental import pallas as pl
from jax.experimental.pallas import tpu as pltpu

NOISE_SIZE = 100
HIDDEN1 = 256
HIDDEN2 = 512
HIDDEN3 = 1024
IMG_SIZE = 28 * 28          # 784
IMG_PAD = 896               # 7 * 128 -> lane-dense, unmasked output stores
MAX_BATCH_TILE = 512        # VMEM stays well under 32 MiB on v5e/v6e/v7x


def _round_up(n, m):
    return ((n + m - 1) // m) * m


def _generator_kernel(x_ref,
                      w1_ref, b1_ref,
                      w2_ref, b2_ref,
                      w3_ref, b3_ref,
                      w4_ref, b4_ref,
                      out_ref):
    """Fused 4-layer MLP for one batch tile: bf16 MXU matmuls, f32 accumulation."""
    h = jnp.dot(x_ref[...].astype(jnp.bfloat16), w1_ref[...],
                preferred_element_type=jnp.float32) + b1_ref[...]
    h = jnp.maximum(h, 0.0).astype(jnp.bfloat16)

    h = jnp.dot(h, w2_ref[...],
                preferred_element_type=jnp.float32) + b2_ref[...]
    h = jnp.maximum(h, 0.0).astype(jnp.bfloat16)

    h = jnp.dot(h, w3_ref[...],
                preferred_element_type=jnp.float32) + b3_ref[...]
    h = jnp.maximum(h, 0.0).astype(jnp.bfloat16)

    h = jnp.dot(h, w4_ref[...],
                preferred_element_type=jnp.float32) + b4_ref[...]
    # tanh in f32, cast only on store (bf16 output halves writeback traffic).
    out_ref[...] = jnp.tanh(h).astype(out_ref.dtype)


@functools.lru_cache(maxsize=None)
def _build_call(b_pad, batch_tile):
    """Build (once per shape) the pallas_call for a padded batch of b_pad rows."""

    def resident(shape):
        # Grid-invariant operand: constant block index -> stays resident in
        # VMEM, no re-DMA across grid steps.
        return pl.BlockSpec(shape, lambda i: (0, 0))

    return pl.pallas_call(
        _generator_kernel,
        out_shape=jax.ShapeDtypeStruct((b_pad, IMG_PAD), jnp.bfloat16),
        grid=(b_pad // batch_tile,),
        in_specs=[
            # x: last dim 100 equals the full array dim (legal un-tiled dim).
            pl.BlockSpec((batch_tile, NOISE_SIZE), lambda i: (i, 0)),
            resident((NOISE_SIZE, HIDDEN1)), resident((1, HIDDEN1)),
            resident((HIDDEN1, HIDDEN2)),    resident((1, HIDDEN2)),
            resident((HIDDEN2, HIDDEN3)),    resident((1, HIDDEN3)),
            resident((HIDDEN3, IMG_PAD)),    resident((1, IMG_PAD)),
        ],
        out_specs=pl.BlockSpec((batch_tile, IMG_PAD), lambda i: (i, 0)),
        compiler_params=pltpu.CompilerParams(
            dimension_semantics=("parallel",),
            vmem_limit_bytes=32 << 20,   # actual usage ~10-16 MiB
        ),
    )


def _pick_tiling(batch):
    """Choose (b_pad, batch_tile).

    * Round the batch to the 8-row sublane granularity (never a fixed 256), so
      small GAN batches don't issue 32x the needed MXU pushes.
    * For batches larger than one tiny tile, split into >= 2 'parallel' grid
      steps (both v7x TensorCores run), tile capped at MAX_BATCH_TILE.
    """
    b8 = _round_up(max(batch, 1), 8)
    if b8 <= 16:
        return b8, b8
    tile = min(MAX_BATCH_TILE, _round_up(pl.cdiv(b8, 2), 8))
    b_pad = _round_up(b8, tile)
    return b_pad, tile


def prepare_params(params):
    """Pad + cast PyTorch-layout params once (outside the per-call hot path).

    Weights -> bf16 with shape (in, out); biases -> f32 (1, out).  Only layer 4
    is padded (784 -> 896) for lane-dense output stores; the zero padding is
    sliced off after the kernel so the math is identical.
    """
    return {
        "w1": params["w1"].astype(jnp.bfloat16),
        "b1": params["b1"].astype(jnp.float32),
        "w2": params["w2"].astype(jnp.bfloat16),
        "b2": params["b2"].astype(jnp.float32),
        "w3": params["w3"].astype(jnp.bfloat16),
        "b3": params["b3"].astype(jnp.float32),
        "w4": jnp.pad(params["w4"],
                      ((0, 0), (0, IMG_PAD - IMG_SIZE))).astype(jnp.bfloat16),
        "b4": jnp.pad(params["b4"],
                      ((0, 0), (0, IMG_PAD - IMG_SIZE))).astype(jnp.float32),
    }


def generator_forward(x, prepared):
    """x: (B, 100) float32 noise.  Returns (B, 784) bfloat16 images in [-1, 1]."""
    B = x.shape[0]
    b_pad, batch_tile = _pick_tiling(B)
    if b_pad != B:
        x = jnp.pad(x, ((0, b_pad - B), (0, 0)))
    out = _build_call(b_pad, batch_tile)(
        x,
        prepared["w1"], prepared["b1"],
        prepared["w2"], prepared["b2"],
        prepared["w3"], prepared["b3"],
        prepared["w4"], prepared["b4"],
    )
    # Padded batch rows (tanh(bias) garbage) and padded output columns are
    # removed here; never consume the unsliced padded output.
    return out[:B, :IMG_SIZE]


def init_params(key):
    """nn.Linear-style init U(-1/sqrt(fan_in), +1/sqrt(fan_in)), f32,
    weights stored as (in_features, out_features)."""
    dims = [(NOISE_SIZE, HIDDEN1), (HIDDEN1, HIDDEN2),
            (HIDDEN2, HIDDEN3), (HIDDEN3, IMG_SIZE)]
    params = {}
    for idx, (fan_in, fan_out) in enumerate(dims, start=1):
        key, kw_, kb = jax.random.split(key, 3)
        bound = 1.0 / (fan_in ** 0.5)
        params[f"w{idx}"] = jax.random.uniform(
            kw_, (fan_in, fan_out), jnp.float32, -bound, bound)
        params[f"b{idx}"] = jax.random.uniform(
            kb, (1, fan_out), jnp.float32, -bound, bound)
    return params


def generator_reference(x, p):
    h = jnp.maximum(x @ p["w1"] + p["b1"], 0.0)
    h = jnp.maximum(h @ p["w2"] + p["b2"], 0.0)
    h = jnp.maximum(h @ p["w3"] + p["b3"], 0.0)
    return jnp.tanh(h @ p["w4"] + p["b4"])


if __name__ == "__main__":
    key = jax.random.PRNGKey(0)
    key, knoise = jax.random.split(key)

    batch = 8
    noise = jax.random.normal(knoise, (batch, NOISE_SIZE), dtype=jnp.float32)
    params = init_params(key)
    prepared = prepare_params(params)

    out = jax.block_until_ready(generator_forward(noise, prepared))

    ref = generator_reference(noise, params)
    assert out.shape == (batch, IMG_SIZE)
    # bf16 weights/activations/output with f32 accumulation: ~1e-2 abs error.
    err = float(jnp.max(jnp.abs(out.astype(jnp.float32) - ref)))
    assert err < 3e-2, f"max abs error vs f32 reference too large: {err}"

    print("KERNEL_OK")
</pallas_src>

<mosaic_0001>
module attributes {stable_mosaic.version = 11 : i64} {
  func.func @_generator_kernel(%arg0: i32, %arg1: memref<8x100xf32, #tpu.memory_space<vmem>>, %arg2: memref<100x256xbf16, #tpu.memory_space<vmem>>, %arg3: memref<1x256xf32, #tpu.memory_space<vmem>>, %arg4: memref<256x512xbf16, #tpu.memory_space<vmem>>, %arg5: memref<1x512xf32, #tpu.memory_space<vmem>>, %arg6: memref<512x1024xbf16, #tpu.memory_space<vmem>>, %arg7: memref<1x1024xf32, #tpu.memory_space<vmem>>, %arg8: memref<1024x896xbf16, #tpu.memory_space<vmem>>, %arg9: memref<1x896xf32, #tpu.memory_space<vmem>>, %arg10: memref<8x896xbf16, #tpu.memory_space<vmem>>) attributes {dimension_semantics = [#tpu.dimension_semantics<parallel>], iteration_bounds = array<i64: 1>, scalar_prefetch = 0 : i64, scratch_operands = 0 : i64, tpu.core_type = #tpu.core_type<tc>, window_params = [{transform_indices = @transform_0, window_bounds = array<i64: 8, 100>}, {pipeline_mode = #tpu.pipeline_mode<synchronous>, transform_indices = @transform_1, window_bounds = array<i64: 100, 256>}, {pipeline_mode = #tpu.pipeline_mode<synchronous>, transform_indices = @transform_2, window_bounds = array<i64: 1, 256>}, {pipeline_mode = #tpu.pipeline_mode<synchronous>, transform_indices = @transform_3, window_bounds = array<i64: 256, 512>}, {pipeline_mode = #tpu.pipeline_mode<synchronous>, transform_indices = @transform_4, window_bounds = array<i64: 1, 512>}, {pipeline_mode = #tpu.pipeline_mode<synchronous>, transform_indices = @transform_5, window_bounds = array<i64: 512, 1024>}, {pipeline_mode = #tpu.pipeline_mode<synchronous>, transform_indices = @transform_6, window_bounds = array<i64: 1, 1024>}, {pipeline_mode = #tpu.pipeline_mode<synchronous>, transform_indices = @transform_7, window_bounds = array<i64: 1024, 896>}, {pipeline_mode = #tpu.pipeline_mode<synchronous>, transform_indices = @transform_8, window_bounds = array<i64: 1, 896>}, {transform_indices = @transform_9, window_bounds = array<i64: 8, 896>}]} {
    %c0 = arith.constant 0 : index
    %c0_0 = arith.constant 0 : index
    %0 = vector.load %arg1[%c0, %c0_0] : memref<8x100xf32, #tpu.memory_space<vmem>>, vector<8x100xf32>
    %1 = arith.truncf %0 : vector<8x100xf32> to vector<8x100xbf16>
    %c0_1 = arith.constant 0 : index
    %c0_2 = arith.constant 0 : index
    %2 = vector.load %arg2[%c0_1, %c0_2] : memref<100x256xbf16, #tpu.memory_space<vmem>>, vector<100x256xbf16>
    %cst = arith.constant dense<0.000000e+00> : vector<8x256xf32>
    %3 = tpu.matmul %1, %2, %cst {dimension_numbers = #tpu.dot_dimension_numbers<[1], [0], [0], [1], [0, 0, 1, 1], [], []>} : vector<8x100xbf16>, vector<100x256xbf16>, vector<8x256xf32> -> vector<8x256xf32>
    %c0_3 = arith.constant 0 : index
    %c0_4 = arith.constant 0 : index
    %4 = vector.load %arg3[%c0_3, %c0_4] : memref<1x256xf32, #tpu.memory_space<vmem>>, vector<1x256xf32>
    %5 = vector.broadcast %4 : vector<1x256xf32> to vector<8x256xf32>
    %6 = arith.addf %3, %5 : vector<8x256xf32>
    %cst_5 = arith.constant 0.000000e+00 : f32
    %7 = vector.broadcast %cst_5 : f32 to vector<8x256xf32>
    %8 = arith.maximumf %6, %7 : vector<8x256xf32>
    %9 = arith.truncf %8 : vector<8x256xf32> to vector<8x256xbf16>
    %c0_6 = arith.constant 0 : index
    %c0_7 = arith.constant 0 : index
    %10 = vector.load %arg4[%c0_6, %c0_7] : memref<256x512xbf16, #tpu.memory_space<vmem>>, vector<256x512xbf16>
    %cst_8 = arith.constant dense<0.000000e+00> : vector<8x512xf32>
    %11 = tpu.matmul %9, %10, %cst_8 {dimension_numbers = #tpu.dot_dimension_numbers<[1], [0], [0], [1], [0, 0, 1, 1], [], []>} : vector<8x256xbf16>, vector<256x512xbf16>, vector<8x512xf32> -> vector<8x512xf32>
    %c0_9 = arith.constant 0 : index
    %c0_10 = arith.constant 0 : index
    %12 = vector.load %arg5[%c0_9, %c0_10] : memref<1x512xf32, #tpu.memory_space<vmem>>, vector<1x512xf32>
    %13 = vector.broadcast %12 : vector<1x512xf32> to vector<8x512xf32>
    %14 = arith.addf %11, %13 : vector<8x512xf32>
    %cst_11 = arith.constant 0.000000e+00 : f32
    %15 = vector.broadcast %cst_11 : f32 to vector<8x512xf32>
    %16 = arith.maximumf %14, %15 : vector<8x512xf32>
    %17 = arith.truncf %16 : vector<8x512xf32> to vector<8x512xbf16>
    %c0_12 = arith.constant 0 : index
    %c0_13 = arith.constant 0 : index
    %18 = vector.load %arg6[%c0_12, %c0_13] : memref<512x1024xbf16, #tpu.memory_space<vmem>>, vector<512x1024xbf16>
    %cst_14 = arith.constant dense<0.000000e+00> : vector<8x1024xf32>
    %19 = tpu.matmul %17, %18, %cst_14 {dimension_numbers = #tpu.dot_dimension_numbers<[1], [0], [0], [1], [0, 0, 1, 1], [], []>} : vector<8x512xbf16>, vector<512x1024xbf16>, vector<8x1024xf32> -> vector<8x1024xf32>
    %c0_15 = arith.constant 0 : index
    %c0_16 = arith.constant 0 : index
    %20 = vector.load %arg7[%c0_15, %c0_16] : memref<1x1024xf32, #tpu.memory_space<vmem>>, vector<1x1024xf32>
    %21 = vector.broadcast %20 : vector<1x1024xf32> to vector<8x1024xf32>
    %22 = arith.addf %19, %21 : vector<8x1024xf32>
    %cst_17 = arith.constant 0.000000e+00 : f32
    %23 = vector.broadcast %cst_17 : f32 to vector<8x1024xf32>
    %24 = arith.maximumf %22, %23 : vector<8x1024xf32>
    %25 = arith.truncf %24 : vector<8x1024xf32> to vector<8x1024xbf16>
    %c0_18 = arith.constant 0 : index
    %c0_19 = arith.constant 0 : index
    %26 = vector.load %arg8[%c0_18, %c0_19] : memref<1024x896xbf16, #tpu.memory_space<vmem>>, vector<1024x896xbf16>
    %cst_20 = arith.constant dense<0.000000e+00> : vector<8x896xf32>
    %27 = tpu.matmul %25, %26, %cst_20 {dimension_numbers = #tpu.dot_dimension_numbers<[1], [0], [0], [1], [0, 0, 1, 1], [], []>} : vector<8x1024xbf16>, vector<1024x896xbf16>, vector<8x896xf32> -> vector<8x896xf32>
    %c0_21 = arith.constant 0 : index
    %c0_22 = arith.constant 0 : index
    %28 = vector.load %arg9[%c0_21, %c0_22] : memref<1x896xf32, #tpu.memory_space<vmem>>, vector<1x896xf32>
    %29 = vector.broadcast %28 : vector<1x896xf32> to vector<8x896xf32>
    %30 = arith.addf %27, %29 : vector<8x896xf32>
    %31 = math.tanh %30 : vector<8x896xf32>
    %32 = arith.truncf %31 : vector<8x896xf32> to vector<8x896xbf16>
    %c0_23 = arith.constant 0 : index
    %c0_24 = arith.constant 0 : index
    %33 = vector.load %arg10[%c0_23, %c0_24] : memref<8x896xbf16, #tpu.memory_space<vmem>>, vector<8x896xbf16>
    tpu.vector_store %arg10[%c0_23, %c0_24], %32 {strides = array<i32>} : memref<8x896xbf16, #tpu.memory_space<vmem>>, vector<8x896xbf16>,
    return
  }
  func.func @transform_0(%arg0: i32) -> (i32, i32) {
    %c0_i32 = arith.constant 0 : i32
    %c0_i32_0 = arith.constant 0 : i32
    return %arg0, %c0_i32 : i32, i32
  }
  func.func @transform_1(%arg0: i32) -> (i32, i32) {
    %c0_i32 = arith.constant 0 : i32
    %c0_i32_0 = arith.constant 0 : i32
    %c0_i32_1 = arith.constant 0 : i32
    return %c0_i32, %c0_i32_0 : i32, i32
  }
  func.func @transform_2(%arg0: i32) -> (i32, i32) {
    %c0_i32 = arith.constant 0 : i32
    %c0_i32_0 = arith.constant 0 : i32
    %c0_i32_1 = arith.constant 0 : i32
    return %c0_i32, %c0_i32_0 : i32, i32
  }
  func.func @transform_3(%arg0: i32) -> (i32, i32) {
    %c0_i32 = arith.constant 0 : i32
    %c0_i32_0 = arith.constant 0 : i32
    %c0_i32_1 = arith.constant 0 : i32
    return %c0_i32, %c0_i32_0 : i32, i32
  }
  func.func @transform_4(%arg0: i32) -> (i32, i32) {
    %c0_i32 = arith.constant 0 : i32
    %c0_i32_0 = arith.constant 0 : i32
    %c0_i32_1 = arith.constant 0 : i32
    return %c0_i32, %c0_i32_0 : i32, i32
  }
  func.func @transform_5(%arg0: i32) -> (i32, i32) {
    %c0_i32 = arith.constant 0 : i32
    %c0_i32_0 = arith.constant 0 : i32
    %c0_i32_1 = arith.constant 0 : i32
    return %c0_i32, %c0_i32_0 : i32, i32
  }
  func.func @transform_6(%arg0: i32) -> (i32, i32) {
    %c0_i32 = arith.constant 0 : i32
    %c0_i32_0 = arith.constant 0 : i32
    %c0_i32_1 = arith.constant 0 : i32
    return %c0_i32, %c0_i32_0 : i32, i32
  }
  func.func @transform_7(%arg0: i32) -> (i32, i32) {
    %c0_i32 = arith.constant 0 : i32
    %c0_i32_0 = arith.constant 0 : i32
    %c0_i32_1 = arith.constant 0 : i32
    return %c0_i32, %c0_i32_0 : i32, i32
  }
  func.func @transform_8(%arg0: i32) -> (i32, i32) {
    %c0_i32 = arith.constant 0 : i32
    %c0_i32_0 = arith.constant 0 : i32
    %c0_i32_1 = arith.constant 0 : i32
    return %c0_i32, %c0_i32_0 : i32, i32
  }
  func.func @transform_9(%arg0: i32) -> (i32, i32) {
    %c0_i32 = arith.constant 0 : i32
    %c0_i32_0 = arith.constant 0 : i32
    return %arg0, %c0_i32 : i32, i32
  }
}

</mosaic_0001>

<bundles_post_ra>
// kernel: tpu_custom_call.1
= control target key start
LH: loop header
LB: loop body
LE: loop exit
PB: predicated region body
PF: predicated region fallthrough
CT: control target
= control target key end

     0   :  { %14 = vsyncpa [#allocation3], 0  ;;  %s8427_s0 = inlined_call_operand.hbm [shape: f32[8,100], index: 0, kind: input, shape index: {}]   ;;  %s8428_s1 = inlined_call_operand.hbm [shape: bf16[100,256], index: 1, kind: input, shape index: {}]   ;;  %s8429_s2 = inlined_call_operand.hbm [shape: f32[1,256], index: 2, kind: input, shape index: {}]   ;;  %s8430_s3 = inlined_call_operand.hbm [shape: bf16[256,512], index: 3, kind: input, shape index: {}]   ;;  %s8431_s4 = inlined_call_operand.hbm [shape: f32[1,512], index: 4, kind: input, shape index: {}]   ;;  %s8432_s5 = inlined_call_operand.hbm [shape: bf16[512,1024], index: 5, kind: input, shape index: {}]   ;;  %s8433_s6 = inlined_call_operand.hbm [shape: f32[1,1024], index: 6, kind: input, shape index: {}]   ;;  %s8434_s7 = inlined_call_operand.hbm [shape: bf16[1024,896], index: 7, kind: input, shape index: {}]   ;;  %s8435_s8 = inlined_call_operand.hbm [shape: f32[1,896], index: 8, kind: input, shape index: {}]   ;;  %s8436_s9 = inlined_call_operand.hbm [shape: bf16[8,896], index: 9, kind: output, shape index: {}]  }
   0x1   :  { %15 = vsyncpa [#allocation6], 0 }
   0x2   :  { %16 = vsyncpa [#allocation9], 0 }
   0x3   :  { %17 = vsyncpa [#allocation12], 0 }
   0x4   :  { %18 = vsyncpa [#allocation15], 0 }
   0x5   :  { %19 = vsyncpa [#allocation4], 0  ;;  %s8158_s30 = smov [#allocation5]  }
   0x6   :  { %s35_s10 = sshll.u32 %s8158_s30, 4  ;;  %s36_s10 = int_to_ptr.vmem [resolvable:$true] %s35_s10 }
   0x7   :  { %s7954_s11 = scalar_lea.vmem %s36_s10, 1664  ;;  %p7959_p1 = scmp.lt.s32.totalorder %s36_s10, %s36_s10 }
   0x8   :  { %p7955_p0 = scmp.ne.s32.totalorder %s36_s10, %s7954_s11  ;;  %p7960_p2 = scmp.lt.s32.totalorder %s7954_s11, %s7954_s11 }
   0xa   :  { %p7961_p3 = por %p7960_p2, %p7959_p1 }
   0xc   :  { %p7962_p4 = pnand %p7961_p3, %p7955_p0 }
   0xe   :  { %7965 = shalt.err (!%p7962_p4)
}
   0xf   :  { %s8159_s12 = smov 128   ;;  %s8160_s13 = smov 8  }
  0x10   :  { %41 = dma.hbm_to_vmem [thread:$0]  %s8428_s1, 1664, %s36_s10, [#allocation6], %s8159_s12, %s8159_s12, %s8160_s13  }
  0x11   :  { %s8161_s16 = smov [#allocation8]  }
  0x12   :  { %s57_s17 = sshll.u32 %s8161_s16, 4  ;;  %s58_s17 = int_to_ptr.vmem [resolvable:$true] %s57_s17 }
  0x13   :  { %s7974_s18 = scalar_lea.vmem %s58_s17, 8192  ;;  %p7979_p6 = scmp.lt.s32.totalorder %s58_s17, %s58_s17 }
  0x14   :  { %p7975_p5 = scmp.ne.s32.totalorder %s58_s17, %s7974_s18  ;;  %p7980_p7 = scmp.lt.s32.totalorder %s7974_s18, %s7974_s18 }
  0x16   :  { %p7981_p8 = por %p7980_p7, %p7979_p6 }
  0x18   :  { %p7982_p9 = pnand %p7981_p8, %p7975_p5 }
  0x1a   :  { %7985 = shalt.err (!%p7982_p9)
}
  0x1b   :  { %s8162_s19 = smov 256   ;;  %s8163_s20 = smov 16  }
  0x1c   :  { %63 = dma.hbm_to_vmem [thread:$0]  %s8430_s3, 8192, %s58_s17, [#allocation9], %s8162_s19, %s8162_s19, %s8163_s20  }
  0x1d   :  { %s8164_s23 = smov [#allocation11]  }
  0x1e   :  { %s79_s24 = sshll.u32 %s8164_s23, 4  ;;  %s80_s24 = int_to_ptr.vmem [resolvable:$true] %s79_s24 }
  0x1f   :  { %s7994_s1 = scalar_lea.vmem %s80_s24, 32768  ;;  %p7999_p11 = scmp.lt.s32.totalorder %s80_s24, %s80_s24 }
  0x20   :  { %p7995_p10 = scmp.ne.s32.totalorder %s80_s24, %s7994_s1  ;;  %p8000_p12 = scmp.lt.s32.totalorder %s7994_s1, %s7994_s1 }
  0x22   :  { %p8001_p13 = por %p8000_p12, %p7999_p11 }
  0x24   :  { %p8002_p0 = pnand %p8001_p13, %p7995_p10 }
  0x26   :  { %8005 = shalt.err (!%p8002_p0)
}
  0x27   :  { %s8165_s25 = smov 512   ;;  %s8166_s26 = smov 32  }
  0x28   :  { %85 = dma.hbm_to_vmem [thread:$0]  %s8432_s5, 32768, %s80_s24, [#allocation12], %s8165_s25, %s8165_s25, %s8166_s26  }
  0x29   :  { %s8167_s29 = smov [#allocation14]  }
  0x2a   :  { %s101_s30 = sshll.u32 %s8167_s29, 4  ;;  %s102_s30 = int_to_ptr.vmem [resolvable:$true] %s101_s30 }
  0x2b   :  { %s8014_s3 = scalar_lea.vmem %s102_s30, 57344  ;;  %p8019_p2 = scmp.lt.s32.totalorder %s102_s30, %s102_s30 }
  0x2c   :  { %p8015_p1 = scmp.ne.s32.totalorder %s102_s30, %s8014_s3  ;;  %p8020_p3 = scmp.lt.s32.totalorder %s8014_s3, %s8014_s3 }
  0x2e   :  { %p8021_p4 = por %p8020_p3, %p8019_p2 }
  0x30   :  { %p8022_p5 = pnand %p8021_p4, %p8015_p1 }
  0x32   :  { %8025 = shalt.err (!%p8022_p5)
}
  0x33   :  { %s8168_s10 = smov 448   ;;  %s8169_s11 = smov 28  }
  0x34   :  { %107 = dma.hbm_to_vmem [thread:$0]  %s8434_s7, 57344, %s102_s30, [#allocation15], %s8168_s10, %s8168_s10, %s8169_s11  }
  0x35   :  { %s8170_s14 = smov [#allocation2]   ;;  %s8171_s16 = smov [#allocation7]  }
  0x36   :  { %s26_s15 = sshll.u32 %s8170_s14, 4  ;;  %s48_s5 = sshll.u32 %s8171_s16, 4  ;;  %s27_s15 = int_to_ptr.vmem [resolvable:$true] %s26_s15  ;;  %s49_s5 = int_to_ptr.vmem [resolvable:$true] %s48_s5 }
  0x37   :  { %s8034_s17 = scalar_lea.vmem %s27_s15, 128  ;;  %p8039_p7 = scmp.lt.s32.totalorder %s27_s15, %s27_s15 }
  0x38   :  { %p8035_p6 = scmp.ne.s32.totalorder %s27_s15, %s8034_s17  ;;  %p8040_p8 = scmp.lt.s32.totalorder %s8034_s17, %s8034_s17 }
  0x3a   :  { %p8041_p9 = por %p8040_p8, %p8039_p7 }
  0x3c   :  { %p8042_p10 = pnand %p8041_p9, %p8035_p6 }
  0x3e   :  { %8045 = shalt.err (!%p8042_p10)
}
  0x3f   :  { %29 = dma.hbm_to_vmem [thread:$0]  %s8427_s0, 128, %s27_s15, [#allocation3]  }
  0x40   :  { %s8054_s20 = scalar_lea.vmem %s49_s5, 32  ;;  %p8059_p12 = scmp.lt.s32.totalorder %s49_s5, %s49_s5 }
  0x41   :  { %p8055_p11 = scmp.ne.s32.totalorder %s49_s5, %s8054_s20  ;;  %p8060_p13 = scmp.lt.s32.totalorder %s8054_s20, %s8054_s20 }
  0x43   :  { %p8061_p0 = por %p8060_p13, %p8059_p12 }
  0x45   :  { %p8062_p1 = pnand %p8061_p0, %p8055_p11 }
  0x47   :  { %8065 = shalt.err (!%p8062_p1)
}
  0x48   :  { %51 = dma.hbm_to_vmem [thread:$0]  %s8429_s2, 32, %s49_s5, [#allocation6]  }
  0x49   :  { %s8172_s22 = smov [#allocation10]   ;;  %s8173_s24 = smov [#allocation13]  }
  0x4a   :  { %s70_s23 = sshll.u32 %s8172_s22, 4  ;;  %s92_s1 = sshll.u32 %s8173_s24, 4  ;;  %s71_s23 = int_to_ptr.vmem [resolvable:$true] %s70_s23  ;;  %s93_s1 = int_to_ptr.vmem [resolvable:$true] %s92_s1 }
  0x4b   :  { %s8074_s25 = scalar_lea.vmem %s71_s23, 64  ;;  %p8079_p3 = scmp.lt.s32.totalorder %s71_s23, %s71_s23 }
  0x4c   :  { %p8075_p2 = scmp.ne.s32.totalorder %s71_s23, %s8074_s25  ;;  %p8080_p4 = scmp.lt.s32.totalorder %s8074_s25, %s8074_s25 }
  0x4e   :  { %p8081_p5 = por %p8080_p4, %p8079_p3 }
  0x50   :  { %p8082_p6 = pnand %p8081_p5, %p8075_p2 }
  0x52   :  { %8085 = shalt.err (!%p8082_p6)
}
  0x53   :  { %73 = dma.hbm_to_vmem [thread:$0]  %s8431_s4, 64, %s71_s23, [#allocation9]  }
  0x54   :  { %s8094_s27 = scalar_lea.vmem %s93_s1, 128  ;;  %p8099_p8 = scmp.lt.s32.totalorder %s93_s1, %s93_s1 }
  0x55   :  { %p8095_p7 = scmp.ne.s32.totalorder %s93_s1, %s8094_s27  ;;  %p8100_p9 = scmp.lt.s32.totalorder %s8094_s27, %s8094_s27 }
  0x57   :  { %p8101_p10 = por %p8100_p9, %p8099_p8 }
  0x59   :  { %p8102_p11 = pnand %p8101_p10, %p8095_p7 }
  0x5b   :  { %8105 = shalt.err (!%p8102_p11)
}
  0x5c   :  { %95 = dma.hbm_to_vmem [thread:$0]  %s8433_s6, 128, %s93_s1, [#allocation12]  }
  0x5d   :  { %s8174_s29 = smov [#allocation16]  }
  0x5e   :  { %s114_s30 = sshll.u32 %s8174_s29, 4  ;;  %s115_s30 = int_to_ptr.vmem [resolvable:$true] %s114_s30 }
  0x5f   :  { %s8114_s3 = scalar_lea.vmem %s115_s30, 112  ;;  %s8118_s10 = scalar_lea.vmem %s115_s30, 128 }
  0x60   :  { %p8115_p12 = scmp.ne.s32.totalorder %s115_s30, %s8114_s3  ;;  %p8119_p13 = scmp.lt.s32.totalorder %s115_s30, %s115_s30 }
  0x61   :  { %p8120_p0 = scmp.lt.s32.totalorder %s8118_s10, %s8114_s3 }
  0x63   :  { %p8121_p1 = por %p8120_p0, %p8119_p13 }
  0x65   :  { %p8122_p2 = pnand %p8121_p1, %p8115_p12 }
  0x67   :  { %8125 = shalt.err (!%p8122_p2)
}
  0x68   :  { %117 = dma.hbm_to_vmem [thread:$0]  %s8435_s8, 112, %s115_s30, [#allocation15]  }
  0x69   :  { %8146 = dma.done.wait [#allocation3], 128  }
  0x6a   :  { %8147 = vsyncadd [#allocation3], 4294967168 }
  0x6b   :  { %8148 = dma.done.wait [#allocation6], 1696  }
  0x6c   :  { %8149 = vsyncadd [#allocation6], 4294965600 }
  0x6d   :  { %8150 = dma.done.wait [#allocation9], 8256  }
  0x6e   :  { %8151 = vsyncadd [#allocation9], 4294959040 }
  0x6f   :  { %8152 = dma.done.wait [#allocation12], 32896  }
  0x70   :  { %8153 = vsyncadd [#allocation12], 4294934400 }
  0x71   :  { %8154 = dma.done.wait [#allocation15], 57456  }
  0x72   :  { %8155 = vsyncadd [#allocation15], 4294909840  ;;  %v8175_v0 = vmov 0   ;;  %v160_v1 = vld [vmem:[#allocation5 + $0x60] sm:$0x33]  ;;  %vm242_vm0 = vcmask 1041408  }
  0x73   :  { %281 = vmatprep.mubr.bf16.mxu0 %v8175_v0  ;;  %v6289_v2 = vcombine.high %v160_v1, %v160_v1  ;;  %v6288_v3 = vcombine.low %v160_v1, %v160_v1  ;;  %v7177_v4 = vld [vmem:[#allocation5 + $0x54] ss:$8 sps:$4 sm:$0xff]   ;;  %v7179_v6 = vld [vmem:[#allocation5 + $0x50] ss:$8 sps:$4 sm:$0xff]   ;;  %v7180_v7 = vld [vmem:[#allocation5 + $0x44] ss:$8 sps:$4 sm:$0xff]  }
  0x74   :  { %v7182_v8 = vld [vmem:[#allocation5 + $0x40] ss:$8 sps:$4 sm:$0xff]   ;;  %v7183_v9 = vld [vmem:[#allocation5 + $0x34] ss:$8 sps:$4 sm:$0xff]   ;;  %v7185_v11 = vld [vmem:[#allocation5 + $0x30] ss:$8 sps:$4 sm:$0xff]  }
  0x75   :  { %6290 = vmatprep.subr.msk.bf16.mxu0 %vm242_vm0, %v6289_v2  ;;  %v244_v5 = vsel %vm242_vm0, %v6288_v3, 0  ;;  %v7195_v10 = vld [vmem:[#allocation8 + $0xe4] ss:$16 sps:$4 sm:$0xff]   ;;  %v7200_v12 = vld [vmem:[#allocation8 + $0xe0] ss:$16 sps:$4 sm:$0xff]   ;;  %vm238_vm1 = vcmask 818176  }
  0x76   :  { %252 = vmatpush1.bf16.msra.mxu0 %v244_v5  ;;  %700 = vmatprep.subr.bf16.mxu1 %v7195_v10  ;;  %v7201_v13 = vld [vmem:[#allocation8 + $0xc4] ss:$16 sps:$4 sm:$0xff]   ;;  %v7206_v15 = vld [vmem:[#allocation8 + $0xc0] ss:$16 sps:$4 sm:$0xff]   ;;  %v7199_v27 = vld [vmem:[#allocation8 + $0xec] ss:$16 sps:$4 sm:$0xff]  }
  0x77   :  { %253 = vmatprep.subr.bf16.mxu0 %v7177_v4  ;;  %v7186_v14 = vld [vmem:[#allocation5 + $0x24] ss:$8 sps:$4 sm:$0xff]   ;;  %701 = vmatpush1.bf16.msra.mxu1 %v7200_v12  ;;  %v7188_v17 = vld [vmem:[#allocation5 + $0x20] ss:$8 sps:$4 sm:$0xff]   ;;  %v7189_v18 = vld [vmem:[#allocation5 + $0x14] ss:$8 sps:$4 sm:$0xff]  }
  0x78   :  { %702 = vmatprep.subr.bf16.mxu1 %v7201_v13  ;;  %v7207_v16 = vld [vmem:[#allocation8 + $0xa4] ss:$16 sps:$4 sm:$0xff]   ;;  %v7212_v19 = vld [vmem:[#allocation8 + $0xa0] ss:$16 sps:$4 sm:$0xff]   ;;  %v7197_v31 = vld [vmem:[#allocation8 + $0xe8] ss:$16 sps:$4 sm:$0xff]  }
  0x79   :  { %v7213_v20 = vld [vmem:[#allocation8 + $0x84] ss:$16 sps:$4 sm:$0xff]   ;;  %v7218_v23 = vld [vmem:[#allocation8 + $0x80] ss:$16 sps:$4 sm:$0xff]   ;;  %v7205_v32 = vld [vmem:[#allocation8 + $0xcc] ss:$16 sps:$4 sm:$0xff]  }
  0x7a   :  { %254 = vmatpush1.bf16.msra.mxu0 %v7179_v6  ;;  %v7191_v21 = vld [vmem:[#allocation5 + $0x10] ss:$8 sps:$4 sm:$0xff]   ;;  %v7192_v22 = vld [vmem:[#allocation5 + $0x4] ss:$8 sps:$4 sm:$0xff]   ;;  %v7194_v25 = vld [vmem:[#allocation5] ss:$8 sps:$4 sm:$0xff]  }
  0x7b   :  { %255 = vmatprep.subr.bf16.mxu0 %v7180_v7  ;;  %703 = vmatpush1.bf16.msra.mxu1 %v7206_v15  ;;  %v7219_v24 = vld [vmem:[#allocation8 + $0x64] ss:$16 sps:$4 sm:$0xff]   ;;  %v7224_v28 = vld [vmem:[#allocation8 + $0x60] ss:$16 sps:$4 sm:$0xff]   ;;  %v7203_v35 = vld [vmem:[#allocation8 + $0xc8] ss:$16 sps:$4 sm:$0xff]  }
  0x7c   :  { %704 = vmatprep.subr.bf16.mxu1 %v7207_v16  ;;  %v146_v26 = vld [vmem:[#allocation2] sm:$0xff]  ;;  %v7209_v39 = vld [vmem:[#allocation8 + $0xa8] ss:$16 sps:$4 sm:$0xff]   ;;  %s8176_s6 = smov [#allocation17]  }
  0x7d   :  { %v7225_v29 = vld [vmem:[#allocation8 + $0x44] ss:$16 sps:$4 sm:$0xff]   ;;  %v147_v30 = vpack.c.bf16 %v146_v26, %v146_v26  ;;  %v7230_v33 = vld [vmem:[#allocation8 + $0x40] ss:$16 sps:$4 sm:$0xff]   ;;  %v7211_v36 = vld [vmem:[#allocation8 + $0xac] ss:$16 sps:$4 sm:$0xff]  }
  0x7e   :  { %256 = vmatpush1.bf16.msra.mxu0 %v7182_v8  ;;  %v7231_v34 = vld [vmem:[#allocation8 + $0x24] ss:$16 sps:$4 sm:$0xff]   ;;  %v7236_v37 = vld [vmem:[#allocation8 + $0x20] ss:$16 sps:$4 sm:$0xff]   ;;  %v7217_v40 = vld [vmem:[#allocation8 + $0x8c] ss:$16 sps:$4 sm:$0xff]  }
  0x7f   :  { %257 = vmatprep.subr.bf16.mxu0 %v7183_v9  ;;  %705 = vmatpush1.bf16.msra.mxu1 %v7212_v19  ;;  %v7237_v38 = vld [vmem:[#allocation8 + $0x4] ss:$16 sps:$4 sm:$0xff]   ;;  %v7242_v41 = vld [vmem:[#allocation8] ss:$16 sps:$4 sm:$0xff]   ;;  %v7215_v43 = vld [vmem:[#allocation8 + $0x88] ss:$16 sps:$4 sm:$0xff]  }
  0x80   :  { %706 = vmatprep.subr.bf16.mxu1 %v7213_v20  ;;  %v7243_v42 = vld [vmem:[#allocation8 + $0x1e4] ss:$16 sps:$4 sm:$0xff]   ;;  %v7223_v44 = vld [vmem:[#allocation8 + $0x6c] ss:$16 sps:$4 sm:$0xff]   ;;  %v7248_v45 = vld [vmem:[#allocation8 + $0x1e0] ss:$16 sps:$4 sm:$0xff]  }
  0x81   :  { %v7249_v46 = vld [vmem:[#allocation8 + $0x1c4] ss:$16 sps:$4 sm:$0xff]   ;;  %v7221_v47 = vld [vmem:[#allocation8 + $0x68] ss:$16 sps:$4 sm:$0xff]   ;;  %v7229_v48 = vld [vmem:[#allocation8 + $0x4c] ss:$16 sps:$4 sm:$0xff]  }
  0x82   :  { %258 = vmatpush1.bf16.msra.mxu0 %v7185_v11  ;;  %v7254_v49 = vld [vmem:[#allocation8 + $0x1c0] ss:$16 sps:$4 sm:$0xff]   ;;  %v7227_v50 = vld [vmem:[#allocation8 + $0x48] ss:$16 sps:$4 sm:$0xff]   ;;  %v7255_v51 = vld [vmem:[#allocation8 + $0x1a4] ss:$16 sps:$4 sm:$0xff]  }
  0x83   :  { %259 = vmatprep.subr.bf16.mxu0 %v7186_v14  ;;  %707 = vmatpush1.bf16.msra.mxu1 %v7218_v23  ;;  %v7235_v52 = vld [vmem:[#allocation8 + $0x2c] ss:$16 sps:$4 sm:$0xff]   ;;  %v7260_v53 = vld [vmem:[#allocation8 + $0x1a0] ss:$16 sps:$4 sm:$0xff]   ;;  %v7261_v54 = vld [vmem:[#allocation8 + $0x184] ss:$16 sps:$4 sm:$0xff]  }
  0x84   :  { %708 = vmatprep.subr.bf16.mxu1 %v7219_v24  ;;  %v7233_v55 = vld [vmem:[#allocation8 + $0x28] ss:$16 sps:$4 sm:$0xff]   ;;  %v7241_v56 = vld [vmem:[#allocation8 + $0xc] ss:$16 sps:$4 sm:$0xff]   ;;  %v7266_v57 = vld [vmem:[#allocation8 + $0x180] ss:$16 sps:$4 sm:$0xff]  }
  0x85   :  { %v7267_v58 = vld [vmem:[#allocation8 + $0x164] ss:$16 sps:$4 sm:$0xff]   ;;  %v7239_v59 = vld [vmem:[#allocation8 + $0x8] ss:$16 sps:$4 sm:$0xff]   ;;  %v7247_v60 = vld [vmem:[#allocation8 + $0x1ec] ss:$16 sps:$4 sm:$0xff]  }
  0x86   :  { %260 = vmatpush1.bf16.msra.mxu0 %v7188_v17  ;;  %v7272_v61 = vld [vmem:[#allocation8 + $0x160] ss:$16 sps:$4 sm:$0xff]   ;;  %v7273_v62 = vld [vmem:[#allocation8 + $0x144] ss:$16 sps:$4 sm:$0xff]   ;;  %v7245_v63 = vld [vmem:[#allocation8 + $0x1e8] ss:$16 sps:$4 sm:$0xff]  }
  0x87   :  { %261 = vmatprep.subr.bf16.mxu0 %v7189_v18  ;;  %709 = vmatpush1.bf16.msra.mxu1 %v7224_v28  ;;  %v7253_v0 = vld [vmem:[#allocation8 + $0x1cc] ss:$16 sps:$4 sm:$0xff]   ;;  %v7278_v1 = vld [vmem:[#allocation8 + $0x140] ss:$16 sps:$4 sm:$0xff]   ;;  %v7251_v2 = vld [vmem:[#allocation8 + $0x1c8] ss:$16 sps:$4 sm:$0xff]  }
  0x88   :  { %710 = vmatprep.subr.bf16.mxu1 %v7225_v29  ;;  %v7259_v3 = vld [vmem:[#allocation8 + $0x1ac] ss:$16 sps:$4 sm:$0xff]   ;;  %v7257_v4 = vld [vmem:[#allocation8 + $0x1a8] ss:$16 sps:$4 sm:$0xff]   ;;  %v7279_v11 = vld [vmem:[#allocation8 + $0x124] ss:$16 sps:$4 sm:$0xff]  }
  0x89   :  { %v7265_v5 = vld [vmem:[#allocation8 + $0x18c] ss:$16 sps:$4 sm:$0xff]   ;;  %v7263_v6 = vld [vmem:[#allocation8 + $0x188] ss:$16 sps:$4 sm:$0xff]   ;;  %v7284_v14 = vld [vmem:[#allocation8 + $0x120] ss:$16 sps:$4 sm:$0xff]  }
  0x8a   :  { %262 = vmatpush1.bf16.msra.mxu0 %v7191_v21  ;;  %v7271_v7 = vld [vmem:[#allocation8 + $0x16c] ss:$16 sps:$4 sm:$0xff]   ;;  %v7269_v8 = vld [vmem:[#allocation8 + $0x168] ss:$16 sps:$4 sm:$0xff]   ;;  %v7285_v15 = vld [vmem:[#allocation8 + $0x104] ss:$16 sps:$4 sm:$0xff]  }
  0x8b   :  { %263 = vmatprep.subr.bf16.mxu0 %v7192_v22  ;;  %711 = vmatpush1.bf16.msra.mxu1 %v7230_v33  ;;  %v7277_v9 = vld [vmem:[#allocation8 + $0x14c] ss:$16 sps:$4 sm:$0xff]   ;;  %v7275_v10 = vld [vmem:[#allocation8 + $0x148] ss:$16 sps:$4 sm:$0xff]   ;;  %v7290_v18 = vld [vmem:[#allocation8 + $0x100] ss:$16 sps:$4 sm:$0xff]  }
  0x8c   :  { %712 = vmatprep.subr.bf16.mxu1 %v7231_v34  ;;  %v7283_v12 = vld [vmem:[#allocation8 + $0x12c] ss:$16 sps:$4 sm:$0xff]   ;;  %v7281_v13 = vld [vmem:[#allocation8 + $0x128] ss:$16 sps:$4 sm:$0xff]   ;;  %s6263_s8 = sshll.u32 %s8176_s6, 4  ;;  %s6264_s8 = int_to_ptr.vmem [resolvable:$true] %s6263_s8 }
  0x8d   :  { %v7289_v16 = vld [vmem:[#allocation8 + $0x10c] ss:$16 sps:$4 sm:$0xff]   ;;  %v7287_v17 = vld [vmem:[#allocation8 + $0x108] ss:$16 sps:$4 sm:$0xff]   ;;  %s8126_s12 = scalar_lea.vmem %s6264_s8, 448  ;;  %p8131_p4 = scmp.lt.s32.totalorder %s6264_s8, %s6264_s8 }
  0x8e   :  { %264 = vmatpush1.bf16.msra.mxu0 %v7194_v25  ;;  %v846_v19 = vld [vmem:[#allocation11 + $0x1c0] sm:$0xff]  ;;  %v161_v29 = vld [vmem:[#allocation7] sm:$0x3]  ;;  %p8127_p3 = scmp.ne.s32.totalorder %s6264_s8, %s8126_s12  ;;  %p8132_p5 = scmp.lt.s32.totalorder %s8126_s12, %s8126_s12 }
  0x8f   :  { %741 = vmatprep.subr.bf16.mxu0 %v7199_v27  ;;  %713 = vmatpush1.bf16.msra.mxu1 %v7236_v37  ;;  %v850_v20 = vld [vmem:[#allocation11 + $0x1e0] sm:$0xff]  ;;  %v163_v27 = vlaneseq }
  0x90   :  { %714 = vmatprep.subr.bf16.mxu1 %v7237_v38  ;;  %v974_v21 = vld [vmem:[#allocation11 + $0x5c0] sm:$0xff]  ;;  %v6412_v22 = vcombine.low %v846_v19, %v850_v20  ;;  %v6413_v23 = vcombine.high %v846_v19, %v850_v20  ;;  %p8133_p6 = por %p8132_p5, %p8131_p4 }
  0x91   :  { %6291 = vmatmul.mubr.msk.bf16.vlgmr.msra.gmra.mxu0 %vm238_vm1, %v147_v30  ;;  %v978_v24 = vld [vmem:[#allocation11 + $0x5e0] sm:$0xff]  ;;  %v8254_v28 = vshrl.u32 %v163_v27, 7 }
  0x92   :  { %742 = vmatpush1.bf16.msra.mxu0 %v7197_v31  ;;  %v6540_v25 = vcombine.low %v974_v21, %v978_v24  ;;  %v6541_v26 = vcombine.high %v974_v21, %v978_v24  ;;  %v802_v19 = vld [vmem:[#allocation11 + $0x60] sm:$0xff]  ;;  %p8134_p7 = pnand %p8133_p6, %p8127_p3 }
  0x93   :  { %743 = vmatprep.subr.bf16.mxu0 %v7205_v32  ;;  %715 = vmatpush1.bf16.msra.mxu1 %v7242_v41  ;;  %v8257_v30 = vsub.s32 0, %v8254_v28  ;;  %v8260_v31 = vsub.s32 1, %v8254_v28  ;;  %v966_v41 = vld [vmem:[#allocation11 + $0x580] sm:$0xff] }
  0x94   :  { %716 = vmatprep.subr.bf16.mxu1 %v7243_v42  ;;  %v926_v20 = vld [vmem:[#allocation11 + $0x440] sm:$0xff] }
  0x95   :  { %v166_v32 = vrot.slane %v161_v29, %v8257_v30  ;;  %v170_v33 = vrot.slane %v161_v29, %v8260_v31  ;;  %v930_v21 = vld [vmem:[#allocation11 + $0x460] sm:$0xff] }
  0x96   :  { %744 = vmatpush1.bf16.msra.mxu0 %v7203_v35  ;;  %v794_v27 = vld [vmem:[#allocation11 + $0x20] sm:$0xff] }
  0x97   :  { %745 = vmatprep.subr.bf16.mxu0 %v7211_v36  ;;  %717 = vmatpush2.bf16.msra.mxu1 %v7248_v45  ;;  %v918_v29 = vld [vmem:[#allocation11 + $0x400] sm:$0xff] }
  0x98   :  { %718 = vmatprep.subr.bf16.mxu1 %v7249_v46 }
  0x9a   :  { %746 = vmatpush1.bf16.msra.mxu0 %v7209_v39  ;;  %v838_v39 = vld [vmem:[#allocation11 + $0x180] sm:$0xff] }
  0x9b   :  { %747 = vmatprep.subr.bf16.mxu0 %v7217_v40  ;;  %719 = vmatpush2.bf16.msra.mxu1 %v7254_v49  ;;  %v842_v40 = vld [vmem:[#allocation11 + $0x1a0] sm:$0xff] }
  0x9c   :  { %720 = vmatprep.subr.bf16.mxu1 %v7255_v51  ;;  %v958_v49 = vld [vmem:[#allocation11 + $0x540] sm:$0xff] }
  0x9e   :  { %748 = vmatpush1.bf16.msra.mxu0 %v7215_v43 }
  0x9f   :  { %749 = vmatprep.subr.bf16.mxu0 %v7223_v44  ;;  %721 = vmatpush2.bf16.msra.mxu1 %v7260_v53  ;;  %v970_v44 = vld [vmem:[#allocation11 + $0x5a0] sm:$0xff] }
  0xa0   :  { %722 = vmatprep.subr.bf16.mxu1 %v7261_v54  ;;  %v6533_v53 = vcombine.high %v966_v41, %v970_v44  ;;  %v6404_v54 = vcombine.low %v838_v39, %v842_v40 }
  0xa2   :  { %750 = vmatpush1.bf16.msra.mxu0 %v7221_v47  ;;  %v830_v47 = vld [vmem:[#allocation11 + $0x140] sm:$0xff] }
  0xa3   :  { %751 = vmatprep.subr.bf16.mxu0 %v7229_v48  ;;  %723 = vmatpush2.bf16.msra.mxu1 %v7266_v57  ;;  %v834_v48 = vld [vmem:[#allocation11 + $0x160] sm:$0xff] }
  0xa4   :  { %724 = vmatprep.subr.bf16.mxu1 %v7267_v58  ;;  %v826_v57 = vld [vmem:[#allocation11 + $0x120] sm:$0xff] }
  0xa5   :  { %v950_v58 = vld [vmem:[#allocation11 + $0x500] sm:$0xff] }
  0xa6   :  { %752 = vmatpush1.bf16.msra.mxu0 %v7227_v50  ;;  %v962_v50 = vld [vmem:[#allocation11 + $0x560] sm:$0xff] }
  0xa7   :  { %753 = vmatprep.subr.bf16.mxu0 %v7235_v52  ;;  %725 = vmatpush2.bf16.msra.mxu1 %v7272_v61  ;;  %v6405_v52 = vcombine.high %v838_v39, %v842_v40  ;;  %v6525_v61 = vcombine.high %v958_v49, %v962_v50  ;;  %v1038_v39 = vld [vmem:[#allocation11 + $0x7c0] sm:$0xff] }
  0xa8   :  { %726 = vmatprep.subr.bf16.mxu1 %v7273_v62  ;;  %v6396_v62 = vcombine.low %v830_v47, %v834_v48  ;;  %v1042_v40 = vld [vmem:[#allocation11 + $0x7e0] sm:$0xff] }
  0xaa   :  { %754 = vmatpush1.bf16.msra.mxu0 %v7233_v55  ;;  %v6532_v55 = vcombine.low %v966_v41, %v970_v44  ;;  %v6605_v44 = vcombine.high %v1038_v39, %v1042_v40 }
  0xab   :  { %755 = vmatprep.subr.bf16.mxu0 %v7241_v56  ;;  %727 = vmatpush2.bf16.msra.mxu1 %v7278_v1  ;;  %v822_v56 = vld [vmem:[#allocation11 + $0x100] sm:$0xff] }
  0xac   :  { %728 = vmatprep.subr.bf16.mxu1 %v7279_v11  ;;  %v818_v1 = vld [vmem:[#allocation11 + $0xe0] sm:$0xff] }
  0xad   :  { %v810_v11 = vld [vmem:[#allocation11 + $0xa0] sm:$0xff] }
  0xae   :  { %756 = vmatpush1.bf16.msra.mxu0 %v7239_v59  ;;  %v954_v59 = vld [vmem:[#allocation11 + $0x520] sm:$0xff] }
  0xaf   :  { %757 = vmatprep.subr.bf16.mxu0 %v7247_v60  ;;  %729 = vmatpush2.bf16.msra.mxu1 %v7284_v14  ;;  %v6397_v60 = vcombine.high %v830_v47, %v834_v48  ;;  %v1030_v47 = vld [vmem:[#allocation11 + $0x780] sm:$0xff] }
  0xb0   :  { %730 = vmatprep.subr.bf16.mxu1 %v7285_v15  ;;  %v1034_v48 = vld [vmem:[#allocation11 + $0x7a0] sm:$0xff] }
  0xb2   :  { %758 = vmatpush2.bf16.msra.mxu0 %v7245_v63  ;;  %v6524_v63 = vcombine.low %v958_v49, %v962_v50  ;;  %v6604_v50 = vcombine.low %v1038_v39, %v1042_v40 }
  0xb3   :  { %759 = vmatprep.subr.bf16.mxu0 %v7253_v0  ;;  %731 = vmatpush2.bf16.msra.mxu1 %v7290_v18  ;;  %v814_v0 = vld [vmem:[#allocation11 + $0xc0] sm:$0xff] }
  0xb4   :  { %2368 = vmatprep.subr.bf16.mxu1 %v6413_v23  ;;  %v6380_v14 = vcombine.low %v814_v0, %v818_v1  ;;  %v798_v18 = vld [vmem:[#allocation11 + $0x40] sm:$0xff] }
  0xb5   :  { %v6365_v24 = vcombine.high %v798_v18, %v802_v19 }
  0xb6   :  { %760 = vmatpush2.bf16.msra.mxu0 %v7251_v2  ;;  %v942_v2 = vld [vmem:[#allocation11 + $0x4c0] sm:$0xff] }
  0xb7   :  { %761 = vmatprep.subr.bf16.mxu0 %v7259_v3  ;;  %v946_v3 = vld [vmem:[#allocation11 + $0x4e0] sm:$0xff] }
  0xb8   :  { %v6508_v15 = vcombine.low %v942_v2, %v946_v3 }
  0xba   :  { %762 = vmatpush2.bf16.msra.mxu0 %v7257_v4  ;;  %v6389_v4 = vcombine.high %v822_v56, %v826_v57 }
  0xbb   :  { %763 = vmatprep.subr.bf16.mxu0 %v7265_v5  ;;  %v6517_v5 = vcombine.high %v950_v58, %v954_v59 }
  0xbe   :  { %764 = vmatpush2.bf16.msra.mxu0 %v7263_v6  ;;  %v6388_v6 = vcombine.low %v822_v56, %v826_v57  ;;  %v1026_v56 = vld [vmem:[#allocation11 + $0x760] sm:$0xff] }
  0xbf   :  { %765 = vmatprep.subr.bf16.mxu0 %v7271_v7  ;;  %v6516_v7 = vcombine.low %v950_v58, %v954_v59  ;;  %v6596_v58 = vcombine.low %v1030_v47, %v1034_v48 }
  0xc2   :  { %766 = vmatpush2.bf16.msra.mxu0 %v7269_v8  ;;  %v6381_v8 = vcombine.high %v814_v0, %v818_v1  ;;  %v1018_v0 = vld [vmem:[#allocation11 + $0x720] sm:$0xff] }
  0xc3   :  { %767 = vmatprep.subr.bf16.mxu0 %v7277_v9  ;;  %v6509_v9 = vcombine.high %v942_v2, %v946_v3 }
  0xc6   :  { %768 = vmatpush2.bf16.msra.mxu0 %v7275_v10  ;;  %v806_v10 = vld [vmem:[#allocation11 + $0x80] sm:$0xff] }
  0xc7   :  { %769 = vmatprep.subr.bf16.mxu0 %v7283_v12  ;;  %v934_v12 = vld [vmem:[#allocation11 + $0x480] sm:$0xff] }
  0xca   :  { %770 = vmatpush2.bf16.msra.mxu0 %v7281_v13  ;;  %v938_v13 = vld [vmem:[#allocation11 + $0x4a0] sm:$0xff] }
  0xcb   :  { %771 = vmatprep.subr.bf16.mxu0 %v7289_v16  ;;  %v6373_v16 = vcombine.high %v806_v10, %v810_v11  ;;  %v6500_v23 = vcombine.low %v934_v12, %v938_v13 }
  0xce   :  { %772 = vmatpush2.bf16.msra.mxu0 %v7287_v17  ;;  %v6501_v17 = vcombine.high %v934_v12, %v938_v13  ;;  %v870_v13 = vld [vmem:[#allocation11 + $0x280] sm:$0xff] }
  0xcf   :  { %2409 = vmatprep.subr.bf16.mxu0 %v6541_v26  ;;  %v790_v26 = vld [vmem:[#allocation11] sm:$0xff] }
  0xd0   :  { %v6356_v41 = vcombine.low %v790_v26, %v794_v27 }
 0x151   :  { %v283_v34 = vpop.f32.mrf.mxu0 }
 0x152   :  { %v284_v35 = vadd.f32 %v283_v34, %v166_v32  ;;  %v922_v32 = vld [vmem:[#allocation11 + $0x420] sm:$0xff]  ;;  %v6492_v34 = vcombine.low %v926_v20, %v930_v21 }
 0x153   :  { %v285_v36 = vpop.f32.mrf.mxu0 }
 0x154   :  { %v290_v37 = vmax.f32 %v284_v35, 0.0  ;;  %v286_v38 = vadd.f32 %v285_v36, %v170_v33  ;;  %v6364_v33 = vcombine.low %v798_v18, %v802_v19  ;;  %v6357_v35 = vcombine.high %v790_v26, %v794_v27  ;;  %v994_v27 = vld [vmem:[#allocation11 + $0x660] sm:$0xff] }
 0x155   :  { %v287_v42 = vpop.f32.mrf.mxu0  ;;  %v6485_v36 = vcombine.high %v918_v29, %v922_v32 }
 0x156   :  { %v291_v43 = vmax.f32 %v286_v38, 0.0  ;;  %v292_v51 = vpack.c.bf16 %v290_v37, %v290_v37  ;;  %v910_v37 = vld [vmem:[#allocation11 + $0x3c0] sm:$0xff]  ;;  %v6484_v42 = vcombine.low %v918_v29, %v922_v32 }
 0x157   :  { %v288_v45 = vpop.f32.mrf.mxu0  ;;  %v914_v38 = vld [vmem:[#allocation11 + $0x3e0] sm:$0xff] }
 0x158   :  { %v293_v46 = vpack.c.bf16 %v291_v43, %v291_v43  ;;  %v6477_v43 = vcombine.high %v910_v37, %v914_v38  ;;  %v902_v45 = vld [vmem:[#allocation11 + $0x380] sm:$0xff]  ;;  %v6476_v49 = vcombine.low %v910_v37, %v914_v38 }
 0x159   :  { %v986_v38 = vld [vmem:[#allocation11 + $0x620] sm:$0xff] }
 0x15a   :  { %732 = vmatprep.mubr.bf16.mxu1 %v293_v46  ;;  %773 = vmatprep.mubr.bf16.mxu0 %v293_v46  ;;  %v906_v46 = vld [vmem:[#allocation11 + $0x3a0] sm:$0xff] }
 0x15b   :  { %733 = vmatmul.mubr.bf16.vlgmr.msra.gmra.mxu1 %v292_v51  ;;  %774 = vmatmul.mubr.bf16.vlgmr.msra.gmra.mxu0 %v292_v51  ;;  %v6469_v51 = vcombine.high %v902_v45, %v906_v46  ;;  %v6468_v57 = vcombine.low %v902_v45, %v906_v46  ;;  %v979_v46 = vld [vmem:[#allocation11 + $0x5e8] sm:$0xff] }
 0x15c   :  { %2369 = vmatpush1.bf16.msra.mxu1 %v6412_v22  ;;  %2410 = vmatpush1.bf16.msra.mxu0 %v6540_v25  ;;  %v6372_v22 = vcombine.low %v806_v10, %v810_v11  ;;  %v6493_v25 = vcombine.high %v926_v20, %v930_v21 }
 0x15d   :  { %2370 = vmatprep.subr.bf16.mxu1 %v6405_v52  ;;  %2411 = vmatprep.subr.bf16.mxu0 %v6533_v53  ;;  %v6597_v52 = vcombine.high %v1030_v47, %v1034_v48  ;;  %v894_v53 = vld [vmem:[#allocation11 + $0x340] sm:$0xff] }
 0x160   :  { %2371 = vmatpush1.bf16.msra.mxu1 %v6404_v54  ;;  %2412 = vmatpush1.bf16.msra.mxu0 %v6532_v55  ;;  %v898_v54 = vld [vmem:[#allocation11 + $0x360] sm:$0xff] }
 0x161   :  { %2372 = vmatprep.subr.bf16.mxu1 %v6397_v60  ;;  %2413 = vmatprep.subr.bf16.mxu0 %v6525_v61  ;;  %v1022_v55 = vld [vmem:[#allocation11 + $0x740] sm:$0xff]  ;;  %v6461_v59 = vcombine.high %v894_v53, %v898_v54  ;;  %v6460_v1 = vcombine.low %v894_v53, %v898_v54 }
 0x162   :  { %v6589_v60 = vcombine.high %v1022_v55, %v1026_v56  ;;  %v886_v61 = vld [vmem:[#allocation11 + $0x300] sm:$0xff]  ;;  %v6588_v2 = vcombine.low %v1022_v55, %v1026_v56 }
 0x164   :  { %2373 = vmatpush1.bf16.msra.mxu1 %v6396_v62  ;;  %2414 = vmatpush1.bf16.msra.mxu0 %v6524_v63  ;;  %v890_v62 = vld [vmem:[#allocation11 + $0x320] sm:$0xff] }
 0x165   :  { %2374 = vmatprep.subr.bf16.mxu1 %v6389_v4  ;;  %2415 = vmatprep.subr.bf16.mxu0 %v6517_v5  ;;  %v1014_v63 = vld [vmem:[#allocation11 + $0x700] sm:$0xff]  ;;  %v6453_v3 = vcombine.high %v886_v61, %v890_v62 }
 0x166   :  { %v6581_v4 = vcombine.high %v1014_v63, %v1018_v0  ;;  %v878_v5 = vld [vmem:[#allocation11 + $0x2c0] sm:$0xff]  ;;  %v6580_v10 = vcombine.low %v1014_v63, %v1018_v0 }
 0x168   :  { %2375 = vmatpush1.bf16.msra.mxu1 %v6388_v6  ;;  %2416 = vmatpush1.bf16.msra.mxu0 %v6516_v7  ;;  %v882_v6 = vld [vmem:[#allocation11 + $0x2e0] sm:$0xff] }
 0x169   :  { %2376 = vmatprep.subr.bf16.mxu1 %v6381_v8  ;;  %2417 = vmatprep.subr.bf16.mxu0 %v6509_v9  ;;  %v1006_v7 = vld [vmem:[#allocation11 + $0x6c0] sm:$0xff]  ;;  %v6452_v9 = vcombine.low %v886_v61, %v890_v62  ;;  %v6445_v11 = vcombine.high %v878_v5, %v882_v6 }
 0x16a   :  { %v1010_v8 = vld [vmem:[#allocation11 + $0x6e0] sm:$0xff] }
 0x16b   :  { %v6573_v12 = vcombine.high %v1006_v7, %v1010_v8  ;;  %v6572_v18 = vcombine.low %v1006_v7, %v1010_v8  ;;  %v839_v7 = vld [vmem:[#allocation11 + $0x188] sm:$0xff] }
 0x16c   :  { %2377 = vmatpush1.bf16.msra.mxu1 %v6380_v14  ;;  %2418 = vmatpush1.bf16.msra.mxu0 %v6508_v15  ;;  %v874_v14 = vld [vmem:[#allocation11 + $0x2a0] sm:$0xff] }
 0x16d   :  { %2378 = vmatprep.subr.bf16.mxu1 %v6373_v16  ;;  %2419 = vmatprep.subr.bf16.mxu0 %v6501_v17  ;;  %v998_v15 = vld [vmem:[#allocation11 + $0x680] sm:$0xff]  ;;  %v6444_v17 = vcombine.low %v878_v5, %v882_v6  ;;  %v6437_v19 = vcombine.high %v870_v13, %v874_v14  ;;  %v6436_v21 = vcombine.low %v870_v13, %v874_v14 }
 0x16e   :  { %v1002_v16 = vld [vmem:[#allocation11 + $0x6a0] sm:$0xff] }
 0x16f   :  { %v6565_v20 = vcombine.high %v998_v15, %v1002_v16 }
 0x170   :  { %2379 = vmatpush1.bf16.msra.mxu1 %v6372_v22  ;;  %2420 = vmatpush1.bf16.msra.mxu0 %v6500_v23  ;;  %v6564_v22 = vcombine.low %v998_v15, %v1002_v16  ;;  %v862_v23 = vld [vmem:[#allocation11 + $0x240] sm:$0xff] }
 0x171   :  { %2380 = vmatprep.subr.bf16.mxu1 %v6365_v24  ;;  %2421 = vmatprep.subr.bf16.mxu0 %v6493_v25  ;;  %v866_v24 = vld [vmem:[#allocation11 + $0x260] sm:$0xff] }
 0x172   :  { %v990_v25 = vld [vmem:[#allocation11 + $0x640] sm:$0xff]  ;;  %v6429_v26 = vcombine.high %v862_v23, %v866_v24  ;;  %v6428_v29 = vcombine.low %v862_v23, %v866_v24 }
 0x173   :  { %v6556_v32 = vcombine.low %v990_v25, %v994_v27 }
 0x174   :  { %2381 = vmatpush1.bf16.msra.mxu1 %v6364_v33  ;;  %2422 = vmatpush1.bf16.msra.mxu0 %v6492_v34  ;;  %v6557_v33 = vcombine.high %v990_v25, %v994_v27  ;;  %v854_v34 = vld [vmem:[#allocation11 + $0x200] sm:$0xff]  ;;  %v823_v27 = vld [vmem:[#allocation11 + $0x108] sm:$0xff] }
 0x175   :  { %2382 = vmatprep.subr.bf16.mxu1 %v6357_v35  ;;  %2423 = vmatprep.subr.bf16.mxu0 %v6485_v36  ;;  %v858_v35 = vld [vmem:[#allocation11 + $0x220] sm:$0xff] }
 0x176   :  { %v982_v36 = vld [vmem:[#allocation11 + $0x600] sm:$0xff]  ;;  %v6421_v37 = vcombine.high %v854_v34, %v858_v35  ;;  %v6420_v39 = vcombine.low %v854_v34, %v858_v35 }
 0x177   :  { %v6548_v40 = vcombine.low %v982_v36, %v986_v38 }
 0x178   :  { %2383 = vmatpush1.bf16.msra.mxu1 %v6356_v41  ;;  %2424 = vmatpush1.bf16.msra.mxu0 %v6484_v42  ;;  %v6549_v41 = vcombine.high %v982_v36, %v986_v38  ;;  %v847_v42 = vld [vmem:[#allocation11 + $0x1c8] sm:$0xff] }
 0x179   :  { %2384 = vmatprep.subr.bf16.mxu1 %v6477_v43  ;;  %2425 = vmatprep.subr.bf16.mxu0 %v6605_v44  ;;  %v851_v43 = vld [vmem:[#allocation11 + $0x1e8] sm:$0xff] }
 0x17a   :  { %v975_v44 = vld [vmem:[#allocation11 + $0x5c8] sm:$0xff]  ;;  %v6415_v45 = vcombine.high %v847_v42, %v851_v43  ;;  %v6414_v47 = vcombine.low %v847_v42, %v851_v43 }
 0x17b   :  { %v6542_v48 = vcombine.low %v975_v44, %v979_v46  ;;  %v815_v38 = vld [vmem:[#allocation11 + $0xc8] sm:$0xff] }
 0x17c   :  { %2385 = vmatpush2.bf16.msra.mxu1 %v6476_v49  ;;  %2426 = vmatpush2.bf16.msra.mxu0 %v6604_v50  ;;  %v6543_v49 = vcombine.high %v975_v44, %v979_v46  ;;  %v8265_v50 = vsub.s32 2, %v8254_v28  ;;  %v807_v46 = vld [vmem:[#allocation11 + $0x88] sm:$0xff] }
 0x17d   :  { %2386 = vmatprep.subr.bf16.mxu1 %v6469_v51  ;;  %2427 = vmatprep.subr.bf16.mxu0 %v6597_v52  ;;  %v358_v51 = vld [vmem:[#allocation10] sm:$0xf]  ;;  %v8268_v52 = vsub.s32 3, %v8254_v28 }
 0x17e   :  { %v363_v53 = vrot.slane %v358_v51, %v8257_v30  ;;  %v371_v54 = vrot.slane %v358_v51, %v8265_v50  ;;  %v367_v55 = vrot.slane %v358_v51, %v8260_v31 }
 0x17f   :  { %v375_v56 = vrot.slane %v358_v51, %v8268_v52 }
 0x180   :  { %2387 = vmatpush2.bf16.msra.mxu1 %v6468_v57  ;;  %2428 = vmatpush2.bf16.msra.mxu0 %v6596_v58 }
 0x181   :  { %2388 = vmatprep.subr.bf16.mxu1 %v6461_v59  ;;  %2429 = vmatprep.subr.bf16.mxu0 %v6589_v60 }
 0x184   :  { %2389 = vmatpush2.bf16.msra.mxu1 %v6460_v1  ;;  %2430 = vmatpush2.bf16.msra.mxu0 %v6588_v2 }
 0x185   :  { %2390 = vmatprep.subr.bf16.mxu1 %v6453_v3  ;;  %2431 = vmatprep.subr.bf16.mxu0 %v6581_v4 }
 0x188   :  { %2391 = vmatpush2.bf16.msra.mxu1 %v6452_v9  ;;  %2432 = vmatpush2.bf16.msra.mxu0 %v6580_v10  ;;  %v843_v10 = vld [vmem:[#allocation11 + $0x1a8] sm:$0xff] }
 0x189   :  { %2392 = vmatprep.subr.bf16.mxu1 %v6445_v11  ;;  %2433 = vmatprep.subr.bf16.mxu0 %v6573_v12  ;;  %v967_v11 = vld [vmem:[#allocation11 + $0x588] sm:$0xff]  ;;  %v6406_v23 = vcombine.low %v839_v7, %v843_v10 }
 0x18a   :  { %v971_v12 = vld [vmem:[#allocation11 + $0x5a8] sm:$0xff] }
 0x18b   :  { %v6534_v24 = vcombine.low %v967_v11, %v971_v12 }
 0x18c   :  { %2393 = vmatpush2.bf16.msra.mxu1 %v6444_v17  ;;  %2434 = vmatpush2.bf16.msra.mxu0 %v6572_v18  ;;  %v831_v17 = vld [vmem:[#allocation11 + $0x148] sm:$0xff]  ;;  %v6407_v18 = vcombine.high %v839_v7, %v843_v10 }
 0x18d   :  { %2394 = vmatprep.subr.bf16.mxu1 %v6437_v19  ;;  %2435 = vmatprep.subr.bf16.mxu0 %v6565_v20  ;;  %v6535_v19 = vcombine.high %v967_v11, %v971_v12  ;;  %v835_v20 = vld [vmem:[#allocation11 + $0x168] sm:$0xff] }
 0x18e   :  { %v6399_v25 = vcombine.high %v831_v17, %v835_v20  ;;  %v6398_v34 = vcombine.low %v831_v17, %v835_v20  ;;  %v1039_v10 = vld [vmem:[#allocation11 + $0x7c8] sm:$0xff] }
 0x18f   :  { %v1043_v11 = vld [vmem:[#allocation11 + $0x7e8] sm:$0xff] }
 0x190   :  { %2395 = vmatpush2.bf16.msra.mxu1 %v6436_v21  ;;  %2436 = vmatpush2.bf16.msra.mxu0 %v6564_v22  ;;  %v959_v21 = vld [vmem:[#allocation11 + $0x548] sm:$0xff] }
 0x191   :  { %2396 = vmatprep.subr.bf16.mxu1 %v6429_v26  ;;  %2437 = vmatprep.subr.bf16.mxu0 %v6557_v33  ;;  %v963_v22 = vld [vmem:[#allocation11 + $0x568] sm:$0xff] }
 0x192   :  { %v6527_v26 = vcombine.high %v959_v21, %v963_v22  ;;  %v955_v33 = vld [vmem:[#allocation11 + $0x528] sm:$0xff]  ;;  %v6526_v35 = vcombine.low %v959_v21, %v963_v22 }
 0x193   :  { %v903_v20 = vld [vmem:[#allocation11 + $0x388] sm:$0xff] }
 0x194   :  { %2397 = vmatpush2.bf16.msra.mxu1 %v6428_v29  ;;  %2438 = vmatpush2.bf16.msra.mxu0 %v6556_v32  ;;  %v827_v29 = vld [vmem:[#allocation11 + $0x128] sm:$0xff] }
 0x195   :  { %2398 = vmatprep.subr.bf16.mxu1 %v6421_v37  ;;  %2439 = vmatprep.subr.bf16.mxu0 %v6549_v41  ;;  %v951_v32 = vld [vmem:[#allocation11 + $0x508] sm:$0xff]  ;;  %v6391_v36 = vcombine.high %v823_v27, %v827_v29  ;;  %v6390_v42 = vcombine.low %v823_v27, %v827_v29 }
 0x196   :  { %v6519_v37 = vcombine.high %v951_v32, %v955_v33  ;;  %v947_v41 = vld [vmem:[#allocation11 + $0x4e8] sm:$0xff]  ;;  %v6518_v43 = vcombine.low %v951_v32, %v955_v33 }
 0x197   :  { %v907_v21 = vld [vmem:[#allocation11 + $0x3a8] sm:$0xff] }
 0x198   :  { %2399 = vmatpush2.bf16.msra.mxu1 %v6420_v39  ;;  %2440 = vmatpush2.bf16.msra.mxu0 %v6548_v40  ;;  %v819_v39 = vld [vmem:[#allocation11 + $0xe8] sm:$0xff] }
 0x199   :  { %2450 = vmatprep.subr.bf16.mxu1 %v6415_v45  ;;  %2491 = vmatprep.subr.bf16.mxu0 %v6543_v49  ;;  %v943_v40 = vld [vmem:[#allocation11 + $0x4c8] sm:$0xff]  ;;  %v6383_v44 = vcombine.high %v815_v38, %v819_v39  ;;  %v6382_v51 = vcombine.low %v815_v38, %v819_v39 }
 0x19a   :  { %v6511_v45 = vcombine.high %v943_v40, %v947_v41  ;;  %v939_v49 = vld [vmem:[#allocation11 + $0x4a8] sm:$0xff] }
 0x19b   :  { %v1031_v22 = vld [vmem:[#allocation11 + $0x788] sm:$0xff] }
 0x19c   :  { %v895_v29 = vld [vmem:[#allocation11 + $0x348] sm:$0xff] }
 0x19d   :  { %v899_v32 = vld [vmem:[#allocation11 + $0x368] sm:$0xff] }
 0x19e   :  { %v1023_v33 = vld [vmem:[#allocation11 + $0x748] sm:$0xff] }
 0x19f   :  { %v887_v39 = vld [vmem:[#allocation11 + $0x308] sm:$0xff] }
 0x21b   :  { %v734_v57 = vpop.f32.mrf.mxu1  ;;  %v775_v58 = vpop.f32.mrf.mxu0 }
 0x21c   :  { %v735_v59 = vadd.f32 %v734_v57, %v363_v53  ;;  %v776_v60 = vadd.f32 %v775_v58, %v371_v54  ;;  %v6510_v53 = vcombine.low %v943_v40, %v947_v41  ;;  %v803_v57 = vld [vmem:[#allocation11 + $0x68] sm:$0xff] }
 0x21d   :  { %v736_v61 = vpop.f32.mrf.mxu1  ;;  %v777_v62 = vpop.f32.mrf.mxu0  ;;  %v927_v58 = vld [vmem:[#allocation11 + $0x448] sm:$0xff] }
 0x21e   :  { %v737_v63 = vadd.f32 %v736_v61, %v367_v55  ;;  %v778_v0 = vadd.f32 %v777_v62, %v375_v56  ;;  %v782_v1 = vmax.f32 %v735_v59, 0.0  ;;  %v784_v2 = vmax.f32 %v776_v60, 0.0  ;;  %v799_v56 = vld [vmem:[#allocation11 + $0x48] sm:$0xff] }
 0x21f   :  { %v738_v3 = vpop.f32.mrf.mxu1  ;;  %v779_v4 = vpop.f32.mrf.mxu0  ;;  %v931_v59 = vld [vmem:[#allocation11 + $0x468] sm:$0xff]  ;;  %v6367_v62 = vcombine.high %v799_v56, %v803_v57 }
 0x220   :  { %v783_v5 = vmax.f32 %v737_v63, 0.0  ;;  %v785_v6 = vmax.f32 %v778_v0, 0.0  ;;  %v8278_v15 = vpack.c.bf16 %v782_v1, %v782_v1  ;;  %v8280_v16 = vpack.c.bf16 %v784_v2, %v784_v2  ;;  %v791_v0 = vld [vmem:[#allocation11 + $0x8] sm:$0xff] }
 0x221   :  { %v739_v8 = vpop.f32.mrf.mxu1  ;;  %v780_v9 = vpop.f32.mrf.mxu0  ;;  %v6495_v63 = vcombine.high %v927_v58, %v931_v59  ;;  %v795_v1 = vld [vmem:[#allocation11 + $0x28] sm:$0xff]  ;;  %v6366_v4 = vcombine.low %v799_v56, %v803_v57 }
 0x222   :  { %v8274_v13 = vpack.c.bf16 %v783_v5, %v783_v5  ;;  %v8276_v14 = vpack.c.bf16 %v785_v6, %v785_v6  ;;  %v919_v2 = vld [vmem:[#allocation11 + $0x408] sm:$0xff]  ;;  %v6494_v5 = vcombine.low %v927_v58, %v931_v59  ;;  %v6359_v6 = vcombine.high %v791_v0, %v795_v1 }
 0x223   :  { %v923_v3 = vld [vmem:[#allocation11 + $0x428] sm:$0xff]  ;;  %v6358_v12 = vcombine.low %v791_v0, %v795_v1 }
 0x224   :  { %2400 = vmatprep.mubr.bf16.mxu1 %v8274_v13  ;;  %2441 = vmatprep.mubr.bf16.mxu0 %v8276_v14  ;;  %v6487_v7 = vcombine.high %v919_v2, %v923_v3  ;;  %v911_v8 = vld [vmem:[#allocation11 + $0x3c8] sm:$0xff]  ;;  %v6486_v17 = vcombine.low %v919_v2, %v923_v3 }
 0x225   :  { %2401 = vmatmul.mubr.bf16.vlgmr.msra.gmra.mxu1 %v8278_v15  ;;  %2442 = vmatmul.mubr.bf16.vlgmr.msra.gmra.mxu0 %v8280_v16  ;;  %v915_v9 = vld [vmem:[#allocation11 + $0x3e8] sm:$0xff] }
 0x226   :  { %2451 = vmatpush1.bf16.msra.mxu1 %v6414_v47  ;;  %2492 = vmatpush1.bf16.msra.mxu0 %v6542_v48  ;;  %v811_v47 = vld [vmem:[#allocation11 + $0xa8] sm:$0xff] }
 0x227   :  { %2482 = vmatprep.mubr.bf16.mxu1 %v8274_v13  ;;  %2523 = vmatprep.mubr.bf16.mxu0 %v8276_v14  ;;  %v935_v48 = vld [vmem:[#allocation11 + $0x488] sm:$0xff]  ;;  %v6375_v54 = vcombine.high %v807_v46, %v811_v47  ;;  %v6374_v60 = vcombine.low %v807_v46, %v811_v47 }
 0x228   :  { %2452 = vmatprep.subr.bf16.mxu1 %v6407_v18  ;;  %2493 = vmatprep.subr.bf16.mxu0 %v6535_v19  ;;  %v6503_v55 = vcombine.high %v935_v48, %v939_v49  ;;  %v6502_v61 = vcombine.low %v935_v48, %v939_v49  ;;  %v6479_v18 = vcombine.high %v911_v8, %v915_v9  ;;  %v891_v40 = vld [vmem:[#allocation11 + $0x328] sm:$0xff] }
 0x229   :  { %v6607_v19 = vcombine.high %v1039_v10, %v1043_v11  ;;  %v1015_v41 = vld [vmem:[#allocation11 + $0x708] sm:$0xff] }
 0x22a   :  { %2453 = vmatpush1.bf16.msra.mxu1 %v6406_v23  ;;  %2494 = vmatpush1.bf16.msra.mxu0 %v6534_v24  ;;  %v1035_v23 = vld [vmem:[#allocation11 + $0x7a8] sm:$0xff]  ;;  %v6478_v24 = vcombine.low %v911_v8, %v915_v9 }
 0x22b   :  { %2454 = vmatprep.subr.bf16.mxu1 %v6399_v25  ;;  %2495 = vmatprep.subr.bf16.mxu0 %v6527_v26  ;;  %v6606_v25 = vcombine.low %v1039_v10, %v1043_v11  ;;  %v6471_v26 = vcombine.high %v903_v20, %v907_v21  ;;  %v6599_v27 = vcombine.high %v1031_v22, %v1035_v23  ;;  %v879_v47 = vld [vmem:[#allocation11 + $0x2c8] sm:$0xff] }
 0x22c   :  { %v883_v48 = vld [vmem:[#allocation11 + $0x2e8] sm:$0xff] }
 0x22d   :  { %v1007_v49 = vld [vmem:[#allocation11 + $0x6c8] sm:$0xff] }
 0x22e   :  { %2455 = vmatpush1.bf16.msra.mxu1 %v6398_v34  ;;  %2496 = vmatpush1.bf16.msra.mxu0 %v6526_v35  ;;  %v1027_v34 = vld [vmem:[#allocation11 + $0x768] sm:$0xff]  ;;  %v6470_v35 = vcombine.low %v903_v20, %v907_v21  ;;  %v848_v21 = vld [vmem:[#allocation11 + $0x1d0] sm:$0xff] }
 0x22f   :  { %2456 = vmatprep.subr.bf16.mxu1 %v6391_v36  ;;  %2497 = vmatprep.subr.bf16.mxu0 %v6519_v37  ;;  %v6598_v36 = vcombine.low %v1031_v22, %v1035_v23  ;;  %v6463_v37 = vcombine.high %v895_v29, %v899_v32  ;;  %v6591_v38 = vcombine.high %v1023_v33, %v1027_v34  ;;  %v871_v57 = vld [vmem:[#allocation11 + $0x288] sm:$0xff]  ;;  %v852_v22 = vld [vmem:[#allocation11 + $0x1f0] sm:$0xff] }
 0x230   :  { %v875_v58 = vld [vmem:[#allocation11 + $0x2a8] sm:$0xff]  ;;  %v976_v23 = vld [vmem:[#allocation11 + $0x5d0] sm:$0xff] }
 0x231   :  { %v999_v59 = vld [vmem:[#allocation11 + $0x688] sm:$0xff] }
 0x232   :  { %2457 = vmatpush1.bf16.msra.mxu1 %v6390_v42  ;;  %2498 = vmatpush1.bf16.msra.mxu0 %v6518_v43  ;;  %v1019_v42 = vld [vmem:[#allocation11 + $0x728] sm:$0xff]  ;;  %v6462_v43 = vcombine.low %v895_v29, %v899_v32  ;;  %v840_v32 = vld [vmem:[#allocation11 + $0x190] sm:$0xff] }
 0x233   :  { %2458 = vmatprep.subr.bf16.mxu1 %v6383_v44  ;;  %2499 = vmatprep.subr.bf16.mxu0 %v6511_v45  ;;  %v6590_v44 = vcombine.low %v1023_v33, %v1027_v34  ;;  %v6455_v45 = vcombine.high %v887_v39, %v891_v40  ;;  %v6583_v46 = vcombine.high %v1015_v41, %v1019_v42  ;;  %v863_v1 = vld [vmem:[#allocation11 + $0x248] sm:$0xff]  ;;  %v844_v33 = vld [vmem:[#allocation11 + $0x1b0] sm:$0xff] }
 0x234   :  { %v867_v2 = vld [vmem:[#allocation11 + $0x268] sm:$0xff]  ;;  %v968_v34 = vld [vmem:[#allocation11 + $0x590] sm:$0xff] }
 0x235   :  { %v991_v3 = vld [vmem:[#allocation11 + $0x648] sm:$0xff] }
 0x236   :  { %2459 = vmatpush1.bf16.msra.mxu1 %v6382_v51  ;;  %2500 = vmatpush1.bf16.msra.mxu0 %v6510_v53  ;;  %v1011_v51 = vld [vmem:[#allocation11 + $0x6e8] sm:$0xff]  ;;  %v6454_v53 = vcombine.low %v887_v39, %v891_v40  ;;  %v832_v40 = vld [vmem:[#allocation11 + $0x150] sm:$0xff] }
 0x237   :  { %2460 = vmatprep.subr.bf16.mxu1 %v6375_v54  ;;  %2501 = vmatprep.subr.bf16.mxu0 %v6503_v55  ;;  %v6582_v54 = vcombine.low %v1015_v41, %v1019_v42  ;;  %v6447_v55 = vcombine.high %v879_v47, %v883_v48  ;;  %v6575_v56 = vcombine.high %v1007_v49, %v1011_v51  ;;  %v855_v9 = vld [vmem:[#allocation11 + $0x208] sm:$0xff]  ;;  %v836_v41 = vld [vmem:[#allocation11 + $0x170] sm:$0xff] }
 0x238   :  { %v859_v10 = vld [vmem:[#allocation11 + $0x228] sm:$0xff]  ;;  %v960_v42 = vld [vmem:[#allocation11 + $0x550] sm:$0xff] }
 0x239   :  { %v983_v11 = vld [vmem:[#allocation11 + $0x608] sm:$0xff] }
 0x23a   :  { %2461 = vmatpush1.bf16.msra.mxu1 %v6374_v60  ;;  %2502 = vmatpush1.bf16.msra.mxu0 %v6502_v61  ;;  %v1003_v60 = vld [vmem:[#allocation11 + $0x6a8] sm:$0xff]  ;;  %v6446_v61 = vcombine.low %v879_v47, %v883_v48  ;;  %v824_v48 = vld [vmem:[#allocation11 + $0x110] sm:$0xff] }
 0x23b   :  { %2462 = vmatprep.subr.bf16.mxu1 %v6367_v62  ;;  %2503 = vmatprep.subr.bf16.mxu0 %v6495_v63  ;;  %v6574_v62 = vcombine.low %v1007_v49, %v1011_v51  ;;  %v6439_v63 = vcombine.high %v871_v57, %v875_v58  ;;  %v6567_v0 = vcombine.high %v999_v59, %v1003_v60  ;;  %v828_v49 = vld [vmem:[#allocation11 + $0x130] sm:$0xff] }
 0x23c   :  { %v952_v51 = vld [vmem:[#allocation11 + $0x510] sm:$0xff] }
 0x23e   :  { %2463 = vmatpush1.bf16.msra.mxu1 %v6366_v4  ;;  %2504 = vmatpush1.bf16.msra.mxu0 %v6494_v5  ;;  %v995_v4 = vld [vmem:[#allocation11 + $0x668] sm:$0xff]  ;;  %v6438_v5 = vcombine.low %v871_v57, %v875_v58  ;;  %v816_v58 = vld [vmem:[#allocation11 + $0xd0] sm:$0xff] }
 0x23f   :  { %2464 = vmatprep.subr.bf16.mxu1 %v6359_v6  ;;  %2505 = vmatprep.subr.bf16.mxu0 %v6487_v7  ;;  %v6566_v6 = vcombine.low %v999_v59, %v1003_v60  ;;  %v6431_v7 = vcombine.high %v863_v1, %v867_v2  ;;  %v6559_v8 = vcombine.high %v991_v3, %v995_v4  ;;  %v820_v59 = vld [vmem:[#allocation11 + $0xf0] sm:$0xff] }
 0x240   :  { %v944_v60 = vld [vmem:[#allocation11 + $0x4d0] sm:$0xff] }
 0x242   :  { %2465 = vmatpush1.bf16.msra.mxu1 %v6358_v12  ;;  %2506 = vmatpush1.bf16.msra.mxu0 %v6486_v17  ;;  %v987_v12 = vld [vmem:[#allocation11 + $0x628] sm:$0xff]  ;;  %v6430_v17 = vcombine.low %v863_v1, %v867_v2  ;;  %v808_v2 = vld [vmem:[#allocation11 + $0x90] sm:$0xff] }
 0x243   :  { %2466 = vmatprep.subr.bf16.mxu1 %v6479_v18  ;;  %2507 = vmatprep.subr.bf16.mxu0 %v6607_v19  ;;  %v6558_v18 = vcombine.low %v991_v3, %v995_v4  ;;  %v6423_v19 = vcombine.high %v855_v9, %v859_v10  ;;  %v6551_v20 = vcombine.high %v983_v11, %v987_v12  ;;  %v812_v3 = vld [vmem:[#allocation11 + $0xb0] sm:$0xff] }
 0x244   :  { %v936_v4 = vld [vmem:[#allocation11 + $0x490] sm:$0xff] }
 0x246   :  { %2467 = vmatpush2.bf16.msra.mxu1 %v6478_v24  ;;  %2508 = vmatpush2.bf16.msra.mxu0 %v6606_v25  ;;  %v980_v24 = vld [vmem:[#allocation11 + $0x5f0] sm:$0xff]  ;;  %v6422_v25 = vcombine.low %v855_v9, %v859_v10 }
 0x247   :  { %2468 = vmatprep.subr.bf16.mxu1 %v6471_v26  ;;  %2509 = vmatprep.subr.bf16.mxu0 %v6599_v27  ;;  %v6550_v26 = vcombine.low %v983_v11, %v987_v12  ;;  %v6417_v27 = vcombine.high %v848_v21, %v852_v22  ;;  %v6545_v29 = vcombine.high %v976_v23, %v980_v24  ;;  %v800_v10 = vld [vmem:[#allocation11 + $0x50] sm:$0xff] }
 0x248   :  { %v804_v11 = vld [vmem:[#allocation11 + $0x70] sm:$0xff] }
 0x249   :  { %v928_v12 = vld [vmem:[#allocation11 + $0x450] sm:$0xff] }
 0x24a   :  { %2469 = vmatpush2.bf16.msra.mxu1 %v6470_v35  ;;  %2510 = vmatpush2.bf16.msra.mxu0 %v6598_v36  ;;  %v972_v35 = vld [vmem:[#allocation11 + $0x5b0] sm:$0xff]  ;;  %v6416_v36 = vcombine.low %v848_v21, %v852_v22 }
 0x24b   :  { %2470 = vmatprep.subr.bf16.mxu1 %v6463_v37  ;;  %2511 = vmatprep.subr.bf16.mxu0 %v6591_v38  ;;  %v6544_v37 = vcombine.low %v976_v23, %v980_v24  ;;  %v6409_v38 = vcombine.high %v840_v32, %v844_v33  ;;  %v6537_v39 = vcombine.high %v968_v34, %v972_v35  ;;  %v792_v22 = vld [vmem:[#allocation11 + $0x10] sm:$0xff] }
 0x24c   :  { %v796_v23 = vld [vmem:[#allocation11 + $0x30] sm:$0xff] }
 0x24d   :  { %v920_v24 = vld [vmem:[#allocation11 + $0x410] sm:$0xff] }
 0x24e   :  { %2471 = vmatpush2.bf16.msra.mxu1 %v6462_v43  ;;  %2512 = vmatpush2.bf16.msra.mxu0 %v6590_v44  ;;  %v964_v43 = vld [vmem:[#allocation11 + $0x570] sm:$0xff]  ;;  %v6408_v44 = vcombine.low %v840_v32, %v844_v33 }
 0x24f   :  { %2472 = vmatprep.subr.bf16.mxu1 %v6455_v45  ;;  %2513 = vmatprep.subr.bf16.mxu0 %v6583_v46  ;;  %v6536_v45 = vcombine.low %v968_v34, %v972_v35  ;;  %v6401_v46 = vcombine.high %v832_v40, %v836_v41  ;;  %v6529_v47 = vcombine.high %v960_v42, %v964_v43  ;;  %v912_v33 = vld [vmem:[#allocation11 + $0x3d0] sm:$0xff] }
 0x250   :  { %v916_v34 = vld [vmem:[#allocation11 + $0x3f0] sm:$0xff] }
 0x251   :  { %v1040_v35 = vld [vmem:[#allocation11 + $0x7d0] sm:$0xff] }
 0x252   :  { %2473 = vmatpush2.bf16.msra.mxu1 %v6454_v53  ;;  %2514 = vmatpush2.bf16.msra.mxu0 %v6582_v54  ;;  %v956_v53 = vld [vmem:[#allocation11 + $0x530] sm:$0xff]  ;;  %v6400_v54 = vcombine.low %v832_v40, %v836_v41 }
 0x253   :  { %2474 = vmatprep.subr.bf16.mxu1 %v6447_v55  ;;  %2515 = vmatprep.subr.bf16.mxu0 %v6575_v56  ;;  %v6528_v55 = vcombine.low %v960_v42, %v964_v43  ;;  %v6393_v56 = vcombine.high %v824_v48, %v828_v49  ;;  %v6521_v57 = vcombine.high %v952_v51, %v956_v53  ;;  %v904_v41 = vld [vmem:[#allocation11 + $0x390] sm:$0xff] }
 0x254   :  { %v908_v42 = vld [vmem:[#allocation11 + $0x3b0] sm:$0xff] }
 0x255   :  { %v1032_v43 = vld [vmem:[#allocation11 + $0x790] sm:$0xff] }
 0x256   :  { %2475 = vmatpush2.bf16.msra.mxu1 %v6446_v61  ;;  %2516 = vmatpush2.bf16.msra.mxu0 %v6574_v62  ;;  %v948_v61 = vld [vmem:[#allocation11 + $0x4f0] sm:$0xff]  ;;  %v6392_v62 = vcombine.low %v824_v48, %v828_v49 }
 0x257   :  { %2476 = vmatprep.subr.bf16.mxu1 %v6439_v63  ;;  %2517 = vmatprep.subr.bf16.mxu0 %v6567_v0  ;;  %v6520_v63 = vcombine.low %v952_v51, %v956_v53  ;;  %v6385_v0 = vcombine.high %v816_v58, %v820_v59  ;;  %v6513_v1 = vcombine.high %v944_v60, %v948_v61  ;;  %v896_v49 = vld [vmem:[#allocation11 + $0x350] sm:$0xff] }
 0x258   :  { %v900_v51 = vld [vmem:[#allocation11 + $0x370] sm:$0xff] }
 0x259   :  { %v1024_v53 = vld [vmem:[#allocation11 + $0x750] sm:$0xff] }
 0x25a   :  { %2477 = vmatpush2.bf16.msra.mxu1 %v6438_v5  ;;  %2518 = vmatpush2.bf16.msra.mxu0 %v6566_v6  ;;  %v940_v5 = vld [vmem:[#allocation11 + $0x4b0] sm:$0xff]  ;;  %v6384_v6 = vcombine.low %v816_v58, %v820_v59 }
 0x25b   :  { %2478 = vmatprep.subr.bf16.mxu1 %v6431_v7  ;;  %2519 = vmatprep.subr.bf16.mxu0 %v6559_v8  ;;  %v6512_v7 = vcombine.low %v944_v60, %v948_v61  ;;  %v6377_v8 = vcombine.high %v808_v2, %v812_v3  ;;  %v6505_v9 = vcombine.high %v936_v4, %v940_v5  ;;  %v888_v59 = vld [vmem:[#allocation11 + $0x310] sm:$0xff] }
 0x25c   :  { %v892_v60 = vld [vmem:[#allocation11 + $0x330] sm:$0xff] }
 0x25d   :  { %v1016_v61 = vld [vmem:[#allocation11 + $0x710] sm:$0xff] }
 0x25e   :  { %2479 = vmatpush2.bf16.msra.mxu1 %v6430_v17  ;;  %2520 = vmatpush2.bf16.msra.mxu0 %v6558_v18  ;;  %v932_v17 = vld [vmem:[#allocation11 + $0x470] sm:$0xff]  ;;  %v6376_v18 = vcombine.low %v808_v2, %v812_v3 }
 0x25f   :  { %2480 = vmatprep.subr.bf16.mxu1 %v6423_v19  ;;  %2521 = vmatprep.subr.bf16.mxu0 %v6551_v20  ;;  %v6504_v19 = vcombine.low %v936_v4, %v940_v5  ;;  %v6369_v20 = vcombine.high %v800_v10, %v804_v11  ;;  %v6497_v21 = vcombine.high %v928_v12, %v932_v17  ;;  %v880_v3 = vld [vmem:[#allocation11 + $0x2d0] sm:$0xff] }
 0x260   :  { %v884_v4 = vld [vmem:[#allocation11 + $0x2f0] sm:$0xff] }
 0x261   :  { %v1008_v5 = vld [vmem:[#allocation11 + $0x6d0] sm:$0xff] }
 0x262   :  { %2481 = vmatpush2.bf16.msra.mxu1 %v6422_v25  ;;  %2522 = vmatpush2.bf16.msra.mxu0 %v6550_v26  ;;  %v924_v25 = vld [vmem:[#allocation11 + $0x430] sm:$0xff]  ;;  %v6368_v26 = vcombine.low %v800_v10, %v804_v11 }
 0x263   :  { %2532 = vmatprep.subr.bf16.mxu1 %v6417_v27  ;;  %2573 = vmatprep.subr.bf16.mxu0 %v6545_v29  ;;  %v6496_v27 = vcombine.low %v928_v12, %v932_v17  ;;  %v6361_v29 = vcombine.high %v792_v22, %v796_v23  ;;  %v6489_v32 = vcombine.high %v920_v24, %v924_v25  ;;  %v872_v11 = vld [vmem:[#allocation11 + $0x290] sm:$0xff] }
 0x264   :  { %v876_v12 = vld [vmem:[#allocation11 + $0x2b0] sm:$0xff] }
 0x265   :  { %2483 = vmatmul.mubr.bf16.vlgmr.msra.gmra.mxu1 %v8278_v15  ;;  %2524 = vmatmul.mubr.bf16.vlgmr.msra.gmra.mxu0 %v8280_v16  ;;  %v1000_v17 = vld [vmem:[#allocation11 + $0x690] sm:$0xff] }
 0x266   :  { %2533 = vmatpush1.bf16.msra.mxu1 %v6416_v36  ;;  %2564 = vmatprep.mubr.bf16.mxu1 %v8274_v13  ;;  %v1044_v36 = vld [vmem:[#allocation11 + $0x7f0] sm:$0xff] }
 0x267   :  { %2574 = vmatpush1.bf16.msra.mxu0 %v6544_v37  ;;  %2605 = vmatprep.mubr.bf16.mxu0 %v8276_v14  ;;  %v6360_v37 = vcombine.low %v792_v22, %v796_v23  ;;  %v6609_v40 = vcombine.high %v1040_v35, %v1044_v36  ;;  %v864_v23 = vld [vmem:[#allocation11 + $0x250] sm:$0xff] }
 0x268   :  { %2534 = vmatprep.subr.bf16.mxu1 %v6409_v38  ;;  %2575 = vmatprep.subr.bf16.mxu0 %v6537_v39  ;;  %v6488_v38 = vcombine.low %v920_v24, %v924_v25  ;;  %v6481_v39 = vcombine.high %v912_v33, %v916_v34  ;;  %v868_v24 = vld [vmem:[#allocation11 + $0x270] sm:$0xff] }
 0x269   :  { %v992_v25 = vld [vmem:[#allocation11 + $0x650] sm:$0xff] }
 0x26a   :  { %2535 = vmatpush1.bf16.msra.mxu1 %v6408_v44  ;;  %v1036_v44 = vld [vmem:[#allocation11 + $0x7b0] sm:$0xff] }
 0x26b   :  { %2576 = vmatpush1.bf16.msra.mxu0 %v6536_v45  ;;  %2536 = vmatprep.subr.bf16.mxu1 %v6401_v46  ;;  %v6480_v45 = vcombine.low %v912_v33, %v916_v34  ;;  %v6608_v46 = vcombine.low %v1040_v35, %v1044_v36  ;;  %v6601_v48 = vcombine.high %v1032_v43, %v1036_v44  ;;  %v856_v34 = vld [vmem:[#allocation11 + $0x210] sm:$0xff] }
 0x26c   :  { %2577 = vmatprep.subr.bf16.mxu0 %v6529_v47  ;;  %v6473_v47 = vcombine.high %v904_v41, %v908_v42  ;;  %v860_v35 = vld [vmem:[#allocation11 + $0x230] sm:$0xff] }
 0x26d   :  { %v984_v36 = vld [vmem:[#allocation11 + $0x610] sm:$0xff] }
 0x26e   :  { %2537 = vmatpush1.bf16.msra.mxu1 %v6400_v54  ;;  %v1028_v54 = vld [vmem:[#allocation11 + $0x770] sm:$0xff] }
 0x26f   :  { %2578 = vmatpush1.bf16.msra.mxu0 %v6528_v55  ;;  %2538 = vmatprep.subr.bf16.mxu1 %v6393_v56  ;;  %v6472_v55 = vcombine.low %v904_v41, %v908_v42  ;;  %v6600_v56 = vcombine.low %v1032_v43, %v1036_v44  ;;  %v6593_v58 = vcombine.high %v1024_v53, %v1028_v54  ;;  %v849_v42 = vld [vmem:[#allocation11 + $0x1d8] sm:$0xff] }
 0x270   :  { %2579 = vmatprep.subr.bf16.mxu0 %v6521_v57  ;;  %v6465_v57 = vcombine.high %v896_v49, %v900_v51  ;;  %v853_v43 = vld [vmem:[#allocation11 + $0x1f8] sm:$0xff] }
 0x271   :  { %v977_v44 = vld [vmem:[#allocation11 + $0x5d8] sm:$0xff] }
 0x272   :  { %2539 = vmatpush1.bf16.msra.mxu1 %v6392_v62  ;;  %v1020_v62 = vld [vmem:[#allocation11 + $0x730] sm:$0xff] }
 0x273   :  { %2580 = vmatpush1.bf16.msra.mxu0 %v6520_v63  ;;  %2540 = vmatprep.subr.bf16.mxu1 %v6385_v0  ;;  %v6464_v63 = vcombine.low %v896_v49, %v900_v51  ;;  %v6592_v0 = vcombine.low %v1024_v53, %v1028_v54  ;;  %v6585_v2 = vcombine.high %v1016_v61, %v1020_v62  ;;  %v841_v51 = vld [vmem:[#allocation11 + $0x198] sm:$0xff] }
 0x274   :  { %2581 = vmatprep.subr.bf16.mxu0 %v6513_v1  ;;  %v6457_v1 = vcombine.high %v888_v59, %v892_v60  ;;  %v845_v53 = vld [vmem:[#allocation11 + $0x1b8] sm:$0xff]  ;;  %v6418_v54 = vcombine.low %v849_v42, %v853_v43 }
 0x276   :  { %2541 = vmatpush1.bf16.msra.mxu1 %v6384_v6  ;;  %v1012_v6 = vld [vmem:[#allocation11 + $0x6f0] sm:$0xff] }
 0x277   :  { %2582 = vmatpush1.bf16.msra.mxu0 %v6512_v7  ;;  %2542 = vmatprep.subr.bf16.mxu1 %v6377_v8  ;;  %v6456_v7 = vcombine.low %v888_v59, %v892_v60  ;;  %v6584_v8 = vcombine.low %v1016_v61, %v1020_v62  ;;  %v6577_v10 = vcombine.high %v1008_v5, %v1012_v6  ;;  %v833_v59 = vld [vmem:[#allocation11 + $0x158] sm:$0xff] }
 0x278   :  { %2583 = vmatprep.subr.bf16.mxu0 %v6505_v9  ;;  %v6449_v9 = vcombine.high %v880_v3, %v884_v4  ;;  %v837_v60 = vld [vmem:[#allocation11 + $0x178] sm:$0xff] }
 0x279   :  { %v961_v62 = vld [vmem:[#allocation11 + $0x558] sm:$0xff] }
 0x27a   :  { %2543 = vmatpush1.bf16.msra.mxu1 %v6376_v18  ;;  %v1004_v18 = vld [vmem:[#allocation11 + $0x6b0] sm:$0xff] }
 0x27b   :  { %2584 = vmatpush1.bf16.msra.mxu0 %v6504_v19  ;;  %2544 = vmatprep.subr.bf16.mxu1 %v6369_v20  ;;  %v6448_v19 = vcombine.low %v880_v3, %v884_v4  ;;  %v6576_v20 = vcombine.low %v1008_v5, %v1012_v6  ;;  %v6569_v22 = vcombine.high %v1000_v17, %v1004_v18  ;;  %v825_v4 = vld [vmem:[#allocation11 + $0x118] sm:$0xff] }
 0x27c   :  { %2585 = vmatprep.subr.bf16.mxu0 %v6497_v21  ;;  %v6441_v21 = vcombine.high %v872_v11, %v876_v12  ;;  %v829_v5 = vld [vmem:[#allocation11 + $0x138] sm:$0xff] }
 0x27d   :  { %v953_v6 = vld [vmem:[#allocation11 + $0x518] sm:$0xff] }
 0x27e   :  { %2545 = vmatpush1.bf16.msra.mxu1 %v6368_v26  ;;  %v996_v26 = vld [vmem:[#allocation11 + $0x670] sm:$0xff] }
 0x27f   :  { %2586 = vmatpush1.bf16.msra.mxu0 %v6496_v27  ;;  %2546 = vmatprep.subr.bf16.mxu1 %v6361_v29  ;;  %v6440_v27 = vcombine.low %v872_v11, %v876_v12  ;;  %v6568_v29 = vcombine.low %v1000_v17, %v1004_v18  ;;  %v6561_v33 = vcombine.high %v992_v25, %v996_v26  ;;  %v817_v11 = vld [vmem:[#allocation11 + $0xd8] sm:$0xff] }
 0x280   :  { %2587 = vmatprep.subr.bf16.mxu0 %v6489_v32  ;;  %v6433_v32 = vcombine.high %v864_v23, %v868_v24  ;;  %v821_v12 = vld [vmem:[#allocation11 + $0xf8] sm:$0xff] }
 0x281   :  { %v945_v17 = vld [vmem:[#allocation11 + $0x4d8] sm:$0xff] }
 0x282   :  { %2547 = vmatpush1.bf16.msra.mxu1 %v6360_v37  ;;  %v988_v37 = vld [vmem:[#allocation11 + $0x630] sm:$0xff]  ;;  %v949_v18 = vld [vmem:[#allocation11 + $0x4f8] sm:$0xff] }
 0x283   :  { %2588 = vmatpush1.bf16.msra.mxu0 %v6488_v38  ;;  %2548 = vmatprep.subr.bf16.mxu1 %v6481_v39  ;;  %v6432_v38 = vcombine.low %v864_v23, %v868_v24  ;;  %v6560_v39 = vcombine.low %v992_v25, %v996_v26  ;;  %v6553_v41 = vcombine.high %v984_v36, %v988_v37  ;;  %v813_v23 = vld [vmem:[#allocation11 + $0xb8] sm:$0xff] }
 0x284   :  { %2589 = vmatprep.subr.bf16.mxu0 %v6609_v40  ;;  %v6425_v40 = vcombine.high %v856_v34, %v860_v35  ;;  %v937_v24 = vld [vmem:[#allocation11 + $0x498] sm:$0xff]  ;;  %v6386_v26 = vcombine.low %v817_v11, %v821_v12 }
 0x285   :  { %v941_v25 = vld [vmem:[#allocation11 + $0x4b8] sm:$0xff] }
 0x286   :  { %2549 = vmatpush2.bf16.msra.mxu1 %v6480_v45  ;;  %v981_v45 = vld [vmem:[#allocation11 + $0x5f8] sm:$0xff] }
 0x287   :  { %2590 = vmatpush2.bf16.msra.mxu0 %v6608_v46  ;;  %2550 = vmatprep.subr.bf16.mxu1 %v6473_v47  ;;  %v6424_v46 = vcombine.low %v856_v34, %v860_v35  ;;  %v6552_v47 = vcombine.low %v984_v36, %v988_v37  ;;  %v6547_v49 = vcombine.high %v977_v44, %v981_v45  ;;  %v805_v34 = vld [vmem:[#allocation11 + $0x78] sm:$0xff] }
 0x288   :  { %2591 = vmatprep.subr.bf16.mxu0 %v6601_v48  ;;  %v6419_v48 = vcombine.high %v849_v42, %v853_v43  ;;  %v929_v35 = vld [vmem:[#allocation11 + $0x458] sm:$0xff] }
 0x289   :  { %v933_v36 = vld [vmem:[#allocation11 + $0x478] sm:$0xff] }
 0x28a   :  { %2551 = vmatpush2.bf16.msra.mxu1 %v6472_v55  ;;  %v969_v55 = vld [vmem:[#allocation11 + $0x598] sm:$0xff] }
 0x28b   :  { %2592 = vmatpush2.bf16.msra.mxu0 %v6600_v56  ;;  %2552 = vmatprep.subr.bf16.mxu1 %v6465_v57  ;;  %v973_v56 = vld [vmem:[#allocation11 + $0x5b8] sm:$0xff]  ;;  %v6546_v57 = vcombine.low %v977_v44, %v981_v45 }
 0x28c   :  { %2593 = vmatprep.subr.bf16.mxu0 %v6593_v58  ;;  %v6411_v58 = vcombine.high %v841_v51, %v845_v53  ;;  %v6539_v61 = vcombine.high %v969_v55, %v973_v56  ;;  %v797_v42 = vld [vmem:[#allocation11 + $0x38] sm:$0xff] }
 0x28d   :  { %v921_v43 = vld [vmem:[#allocation11 + $0x418] sm:$0xff] }
 0x28e   :  { %2553 = vmatpush2.bf16.msra.mxu1 %v6464_v63  ;;  %v965_v63 = vld [vmem:[#allocation11 + $0x578] sm:$0xff] }
 0x28f   :  { %2594 = vmatpush2.bf16.msra.mxu0 %v6592_v0  ;;  %2554 = vmatprep.subr.bf16.mxu1 %v6457_v1  ;;  %v6410_v0 = vcombine.low %v841_v51, %v845_v53  ;;  %v6538_v1 = vcombine.low %v969_v55, %v973_v56  ;;  %v6531_v3 = vcombine.high %v961_v62, %v965_v63  ;;  %v925_v44 = vld [vmem:[#allocation11 + $0x438] sm:$0xff] }
 0x290   :  { %2595 = vmatprep.subr.bf16.mxu0 %v6585_v2  ;;  %v6403_v2 = vcombine.high %v833_v59, %v837_v60  ;;  %v917_v51 = vld [vmem:[#allocation11 + $0x3f8] sm:$0xff]  ;;  %v6490_v56 = vcombine.low %v921_v43, %v925_v44 }
 0x291   :  { %v1041_v53 = vld [vmem:[#allocation11 + $0x7d8] sm:$0xff] }
 0x292   :  { %2555 = vmatpush2.bf16.msra.mxu1 %v6456_v7  ;;  %v957_v7 = vld [vmem:[#allocation11 + $0x538] sm:$0xff] }
 0x293   :  { %2596 = vmatpush2.bf16.msra.mxu0 %v6584_v8  ;;  %2556 = vmatprep.subr.bf16.mxu1 %v6449_v9  ;;  %v6402_v8 = vcombine.low %v833_v59, %v837_v60  ;;  %v6530_v9 = vcombine.low %v961_v62, %v965_v63  ;;  %v905_v59 = vld [vmem:[#allocation11 + $0x398] sm:$0xff] }
 0x294   :  { %2597 = vmatprep.subr.bf16.mxu0 %v6577_v10  ;;  %v6395_v10 = vcombine.high %v825_v4, %v829_v5  ;;  %v909_v60 = vld [vmem:[#allocation11 + $0x3b8] sm:$0xff] }
 0x295   :  { %v1037_v62 = vld [vmem:[#allocation11 + $0x7b8] sm:$0xff] }
 0x296   :  { %2557 = vmatpush2.bf16.msra.mxu1 %v6448_v19  ;;  %v6522_v19 = vcombine.low %v953_v6, %v957_v7 }
 0x297   :  { %2598 = vmatpush2.bf16.msra.mxu0 %v6576_v20  ;;  %2558 = vmatprep.subr.bf16.mxu1 %v6441_v21  ;;  %v6387_v20 = vcombine.high %v817_v11, %v821_v12  ;;  %v6515_v21 = vcombine.high %v945_v17, %v949_v18  ;;  %v893_v11 = vld [vmem:[#allocation11 + $0x338] sm:$0xff] }
 0x298   :  { %2599 = vmatprep.subr.bf16.mxu0 %v6569_v22  ;;  %v809_v22 = vld [vmem:[#allocation11 + $0x98] sm:$0xff] }
 0x299   :  { %v6378_v37 = vcombine.low %v809_v22, %v813_v23  ;;  %v1017_v12 = vld [vmem:[#allocation11 + $0x718] sm:$0xff] }
 0x29a   :  { %2559 = vmatpush2.bf16.msra.mxu1 %v6440_v27  ;;  %v6514_v27 = vcombine.low %v945_v17, %v949_v18  ;;  %v1021_v17 = vld [vmem:[#allocation11 + $0x738] sm:$0xff] }
 0x29b   :  { %2600 = vmatpush2.bf16.msra.mxu0 %v6568_v29  ;;  %2560 = vmatprep.subr.bf16.mxu1 %v6433_v32  ;;  %v6379_v29 = vcombine.high %v809_v22, %v813_v23  ;;  %v6507_v32 = vcombine.high %v937_v24, %v941_v25  ;;  %v885_v22 = vld [vmem:[#allocation11 + $0x2f8] sm:$0xff] }
 0x29c   :  { %2601 = vmatprep.subr.bf16.mxu0 %v6561_v33  ;;  %v801_v33 = vld [vmem:[#allocation11 + $0x58] sm:$0xff] }
 0x29d   :  { %v6370_v45 = vcombine.low %v801_v33, %v805_v34  ;;  %v1009_v23 = vld [vmem:[#allocation11 + $0x6d8] sm:$0xff] }
 0x29e   :  { %2561 = vmatpush2.bf16.msra.mxu1 %v6432_v38  ;;  %v6506_v38 = vcombine.low %v937_v24, %v941_v25  ;;  %v1013_v24 = vld [vmem:[#allocation11 + $0x6f8] sm:$0xff] }
 0x29f   :  { %2602 = vmatpush2.bf16.msra.mxu0 %v6560_v39  ;;  %2562 = vmatprep.subr.bf16.mxu1 %v6425_v40  ;;  %v6371_v39 = vcombine.high %v801_v33, %v805_v34  ;;  %v6499_v40 = vcombine.high %v929_v35, %v933_v36  ;;  %v877_v33 = vld [vmem:[#allocation11 + $0x2b8] sm:$0xff] }
 0x2a0   :  { %2603 = vmatprep.subr.bf16.mxu0 %v6553_v41  ;;  %v793_v41 = vld [vmem:[#allocation11 + $0x18] sm:$0xff] }
 0x2a1   :  { %v6362_v55 = vcombine.low %v793_v41, %v797_v42  ;;  %v1001_v34 = vld [vmem:[#allocation11 + $0x698] sm:$0xff] }
 0x2a2   :  { %2563 = vmatpush2.bf16.msra.mxu1 %v6424_v46  ;;  %v6498_v46 = vcombine.low %v929_v35, %v933_v36  ;;  %v1005_v35 = vld [vmem:[#allocation11 + $0x6b8] sm:$0xff] }
 0x2a3   :  { %2604 = vmatpush2.bf16.msra.mxu0 %v6552_v47  ;;  %2614 = vmatprep.subr.bf16.mxu1 %v6419_v48  ;;  %v6363_v47 = vcombine.high %v793_v41, %v797_v42  ;;  %v6491_v48 = vcombine.high %v921_v43, %v925_v44  ;;  %v869_v41 = vld [vmem:[#allocation11 + $0x278] sm:$0xff] }
 0x2a4   :  { %2655 = vmatprep.subr.bf16.mxu0 %v6547_v49  ;;  %v913_v49 = vld [vmem:[#allocation11 + $0x3d8] sm:$0xff] }
 0x2a5   :  { %2565 = vmatmul.mubr.bf16.vlgmr.msra.gmra.mxu1 %v8278_v15  ;;  %v6482_v63 = vcombine.low %v913_v49, %v917_v51  ;;  %v993_v42 = vld [vmem:[#allocation11 + $0x658] sm:$0xff] }
 0x2a6   :  { %2606 = vmatmul.mubr.bf16.vlgmr.msra.gmra.mxu0 %v8280_v16  ;;  %2615 = vmatpush1.bf16.msra.mxu1 %v6418_v54  ;;  %v1045_v54 = vld [vmem:[#allocation11 + $0x7f8] sm:$0xff] }
 0x2a7   :  { %2646 = vmatprep.mubr.bf16.mxu1 %v8274_v13  ;;  %2656 = vmatpush1.bf16.msra.mxu0 %v6546_v57  ;;  %v6523_v13 = vcombine.high %v953_v6, %v957_v7  ;;  %v6483_v57 = vcombine.high %v913_v49, %v917_v51  ;;  %v1029_v6 = vld [vmem:[#allocation11 + $0x778] sm:$0xff]  ;;  %v6474_v7 = vcombine.low %v905_v59, %v909_v60 }
 0x2a8   :  { %2687 = vmatprep.mubr.bf16.mxu0 %v8276_v14  ;;  %2616 = vmatprep.subr.bf16.mxu1 %v6411_v58  ;;  %v6394_v14 = vcombine.low %v825_v4, %v829_v5  ;;  %v6611_v58 = vcombine.high %v1041_v53, %v1045_v54  ;;  %v901_v4 = vld [vmem:[#allocation11 + $0x378] sm:$0xff] }
 0x2a9   :  { %2657 = vmatprep.subr.bf16.mxu0 %v6539_v61  ;;  %v1033_v61 = vld [vmem:[#allocation11 + $0x798] sm:$0xff] }
 0x2aa   :  { %2617 = vmatpush1.bf16.msra.mxu1 %v6410_v0  ;;  %v6610_v0 = vcombine.low %v1041_v53, %v1045_v54  ;;  %v1025_v5 = vld [vmem:[#allocation11 + $0x758] sm:$0xff] }
 0x2ab   :  { %2658 = vmatpush1.bf16.msra.mxu0 %v6538_v1  ;;  %2618 = vmatprep.subr.bf16.mxu1 %v6403_v2  ;;  %v6475_v1 = vcombine.high %v905_v59, %v909_v60  ;;  %v6603_v2 = vcombine.high %v1033_v61, %v1037_v62  ;;  %v997_v43 = vld [vmem:[#allocation11 + $0x678] sm:$0xff]  ;;  %v7293_v60 = vld [vmem:[#allocation14 + $0x18c] ss:$28 sps:$4 sm:$0xff]  }
 0x2ac   :  { %2659 = vmatprep.subr.bf16.mxu0 %v6531_v3  ;;  %v897_v3 = vld [vmem:[#allocation11 + $0x358] sm:$0xff] }
 0x2ad   :  { %v6466_v18 = vcombine.low %v897_v3, %v901_v4  ;;  %v861_v49 = vld [vmem:[#allocation11 + $0x238] sm:$0xff] }
 0x2ae   :  { %2619 = vmatpush1.bf16.msra.mxu1 %v6402_v8  ;;  %v6602_v8 = vcombine.low %v1033_v61, %v1037_v62  ;;  %v985_v51 = vld [vmem:[#allocation11 + $0x618] sm:$0xff]  ;;  %v7305_v61 = vld [vmem:[#allocation14 + $0x50c] ss:$28 sps:$4 sm:$0xff]  }
 0x2af   :  { %2660 = vmatpush1.bf16.msra.mxu0 %v6530_v9  ;;  %2620 = vmatprep.subr.bf16.mxu1 %v6395_v10  ;;  %v6467_v9 = vcombine.high %v897_v3, %v901_v4  ;;  %v6595_v10 = vcombine.high %v1025_v5, %v1029_v6  ;;  %v989_v53 = vld [vmem:[#allocation11 + $0x638] sm:$0xff]  ;;  %v7291_v62 = vld [vmem:[#allocation14 + $0x188] ss:$28 sps:$4 sm:$0xff]  }
 0x2b0   :  { %2661 = vmatprep.subr.bf16.mxu0 %v6523_v13  ;;  %v889_v13 = vld [vmem:[#allocation11 + $0x318] sm:$0xff]  ;;  %v6554_v59 = vcombine.low %v985_v51, %v989_v53 }
 0x2b1   :  { %v6458_v25 = vcombine.low %v889_v13, %v893_v11  ;;  %v7311_v3 = vld [vmem:[#allocation14 + $0x4d4] ss:$28 sps:$4 sm:$0xff]  }
 0x2b2   :  { %2621 = vmatpush1.bf16.msra.mxu1 %v6394_v14  ;;  %v6594_v14 = vcombine.low %v1025_v5, %v1029_v6  ;;  %v7294_v6 = vld [vmem:[#allocation14 + $0x150] ss:$28 sps:$4 sm:$0xff]  }
 0x2b3   :  { %2662 = vmatpush1.bf16.msra.mxu0 %v6522_v19  ;;  %2622 = vmatprep.subr.bf16.mxu1 %v6387_v20  ;;  %v6459_v19 = vcombine.high %v889_v13, %v893_v11  ;;  %v6587_v20 = vcombine.high %v1017_v12, %v1021_v17  ;;  %v7317_v11 = vld [vmem:[#allocation14 + $0x49c] ss:$28 sps:$4 sm:$0xff]  }
 0x2b4   :  { %2663 = vmatprep.subr.bf16.mxu0 %v6515_v21  ;;  %v881_v21 = vld [vmem:[#allocation11 + $0x2d8] sm:$0xff] }
 0x2b5   :  { %v6450_v36 = vcombine.low %v881_v21, %v885_v22 }
 0x2b6   :  { %2623 = vmatpush1.bf16.msra.mxu1 %v6386_v26  ;;  %v6586_v26 = vcombine.low %v1017_v12, %v1021_v17 }
 0x2b7   :  { %2664 = vmatpush1.bf16.msra.mxu0 %v6514_v27  ;;  %2624 = vmatprep.subr.bf16.mxu1 %v6379_v29  ;;  %v6451_v27 = vcombine.high %v881_v21, %v885_v22  ;;  %v6579_v29 = vcombine.high %v1009_v23, %v1013_v24  ;;  %v7323_v22 = vld [vmem:[#allocation14 + $0x464] ss:$28 sps:$4 sm:$0xff]  }
 0x2b8   :  { %2665 = vmatprep.subr.bf16.mxu0 %v6507_v32  ;;  %v873_v32 = vld [vmem:[#allocation11 + $0x298] sm:$0xff] }
 0x2b9   :  { %v6442_v44 = vcombine.low %v873_v32, %v877_v33 }
 0x2ba   :  { %2625 = vmatpush1.bf16.msra.mxu1 %v6378_v37  ;;  %v6578_v37 = vcombine.low %v1009_v23, %v1013_v24  ;;  %v7300_v24 = vld [vmem:[#allocation14 + $0xe0] ss:$28 sps:$4 sm:$0xff]  }
 0x2bb   :  { %2666 = vmatpush1.bf16.msra.mxu0 %v6506_v38  ;;  %2626 = vmatprep.subr.bf16.mxu1 %v6371_v39  ;;  %v6443_v38 = vcombine.high %v873_v32, %v877_v33  ;;  %v6571_v39 = vcombine.high %v1001_v34, %v1005_v35  ;;  %v7314_v32 = vld [vmem:[#allocation14 + $0x74] ss:$28 sps:$4 sm:$0xff]   ;;  %v7327_v33 = vld [vmem:[#allocation14 + $0x428] ss:$28 sps:$4 sm:$0xff]  }
 0x2bc   :  { %2667 = vmatprep.subr.bf16.mxu0 %v6499_v40  ;;  %v865_v40 = vld [vmem:[#allocation11 + $0x258] sm:$0xff] }
 0x2bd   :  { %v6434_v54 = vcombine.low %v865_v40, %v869_v41 }
 0x2be   :  { %2627 = vmatpush1.bf16.msra.mxu1 %v6370_v45  ;;  %v6570_v45 = vcombine.low %v1001_v34, %v1005_v35  ;;  %v7335_v34 = vld [vmem:[#allocation14 + $0x3f4] ss:$28 sps:$4 sm:$0xff]  }
 0x2bf   :  { %2668 = vmatpush1.bf16.msra.mxu0 %v6498_v46  ;;  %2628 = vmatprep.subr.bf16.mxu1 %v6363_v47  ;;  %v6435_v46 = vcombine.high %v865_v40, %v869_v41  ;;  %v6563_v47 = vcombine.high %v993_v42, %v997_v43  ;;  %v7312_v35 = vld [vmem:[#allocation14 + $0x70] ss:$28 sps:$4 sm:$0xff]   ;;  %v7326_v40 = vld [vmem:[#allocation14 + $0x4] ss:$28 sps:$4 sm:$0xff]   ;;  %v7339_v41 = vld [vmem:[#allocation14 + $0x3b8] ss:$28 sps:$4 sm:$0xff]  }
 0x2c0   :  { %2669 = vmatprep.subr.bf16.mxu0 %v6491_v48  ;;  %v857_v48 = vld [vmem:[#allocation11 + $0x218] sm:$0xff] }
 0x2c2   :  { %2629 = vmatpush1.bf16.msra.mxu1 %v6362_v55  ;;  %v6562_v55 = vcombine.low %v993_v42, %v997_v43  ;;  %v7347_v42 = vld [vmem:[#allocation14 + $0x384] ss:$28 sps:$4 sm:$0xff]  }
 0x2c3   :  { %2670 = vmatpush1.bf16.msra.mxu0 %v6490_v56  ;;  %2630 = vmatprep.subr.bf16.mxu1 %v6483_v57  ;;  %v6427_v56 = vcombine.high %v857_v48, %v861_v49  ;;  %v6555_v57 = vcombine.high %v985_v51, %v989_v53  ;;  %v7324_v43 = vld [vmem:[#allocation14] ss:$28 sps:$4 sm:$0xff]   ;;  %v7359_v51 = vld [vmem:[#allocation14 + $0x694] ss:$28 sps:$4 sm:$0xff]  }
 0x2c4   :  { %2671 = vmatprep.subr.bf16.mxu0 %v6611_v58  ;;  %v6426_v58 = vcombine.low %v857_v48, %v861_v49  ;;  %v7338_v48 = vld [vmem:[#allocation14 + $0x314] ss:$28 sps:$4 sm:$0xff]   ;;  %v7351_v49 = vld [vmem:[#allocation14 + $0x6c8] ss:$28 sps:$4 sm:$0xff]  }
 0x2c5   :  { %v7336_v53 = vld [vmem:[#allocation14 + $0x310] ss:$28 sps:$4 sm:$0xff]  }
 0x2c6   :  { %2631 = vmatpush2.bf16.msra.mxu1 %v6482_v63  ;;  %v8296_v63 = vld [vmem:[#allocation13] sm:$0xff] }
 0x2c7   :  { %2672 = vmatpush2.bf16.msra.mxu0 %v6610_v0  ;;  %2632 = vmatprep.subr.bf16.mxu1 %v6475_v1  ;;  %v7296_v0 = vld [vmem:[#allocation14 + $0x154] ss:$28 sps:$4 sm:$0xff]   ;;  %v7303_v1 = vld [vmem:[#allocation14 + $0x508] ss:$28 sps:$4 sm:$0xff]  }
 0x2c8   :  { %2673 = vmatprep.subr.bf16.mxu0 %v6603_v2  ;;  %v1055_v2 = vrot.slane %v8296_v63, %v8260_v31 }
 0x2ca   :  { %2633 = vmatpush2.bf16.msra.mxu1 %v6474_v7 }
 0x2cb   :  { %2674 = vmatpush2.bf16.msra.mxu0 %v6602_v8  ;;  %2634 = vmatprep.subr.bf16.mxu1 %v6467_v9  ;;  %v7299_v9 = vld [vmem:[#allocation14 + $0x11c] ss:$28 sps:$4 sm:$0xff]  }
 0x2cc   :  { %2675 = vmatprep.subr.bf16.mxu0 %v6595_v10  ;;  %v7309_v10 = vld [vmem:[#allocation14 + $0x4d0] ss:$28 sps:$4 sm:$0xff]  }
 0x2ce   :  { %2635 = vmatpush2.bf16.msra.mxu1 %v6466_v18  ;;  %v7297_v18 = vld [vmem:[#allocation14 + $0x118] ss:$28 sps:$4 sm:$0xff]  }
 0x2cf   :  { %2676 = vmatpush2.bf16.msra.mxu0 %v6594_v14  ;;  %2636 = vmatprep.subr.bf16.mxu1 %v6459_v19 }
 0x2d0   :  { %2677 = vmatprep.subr.bf16.mxu0 %v6587_v20  ;;  %v7315_v20 = vld [vmem:[#allocation14 + $0x498] ss:$28 sps:$4 sm:$0xff]  }
 0x2d2   :  { %2637 = vmatpush2.bf16.msra.mxu1 %v6458_v25  ;;  %v7308_v25 = vld [vmem:[#allocation14 + $0xac] ss:$28 sps:$4 sm:$0xff]  }
 0x2d3   :  { %2678 = vmatpush2.bf16.msra.mxu0 %v6586_v26  ;;  %2638 = vmatprep.subr.bf16.mxu1 %v6451_v27  ;;  %v7321_v26 = vld [vmem:[#allocation14 + $0x460] ss:$28 sps:$4 sm:$0xff]   ;;  %v7329_v27 = vld [vmem:[#allocation14 + $0x42c] ss:$28 sps:$4 sm:$0xff]  }
 0x2d4   :  { %2679 = vmatprep.subr.bf16.mxu0 %v6579_v29  ;;  %v7306_v29 = vld [vmem:[#allocation14 + $0xa8] ss:$28 sps:$4 sm:$0xff]  }
 0x2d6   :  { %2639 = vmatpush2.bf16.msra.mxu1 %v6450_v36  ;;  %v7320_v36 = vld [vmem:[#allocation14 + $0x3c] ss:$28 sps:$4 sm:$0xff]  }
 0x2d7   :  { %2680 = vmatpush2.bf16.msra.mxu0 %v6578_v37  ;;  %2640 = vmatprep.subr.bf16.mxu1 %v6443_v38  ;;  %v7333_v37 = vld [vmem:[#allocation14 + $0x3f0] ss:$28 sps:$4 sm:$0xff]   ;;  %v7341_v38 = vld [vmem:[#allocation14 + $0x3bc] ss:$28 sps:$4 sm:$0xff]  }
 0x2d8   :  { %2681 = vmatprep.subr.bf16.mxu0 %v6571_v39  ;;  %v7318_v39 = vld [vmem:[#allocation14 + $0x38] ss:$28 sps:$4 sm:$0xff]  }
 0x2da   :  { %2641 = vmatpush2.bf16.msra.mxu1 %v6442_v44  ;;  %v7332_v44 = vld [vmem:[#allocation14 + $0x34c] ss:$28 sps:$4 sm:$0xff]  }
 0x2db   :  { %2682 = vmatpush2.bf16.msra.mxu0 %v6570_v45  ;;  %2642 = vmatprep.subr.bf16.mxu1 %v6435_v46  ;;  %v7345_v45 = vld [vmem:[#allocation14 + $0x380] ss:$28 sps:$4 sm:$0xff]   ;;  %v7353_v46 = vld [vmem:[#allocation14 + $0x6cc] ss:$28 sps:$4 sm:$0xff]  }
 0x2dc   :  { %2683 = vmatprep.subr.bf16.mxu0 %v6563_v47  ;;  %v7330_v47 = vld [vmem:[#allocation14 + $0x348] ss:$28 sps:$4 sm:$0xff]  }
 0x2de   :  { %2643 = vmatpush2.bf16.msra.mxu1 %v6434_v54  ;;  %v7344_v54 = vld [vmem:[#allocation14 + $0x2dc] ss:$28 sps:$4 sm:$0xff]  }
 0x2df   :  { %2684 = vmatpush2.bf16.msra.mxu0 %v6562_v55  ;;  %2644 = vmatprep.subr.bf16.mxu1 %v6427_v56  ;;  %v7357_v55 = vld [vmem:[#allocation14 + $0x690] ss:$28 sps:$4 sm:$0xff]   ;;  %v7365_v56 = vld [vmem:[#allocation14 + $0x65c] ss:$28 sps:$4 sm:$0xff]  }
 0x2e0   :  { %2685 = vmatprep.subr.bf16.mxu0 %v6555_v57  ;;  %v7342_v57 = vld [vmem:[#allocation14 + $0x2d8] ss:$28 sps:$4 sm:$0xff]  }
 0x2e2   :  { %2645 = vmatpush2.bf16.msra.mxu1 %v6426_v58  ;;  %v7350_v58 = vld [vmem:[#allocation14 + $0x2a4] ss:$28 sps:$4 sm:$0xff]  }
 0x2e3   :  { %2686 = vmatpush2.bf16.msra.mxu0 %v6554_v59  ;;  %5565 = vmatprep.subr.bf16.mxu1 %v7293_v60  ;;  %v7363_v59 = vld [vmem:[#allocation14 + $0x658] ss:$28 sps:$4 sm:$0xff]   ;;  %v7371_v60 = vld [vmem:[#allocation14 + $0x624] ss:$28 sps:$4 sm:$0xff]  }
 0x2e4   :  { %5606 = vmatprep.subr.bf16.mxu0 %v7305_v61  ;;  %v7348_v61 = vld [vmem:[#allocation14 + $0x2a0] ss:$28 sps:$4 sm:$0xff]  }
 0x2e5   :  { %2647 = vmatmul.mubr.bf16.vlgmr.msra.gmra.mxu1 %v8278_v15  ;;  %v8301_v4 = vpop.f32.mrf.mxu1  ;;  %v8303_v5 = vpop.f32.mrf.mxu0 }
 0x2e6   :  { %2688 = vmatmul.mubr.bf16.vlgmr.msra.gmra.mxu0 %v8280_v16  ;;  %5566 = vmatpush1.bf16.msra.mxu1 %v7291_v62  ;;  %v7302_v16 = vld [vmem:[#allocation14 + $0xe4] ss:$28 sps:$4 sm:$0xff]   ;;  %v7356_v62 = vld [vmem:[#allocation14 + $0x26c] ss:$28 sps:$4 sm:$0xff]  }
 0x2e7   :  { %v2404_v7 = vpop.f32.mrf.mxu1  ;;  %v2445_v8 = vpop.f32.mrf.mxu0  ;;  %5567 = vmatprep.subr.bf16.mxu1 %v7296_v0  ;;  %5607 = vmatpush1.bf16.msra.mxu0 %v7303_v1  ;;  %v7369_v0 = vld [vmem:[#allocation14 + $0x620] ss:$28 sps:$4 sm:$0xff]   ;;  %v7377_v1 = vld [vmem:[#allocation14 + $0x5ec] ss:$28 sps:$4 sm:$0xff]  }
 0x2e8   :  { %v2405_v13 = vadd.f32 %v2404_v7, %v1055_v2  ;;  %5608 = vmatprep.subr.bf16.mxu0 %v7311_v3  ;;  %v7354_v2 = vld [vmem:[#allocation14 + $0x268] ss:$28 sps:$4 sm:$0xff]   ;;  %v1051_v3 = vrot.slane %v8296_v63, %v8257_v30 }
 0x2e9   :  { %v2406_v12 = vpop.f32.mrf.mxu1  ;;  %v2447_v17 = vpop.f32.mrf.mxu0  ;;  %v7375_v7 = vld [vmem:[#allocation14 + $0x5e8] ss:$28 sps:$4 sm:$0xff]  }
 0x2ea   :  { %v2446_v15 = vadd.f32 %v2445_v8, %v2405_v13  ;;  %5568 = vmatpush1.bf16.msra.mxu1 %v7294_v6  ;;  %v7362_v6 = vld [vmem:[#allocation14 + $0x234] ss:$28 sps:$4 sm:$0xff]   ;;  %v7368_v13 = vld [vmem:[#allocation14 + $0x1fc] ss:$28 sps:$4 sm:$0xff]  }
 0x2eb   :  { %v2407_v14 = vpop.f32.mrf.mxu1  ;;  %v2448_v19 = vpop.f32.mrf.mxu0  ;;  %5569 = vmatprep.subr.bf16.mxu1 %v7299_v9  ;;  %5609 = vmatpush1.bf16.msra.mxu0 %v7309_v10  ;;  %v7380_v8 = vld [vmem:[#allocation14 + $0x5b4] ss:$28 sps:$4 sm:$0xff]   ;;  %v2403_v10 = vadd.f32 %v8301_v4, %v1051_v3  ;;  %v7383_v12 = vld [vmem:[#allocation14 + $0x57c] ss:$28 sps:$4 sm:$0xff]  }
 0x2ec   :  { %v2697_v21 = vmax.f32 %v2446_v15, 0.0  ;;  %5610 = vmatprep.subr.bf16.mxu0 %v7317_v11  ;;  %v7360_v9 = vld [vmem:[#allocation14 + $0x230] ss:$28 sps:$4 sm:$0xff]   ;;  %v7366_v17 = vld [vmem:[#allocation14 + $0x1f8] ss:$28 sps:$4 sm:$0xff]  }
 0x2ed   :  { %v7378_v11 = vld [vmem:[#allocation14 + $0x5b0] ss:$28 sps:$4 sm:$0xff]   ;;  %v2444_v15 = vadd.f32 %v8303_v5, %v2403_v10  ;;  %v7381_v14 = vld [vmem:[#allocation14 + $0x578] ss:$28 sps:$4 sm:$0xff]   ;;  %v7386_v19 = vld [vmem:[#allocation14 + $0x544] ss:$28 sps:$4 sm:$0xff]  }
 0x2ee   :  { %v8306_v23 = vpack.c.bf16 %v2697_v21, %v2697_v21  ;;  %5570 = vmatpush1.bf16.msra.mxu1 %v7297_v18  ;;  %v7374_v18 = vld [vmem:[#allocation14 + $0x1c4] ss:$28 sps:$4 sm:$0xff]   ;;  %v7389_v21 = vld [vmem:[#allocation14 + $0x88c] ss:$28 sps:$4 sm:$0xff]  }
 0x2ef   :  { %5571 = vmatprep.subr.bf16.mxu1 %v7302_v16  ;;  %5611 = vmatpush1.bf16.msra.mxu0 %v7315_v20  ;;  %v7372_v16 = vld [vmem:[#allocation14 + $0x1c0] ss:$28 sps:$4 sm:$0xff]   ;;  %v2696_v20 = vmax.f32 %v2444_v15, 0.0  ;;  %v7387_v5 = vld [vmem:[#allocation14 + $0x888] ss:$28 sps:$4 sm:$0xff]  }
 0x2f0   :  { %5597 = vmatprep.mubr.bf16.mxu1 %v8306_v23  ;;  %5612 = vmatprep.subr.bf16.mxu0 %v7323_v22  ;;  %v7384_v4 = vld [vmem:[#allocation14 + $0x540] ss:$28 sps:$4 sm:$0xff]   ;;  %v7437_v22 = vld [vmem:[#allocation14 + $0xc0c] ss:$28 sps:$4 sm:$0xff]  }
 0x2f1   :  { %v7453_v3 = vld [vmem:[#allocation14 + $0xb60] ss:$28 sps:$4 sm:$0xff]   ;;  %v7413_v10 = vld [vmem:[#allocation14 + $0xa4c] ss:$28 sps:$4 sm:$0xff]  }
 0x2f2   :  { %5572 = vmatpush1.bf16.msra.mxu1 %v7300_v24  ;;  %v1059_v24 = vrot.slane %v8296_v63, %v8265_v50  ;;  %v7473_v15 = vld [vmem:[#allocation14 + $0xabc] ss:$28 sps:$4 sm:$0xff]  }
 0x2f3   :  { %5573 = vmatprep.subr.bf16.mxu1 %v7308_v25  ;;  %5613 = vmatpush1.bf16.msra.mxu0 %v7321_v26  ;;  %v8315_v25 = vpack.c.bf16 %v2696_v20, %v2696_v20  ;;  %v7392_v26 = vld [vmem:[#allocation14 + $0x854] ss:$28 sps:$4 sm:$0xff]  }
 0x2f4   :  { %5614 = vmatprep.subr.bf16.mxu0 %v7329_v27  ;;  %v1063_v27 = vrot.slane %v8296_v63, %v8268_v52  ;;  %v7417_v20 = vld [vmem:[#allocation14 + $0x9d8] ss:$28 sps:$4 sm:$0xff]  }
 0x2f6   :  { %5574 = vmatpush1.bf16.msra.mxu1 %v7306_v29 }
 0x2f7   :  { %5575 = vmatprep.subr.bf16.mxu1 %v7314_v32  ;;  %5615 = vmatpush1.bf16.msra.mxu0 %v7327_v33 }
 0x2f8   :  { %5616 = vmatprep.subr.bf16.mxu0 %v7335_v34  ;;  %v7390_v34 = vld [vmem:[#allocation14 + $0x850] ss:$28 sps:$4 sm:$0xff]  }
 0x2fa   :  { %5576 = vmatpush1.bf16.msra.mxu1 %v7312_v35 }
 0x2fb   :  { %5577 = vmatprep.subr.bf16.mxu1 %v7320_v36  ;;  %5617 = vmatpush1.bf16.msra.mxu0 %v7333_v37  ;;  %v7395_v37 = vld [vmem:[#allocation14 + $0x81c] ss:$28 sps:$4 sm:$0xff]  }
 0x2fc   :  { %5618 = vmatprep.subr.bf16.mxu0 %v7341_v38 }
 0x2fe   :  { %5578 = vmatpush1.bf16.msra.mxu1 %v7318_v39 }
 0x2ff   :  { %5579 = vmatprep.subr.bf16.mxu1 %v7326_v40  ;;  %5619 = vmatpush1.bf16.msra.mxu0 %v7339_v41 }
 0x300   :  { %5620 = vmatprep.subr.bf16.mxu0 %v7347_v42 }
 0x302   :  { %5580 = vmatpush1.bf16.msra.mxu1 %v7324_v43  ;;  %v7393_v43 = vld [vmem:[#allocation14 + $0x818] ss:$28 sps:$4 sm:$0xff]  }
 0x303   :  { %5581 = vmatprep.subr.bf16.mxu1 %v7332_v44  ;;  %5621 = vmatpush1.bf16.msra.mxu0 %v7345_v45 }
 0x304   :  { %5622 = vmatprep.subr.bf16.mxu0 %v7353_v46 }
 0x306   :  { %5582 = vmatpush2.bf16.msra.mxu1 %v7330_v47  ;;  %v7398_v47 = vld [vmem:[#allocation14 + $0x7e4] ss:$28 sps:$4 sm:$0xff]  }
 0x307   :  { %5583 = vmatprep.subr.bf16.mxu1 %v7338_v48  ;;  %5623 = vmatpush2.bf16.msra.mxu0 %v7351_v49 }
 0x308   :  { %5624 = vmatprep.subr.bf16.mxu0 %v7359_v51  ;;  %v7396_v51 = vld [vmem:[#allocation14 + $0x7e0] ss:$28 sps:$4 sm:$0xff]  }
 0x30a   :  { %5584 = vmatpush2.bf16.msra.mxu1 %v7336_v53  ;;  %v7435_v53 = vld [vmem:[#allocation14 + $0xc08] ss:$28 sps:$4 sm:$0xff]  }
 0x30b   :  { %5585 = vmatprep.subr.bf16.mxu1 %v7344_v54  ;;  %5625 = vmatpush2.bf16.msra.mxu0 %v7357_v55  ;;  %v7401_v55 = vld [vmem:[#allocation14 + $0x7ac] ss:$28 sps:$4 sm:$0xff]  }
 0x30c   :  { %5626 = vmatprep.subr.bf16.mxu0 %v7365_v56  ;;  %v7443_v56 = vld [vmem:[#allocation14 + $0xbd4] ss:$28 sps:$4 sm:$0xff]  }
 0x30e   :  { %5586 = vmatpush2.bf16.msra.mxu1 %v7342_v57  ;;  %v7399_v57 = vld [vmem:[#allocation14 + $0x7a8] ss:$28 sps:$4 sm:$0xff]  }
 0x30f   :  { %5587 = vmatprep.subr.bf16.mxu1 %v7350_v58  ;;  %5627 = vmatpush2.bf16.msra.mxu0 %v7363_v59  ;;  %v7441_v58 = vld [vmem:[#allocation14 + $0xbd0] ss:$28 sps:$4 sm:$0xff]  }
 0x310   :  { %5628 = vmatprep.subr.bf16.mxu0 %v7371_v60  ;;  %v7404_v59 = vld [vmem:[#allocation14 + $0x774] ss:$28 sps:$4 sm:$0xff]   ;;  %v7449_v60 = vld [vmem:[#allocation14 + $0xb9c] ss:$28 sps:$4 sm:$0xff]  }
 0x312   :  { %5588 = vmatpush2.bf16.msra.mxu1 %v7348_v61  ;;  %v7402_v61 = vld [vmem:[#allocation14 + $0x770] ss:$28 sps:$4 sm:$0xff]  }
 0x313   :  { %5589 = vmatprep.subr.bf16.mxu1 %v7356_v62  ;;  %5629 = vmatpush2.bf16.msra.mxu0 %v7369_v0  ;;  %v7447_v62 = vld [vmem:[#allocation14 + $0xb98] ss:$28 sps:$4 sm:$0xff]  }
 0x314   :  { %5630 = vmatprep.subr.bf16.mxu0 %v7377_v1  ;;  %v7407_v0 = vld [vmem:[#allocation14 + $0x73c] ss:$28 sps:$4 sm:$0xff]   ;;  %v7455_v1 = vld [vmem:[#allocation14 + $0xb64] ss:$28 sps:$4 sm:$0xff]  }
 0x316   :  { %5590 = vmatpush2.bf16.msra.mxu1 %v7354_v2  ;;  %v7405_v2 = vld [vmem:[#allocation14 + $0x738] ss:$28 sps:$4 sm:$0xff]  }
 0x317   :  { %5591 = vmatprep.subr.bf16.mxu1 %v7362_v6  ;;  %5631 = vmatpush2.bf16.msra.mxu0 %v7375_v7  ;;  %v7410_v6 = vld [vmem:[#allocation14 + $0x704] ss:$28 sps:$4 sm:$0xff]   ;;  %v7461_v7 = vld [vmem:[#allocation14 + $0xb2c] ss:$28 sps:$4 sm:$0xff]  }
 0x318   :  { %5632 = vmatprep.subr.bf16.mxu0 %v7380_v8  ;;  %v7408_v8 = vld [vmem:[#allocation14 + $0x700] ss:$28 sps:$4 sm:$0xff]  }
 0x31a   :  { %5592 = vmatpush2.bf16.msra.mxu1 %v7360_v9  ;;  %v7459_v9 = vld [vmem:[#allocation14 + $0xb28] ss:$28 sps:$4 sm:$0xff]  }
 0x31b   :  { %5593 = vmatprep.subr.bf16.mxu1 %v7368_v13  ;;  %5633 = vmatpush2.bf16.msra.mxu0 %v7378_v11  ;;  %v7467_v13 = vld [vmem:[#allocation14 + $0xaf4] ss:$28 sps:$4 sm:$0xff]   ;;  %v7411_v11 = vld [vmem:[#allocation14 + $0xa48] ss:$28 sps:$4 sm:$0xff]  }
 0x31c   :  { %5634 = vmatprep.subr.bf16.mxu0 %v7383_v12  ;;  %v7465_v12 = vld [vmem:[#allocation14 + $0xaf0] ss:$28 sps:$4 sm:$0xff]  }
 0x31e   :  { %5594 = vmatpush2.bf16.msra.mxu1 %v7366_v17  ;;  %v7416_v17 = vld [vmem:[#allocation14 + $0xa14] ss:$28 sps:$4 sm:$0xff]  }
 0x31f   :  { %5595 = vmatprep.subr.bf16.mxu1 %v7374_v18  ;;  %5635 = vmatpush2.bf16.msra.mxu0 %v7381_v14  ;;  %v7414_v18 = vld [vmem:[#allocation14 + $0xa10] ss:$28 sps:$4 sm:$0xff]   ;;  %v7471_v14 = vld [vmem:[#allocation14 + $0xab8] ss:$28 sps:$4 sm:$0xff]  }
 0x320   :  { %5636 = vmatprep.subr.bf16.mxu0 %v7386_v19  ;;  %v7419_v19 = vld [vmem:[#allocation14 + $0x9dc] ss:$28 sps:$4 sm:$0xff]  }
 0x322   :  { %5596 = vmatpush2.bf16.msra.mxu1 %v7372_v16  ;;  %v7479_v16 = vld [vmem:[#allocation14 + $0xa84] ss:$28 sps:$4 sm:$0xff]  }
 0x323   :  { %5637 = vmatpush2.bf16.msra.mxu0 %v7384_v4  ;;  %5647 = vmatprep.subr.bf16.mxu1 %v7389_v21  ;;  %v7477_v4 = vld [vmem:[#allocation14 + $0xa80] ss:$28 sps:$4 sm:$0xff]  }
 0x324   :  { %5688 = vmatprep.subr.bf16.mxu0 %v7437_v22  ;;  %v7422_v21 = vld [vmem:[#allocation14 + $0x9a4] ss:$28 sps:$4 sm:$0xff]   ;;  %v7485_v22 = vld [vmem:[#allocation14 + $0xdcc] ss:$28 sps:$4 sm:$0xff]  }
 0x325   :  { %v2484_v29 = vpop.f32.mrf.mxu1  ;;  %v2525_v32 = vpop.f32.mrf.mxu0  ;;  %5598 = vmatmul.mubr.bf16.vlgmr.msra.gmra.mxu1 %v8315_v25 }
 0x326   :  { %v2485_v33 = vadd.f32 %v2484_v29, %v1059_v24  ;;  %5648 = vmatpush1.bf16.msra.mxu1 %v7387_v5  ;;  %v7420_v24 = vld [vmem:[#allocation14 + $0x9a0] ss:$28 sps:$4 sm:$0xff]   ;;  %v7483_v5 = vld [vmem:[#allocation14 + $0xdc8] ss:$28 sps:$4 sm:$0xff]  }
 0x327   :  { %v2486_v35 = vpop.f32.mrf.mxu1  ;;  %v2527_v36 = vpop.f32.mrf.mxu0  ;;  %5649 = vmatprep.subr.bf16.mxu1 %v7392_v26  ;;  %v7425_v26 = vld [vmem:[#allocation14 + $0x96c] ss:$28 sps:$4 sm:$0xff]  }
 0x328   :  { %v2526_v38 = vadd.f32 %v2525_v32, %v2485_v33  ;;  %v2487_v39 = vadd.f32 %v2486_v35, %v1063_v27  ;;  %v7491_v27 = vld [vmem:[#allocation14 + $0xd94] ss:$28 sps:$4 sm:$0xff]   ;;  %v7423_v29 = vld [vmem:[#allocation14 + $0x968] ss:$28 sps:$4 sm:$0xff]  }
 0x329   :  { %v2488_v40 = vpop.f32.mrf.mxu1  ;;  %v2529_v41 = vpop.f32.mrf.mxu0  ;;  %v7489_v32 = vld [vmem:[#allocation14 + $0xd90] ss:$28 sps:$4 sm:$0xff]  }
 0x32a   :  { %v2528_v42 = vadd.f32 %v2527_v36, %v2487_v39  ;;  %5650 = vmatpush1.bf16.msra.mxu1 %v7390_v34  ;;  %v2698_v44 = vmax.f32 %v2526_v38, 0.0  ;;  %v7428_v33 = vld [vmem:[#allocation14 + $0x934] ss:$28 sps:$4 sm:$0xff]   ;;  %v7497_v34 = vld [vmem:[#allocation14 + $0xd5c] ss:$28 sps:$4 sm:$0xff]  }
 0x32b   :  { %v2489_v45 = vpop.f32.mrf.mxu1  ;;  %v2530_v46 = vpop.f32.mrf.mxu0  ;;  %5651 = vmatprep.subr.bf16.mxu1 %v7395_v37  ;;  %v7426_v35 = vld [vmem:[#allocation14 + $0x930] ss:$28 sps:$4 sm:$0xff]   ;;  %v7495_v36 = vld [vmem:[#allocation14 + $0xd58] ss:$28 sps:$4 sm:$0xff]   ;;  %v7503_v38 = vld [vmem:[#allocation14 + $0xd24] ss:$28 sps:$4 sm:$0xff]  }
 0x32c   :  { %v2699_v48 = vmax.f32 %v2528_v42, 0.0  ;;  %v8322_v54 = vpack.c.bf16 %v2698_v44, %v2698_v44  ;;  %v7431_v37 = vld [vmem:[#allocation14 + $0x8fc] ss:$28 sps:$4 sm:$0xff]   ;;  %v7434_v41 = vld [vmem:[#allocation14 + $0x8c4] ss:$28 sps:$4 sm:$0xff]  }
 0x32d   :  { %v7429_v39 = vld [vmem:[#allocation14 + $0x8f8] ss:$28 sps:$4 sm:$0xff]   ;;  %v7501_v40 = vld [vmem:[#allocation14 + $0xd20] ss:$28 sps:$4 sm:$0xff]   ;;  %v7509_v42 = vld [vmem:[#allocation14 + $0xcec] ss:$28 sps:$4 sm:$0xff]  }
 0x32e   :  { %v8320_v49 = vpack.c.bf16 %v2699_v48, %v2699_v48  ;;  %5652 = vmatpush1.bf16.msra.mxu1 %v7393_v43  ;;  %v1066_v43 = vsub.s32 4, %v8254_v28  ;;  %v7432_v44 = vld [vmem:[#allocation14 + $0x8c0] ss:$28 sps:$4 sm:$0xff]   ;;  %v7507_v45 = vld [vmem:[#allocation14 + $0xce8] ss:$28 sps:$4 sm:$0xff]   ;;  %v1070_v48 = vsub.s32 5, %v8254_v28 }
 0x32f   :  { %5653 = vmatprep.subr.bf16.mxu1 %v7398_v47  ;;  %v7440_v46 = vld [vmem:[#allocation14 + $0x194] ss:$28 sps:$4 sm:$0xff]  }
 0x330   :  { %5638 = vmatprep.mubr.bf16.mxu0 %v8320_v49  ;;  %v7515_v47 = vld [vmem:[#allocation14 + $0xcb4] ss:$28 sps:$4 sm:$0xff]  }
 0x331   :  { %5639 = vmatmul.mubr.bf16.vlgmr.msra.gmra.mxu0 %v8322_v54 }
 0x332   :  { %5654 = vmatpush1.bf16.msra.mxu1 %v7396_v51  ;;  %5689 = vmatpush1.bf16.msra.mxu0 %v7435_v53  ;;  %v1067_v51 = vrot.slane %v8296_v63, %v1066_v43  ;;  %v7513_v53 = vld [vmem:[#allocation14 + $0xcb0] ss:$28 sps:$4 sm:$0xff]  }
 0x333   :  { %5655 = vmatprep.subr.bf16.mxu1 %v7401_v55  ;;  %5690 = vmatprep.subr.bf16.mxu0 %v7443_v56  ;;  %v7521_v55 = vld [vmem:[#allocation14 + $0xc7c] ss:$28 sps:$4 sm:$0xff]   ;;  %v1071_v56 = vrot.slane %v8296_v63, %v1070_v48 }
 0x336   :  { %5656 = vmatpush1.bf16.msra.mxu1 %v7399_v57  ;;  %5691 = vmatpush1.bf16.msra.mxu0 %v7441_v58 }
 0x337   :  { %5657 = vmatprep.subr.bf16.mxu1 %v7404_v59  ;;  %5692 = vmatprep.subr.bf16.mxu0 %v7449_v60  ;;  %v7519_v60 = vld [vmem:[#allocation14 + $0xc78] ss:$28 sps:$4 sm:$0xff]  }
 0x33a   :  { %5658 = vmatpush1.bf16.msra.mxu1 %v7402_v61  ;;  %5693 = vmatpush1.bf16.msra.mxu0 %v7447_v62  ;;  %v7527_v62 = vld [vmem:[#allocation14 + $0xc44] ss:$28 sps:$4 sm:$0xff]  }
 0x33b   :  { %5659 = vmatprep.subr.bf16.mxu1 %v7407_v0  ;;  %5694 = vmatprep.subr.bf16.mxu0 %v7455_v1 }
 0x33e   :  { %5660 = vmatpush1.bf16.msra.mxu1 %v7405_v2  ;;  %5695 = vmatpush1.bf16.msra.mxu0 %v7453_v3 }
 0x33f   :  { %5661 = vmatprep.subr.bf16.mxu1 %v7410_v6  ;;  %5696 = vmatprep.subr.bf16.mxu0 %v7461_v7 }
 0x342   :  { %5662 = vmatpush1.bf16.msra.mxu1 %v7408_v8  ;;  %5697 = vmatpush1.bf16.msra.mxu0 %v7459_v9  ;;  %v7525_v8 = vld [vmem:[#allocation14 + $0xc40] ss:$28 sps:$4 sm:$0xff]  }
 0x343   :  { %5663 = vmatprep.subr.bf16.mxu1 %v7413_v10  ;;  %5698 = vmatprep.subr.bf16.mxu0 %v7467_v13  ;;  %v7533_v13 = vld [vmem:[#allocation14 + $0x514] ss:$28 sps:$4 sm:$0xff]  }
 0x346   :  { %5664 = vmatpush2.bf16.msra.mxu1 %v7411_v11  ;;  %5699 = vmatpush1.bf16.msra.mxu0 %v7465_v12 }
 0x347   :  { %5665 = vmatprep.subr.bf16.mxu1 %v7416_v17  ;;  %5700 = vmatprep.subr.bf16.mxu0 %v7473_v15  ;;  %v7438_v15 = vld [vmem:[#allocation14 + $0x190] ss:$28 sps:$4 sm:$0xff]  }
 0x34a   :  { %5666 = vmatpush2.bf16.msra.mxu1 %v7414_v18  ;;  %5701 = vmatpush1.bf16.msra.mxu0 %v7471_v14  ;;  %v7446_v14 = vld [vmem:[#allocation14 + $0x15c] ss:$28 sps:$4 sm:$0xff]  }
 0x34b   :  { %5667 = vmatprep.subr.bf16.mxu1 %v7419_v19  ;;  %5702 = vmatprep.subr.bf16.mxu0 %v7479_v16  ;;  %v7444_v19 = vld [vmem:[#allocation14 + $0x158] ss:$28 sps:$4 sm:$0xff]   ;;  %v7452_v16 = vld [vmem:[#allocation14 + $0x124] ss:$28 sps:$4 sm:$0xff]  }
 0x34e   :  { %5668 = vmatpush2.bf16.msra.mxu1 %v7417_v20  ;;  %5703 = vmatpush1.bf16.msra.mxu0 %v7477_v4  ;;  %v7450_v20 = vld [vmem:[#allocation14 + $0x120] ss:$28 sps:$4 sm:$0xff]   ;;  %v7458_v4 = vld [vmem:[#allocation14 + $0xec] ss:$28 sps:$4 sm:$0xff]  }
 0x34f   :  { %5669 = vmatprep.subr.bf16.mxu1 %v7422_v21  ;;  %5704 = vmatprep.subr.bf16.mxu0 %v7485_v22  ;;  %v7456_v21 = vld [vmem:[#allocation14 + $0xe8] ss:$28 sps:$4 sm:$0xff]   ;;  %v7464_v22 = vld [vmem:[#allocation14 + $0xb4] ss:$28 sps:$4 sm:$0xff]  }
 0x352   :  { %5670 = vmatpush2.bf16.msra.mxu1 %v7420_v24  ;;  %5705 = vmatpush2.bf16.msra.mxu0 %v7483_v5  ;;  %v7462_v24 = vld [vmem:[#allocation14 + $0xb0] ss:$28 sps:$4 sm:$0xff]   ;;  %v7470_v5 = vld [vmem:[#allocation14 + $0x7c] ss:$28 sps:$4 sm:$0xff]  }
 0x353   :  { %5671 = vmatprep.subr.bf16.mxu1 %v7425_v26  ;;  %5706 = vmatprep.subr.bf16.mxu0 %v7491_v27  ;;  %v7468_v26 = vld [vmem:[#allocation14 + $0x78] ss:$28 sps:$4 sm:$0xff]   ;;  %v7476_v27 = vld [vmem:[#allocation14 + $0x44] ss:$28 sps:$4 sm:$0xff]  }
 0x356   :  { %5672 = vmatpush2.bf16.msra.mxu1 %v7423_v29  ;;  %5707 = vmatpush2.bf16.msra.mxu0 %v7489_v32  ;;  %v7474_v29 = vld [vmem:[#allocation14 + $0x40] ss:$28 sps:$4 sm:$0xff]   ;;  %v7482_v32 = vld [vmem:[#allocation14 + $0xc] ss:$28 sps:$4 sm:$0xff]  }
 0x357   :  { %5673 = vmatprep.subr.bf16.mxu1 %v7428_v33  ;;  %5708 = vmatprep.subr.bf16.mxu0 %v7497_v34  ;;  %v7480_v33 = vld [vmem:[#allocation14 + $0x8] ss:$28 sps:$4 sm:$0xff]   ;;  %v7488_v34 = vld [vmem:[#allocation14 + $0x354] ss:$28 sps:$4 sm:$0xff]  }
 0x35a   :  { %5674 = vmatpush2.bf16.msra.mxu1 %v7426_v35  ;;  %5709 = vmatpush2.bf16.msra.mxu0 %v7495_v36  ;;  %v7486_v35 = vld [vmem:[#allocation14 + $0x350] ss:$28 sps:$4 sm:$0xff]   ;;  %v7494_v36 = vld [vmem:[#allocation14 + $0x31c] ss:$28 sps:$4 sm:$0xff]  }
 0x35b   :  { %5675 = vmatprep.subr.bf16.mxu1 %v7431_v37  ;;  %5710 = vmatprep.subr.bf16.mxu0 %v7503_v38  ;;  %v7492_v37 = vld [vmem:[#allocation14 + $0x318] ss:$28 sps:$4 sm:$0xff]   ;;  %v7500_v38 = vld [vmem:[#allocation14 + $0x2e4] ss:$28 sps:$4 sm:$0xff]  }
 0x35e   :  { %5676 = vmatpush2.bf16.msra.mxu1 %v7429_v39  ;;  %5711 = vmatpush2.bf16.msra.mxu0 %v7501_v40  ;;  %v7498_v39 = vld [vmem:[#allocation14 + $0x2e0] ss:$28 sps:$4 sm:$0xff]   ;;  %v7506_v40 = vld [vmem:[#allocation14 + $0x2ac] ss:$28 sps:$4 sm:$0xff]  }
 0x35f   :  { %5677 = vmatprep.subr.bf16.mxu1 %v7434_v41  ;;  %5712 = vmatprep.subr.bf16.mxu0 %v7509_v42  ;;  %v7504_v41 = vld [vmem:[#allocation14 + $0x2a8] ss:$28 sps:$4 sm:$0xff]   ;;  %v7512_v42 = vld [vmem:[#allocation14 + $0x274] ss:$28 sps:$4 sm:$0xff]  }
 0x362   :  { %5678 = vmatpush2.bf16.msra.mxu1 %v7432_v44  ;;  %5713 = vmatpush2.bf16.msra.mxu0 %v7507_v45  ;;  %v7510_v44 = vld [vmem:[#allocation14 + $0x270] ss:$28 sps:$4 sm:$0xff]   ;;  %v1074_v45 = vsub.s32 6, %v8254_v28 }
 0x363   :  { %5729 = vmatprep.subr.bf16.mxu1 %v7440_v46  ;;  %5714 = vmatprep.subr.bf16.mxu0 %v7515_v47  ;;  %v7518_v46 = vld [vmem:[#allocation14 + $0x23c] ss:$28 sps:$4 sm:$0xff]   ;;  %v1078_v47 = vsub.s32 7, %v8254_v28 }
 0x365   :  { %v2566_v57 = vpop.f32.mrf.mxu1 }
 0x366   :  { %v2567_v58 = vadd.f32 %v2566_v57, %v1067_v51  ;;  %v2607_v59 = vpop.f32.mrf.mxu0  ;;  %5715 = vmatpush2.bf16.msra.mxu0 %v7513_v53  ;;  %v7516_v51 = vld [vmem:[#allocation14 + $0x238] ss:$28 sps:$4 sm:$0xff]   ;;  %v1075_v53 = vrot.slane %v8296_v63, %v1074_v45 }
 0x367   :  { %v2568_v61 = vpop.f32.mrf.mxu1  ;;  %5716 = vmatprep.subr.bf16.mxu0 %v7521_v55  ;;  %v7524_v55 = vld [vmem:[#allocation14 + $0x204] ss:$28 sps:$4 sm:$0xff]  }
 0x368   :  { %v2608_v0 = vadd.f32 %v2607_v59, %v2567_v58  ;;  %v2569_v1 = vadd.f32 %v2568_v61, %v1071_v56  ;;  %v2609_v2 = vpop.f32.mrf.mxu0  ;;  %v1079_v56 = vrot.slane %v8296_v63, %v1078_v47  ;;  %v7536_v63 = vld [vmem:[#allocation14 + $0x894] ss:$28 sps:$4 sm:$0xff]   ;;  %v7570_v47 = vld [vmem:[#allocation14 + $0x740] ss:$28 sps:$4 sm:$0xff]  }
 0x369   :  { %v2570_v3 = vpop.f32.mrf.mxu1 }
 0x36a   :  { %v2610_v6 = vadd.f32 %v2609_v2, %v2569_v1  ;;  %v2611_v7 = vpop.f32.mrf.mxu0  ;;  %5717 = vmatpush2.bf16.msra.mxu0 %v7519_v60  ;;  %v2700_v9 = vmax.f32 %v2608_v0, 0.0  ;;  %v7522_v60 = vld [vmem:[#allocation14 + $0x200] ss:$28 sps:$4 sm:$0xff]  }
 0x36b   :  { %v2571_v10 = vpop.f32.mrf.mxu1  ;;  %5718 = vmatprep.subr.bf16.mxu0 %v7527_v62  ;;  %v7530_v62 = vld [vmem:[#allocation14 + $0x1cc] ss:$28 sps:$4 sm:$0xff]  }
 0x36c   :  { %v2701_v11 = vmax.f32 %v2610_v6, 0.0  ;;  %v2612_v12 = vpop.f32.mrf.mxu0  ;;  %v8336_v18 = vpack.c.bf16 %v2700_v9, %v2700_v9 }
 0x36e   :  { %v8334_v17 = vpack.c.bf16 %v2701_v11, %v2701_v11  ;;  %5719 = vmatpush2.bf16.msra.mxu0 %v7525_v8  ;;  %v7528_v8 = vld [vmem:[#allocation14 + $0x1c8] ss:$28 sps:$4 sm:$0xff]  }
 0x36f   :  { %5770 = vmatprep.subr.bf16.mxu0 %v7533_v13 }
 0x370   :  { %5679 = vmatprep.mubr.bf16.mxu1 %v8334_v17 }
 0x371   :  { %5680 = vmatmul.mubr.bf16.vlgmr.msra.gmra.mxu1 %v8336_v18 }
 0x372   :  { %5730 = vmatpush1.bf16.msra.mxu1 %v7438_v15  ;;  %5761 = vmatprep.mubr.bf16.mxu1 %v8306_v23  ;;  %v7531_v15 = vld [vmem:[#allocation14 + $0x510] ss:$28 sps:$4 sm:$0xff]  }
 0x373   :  { %5731 = vmatprep.subr.bf16.mxu1 %v7446_v14  ;;  %v7534_v14 = vld [vmem:[#allocation14 + $0x890] ss:$28 sps:$4 sm:$0xff]  }
 0x376   :  { %5732 = vmatpush1.bf16.msra.mxu1 %v7444_v19 }
 0x377   :  { %5733 = vmatprep.subr.bf16.mxu1 %v7452_v16  ;;  %v7539_v16 = vld [vmem:[#allocation14 + $0x4dc] ss:$28 sps:$4 sm:$0xff]  }
 0x37a   :  { %5734 = vmatpush1.bf16.msra.mxu1 %v7450_v20  ;;  %v7542_v20 = vld [vmem:[#allocation14 + $0x85c] ss:$28 sps:$4 sm:$0xff]  }
 0x37b   :  { %5735 = vmatprep.subr.bf16.mxu1 %v7458_v4  ;;  %v7537_v4 = vld [vmem:[#allocation14 + $0x4d8] ss:$28 sps:$4 sm:$0xff]  }
 0x37e   :  { %5736 = vmatpush1.bf16.msra.mxu1 %v7456_v21  ;;  %v7540_v21 = vld [vmem:[#allocation14 + $0x858] ss:$28 sps:$4 sm:$0xff]  }
 0x37f   :  { %5737 = vmatprep.subr.bf16.mxu1 %v7464_v22  ;;  %v7545_v22 = vld [vmem:[#allocation14 + $0x4a4] ss:$28 sps:$4 sm:$0xff]  }
 0x382   :  { %5738 = vmatpush1.bf16.msra.mxu1 %v7462_v24  ;;  %v7548_v24 = vld [vmem:[#allocation14 + $0x824] ss:$28 sps:$4 sm:$0xff]  }
 0x383   :  { %5739 = vmatprep.subr.bf16.mxu1 %v7470_v5  ;;  %v7543_v5 = vld [vmem:[#allocation14 + $0x4a0] ss:$28 sps:$4 sm:$0xff]  }
 0x386   :  { %5740 = vmatpush1.bf16.msra.mxu1 %v7468_v26  ;;  %v7546_v26 = vld [vmem:[#allocation14 + $0x820] ss:$28 sps:$4 sm:$0xff]  }
 0x387   :  { %5741 = vmatprep.subr.bf16.mxu1 %v7476_v27  ;;  %v7551_v27 = vld [vmem:[#allocation14 + $0x46c] ss:$28 sps:$4 sm:$0xff]  }
 0x38a   :  { %5742 = vmatpush1.bf16.msra.mxu1 %v7474_v29  ;;  %v7554_v29 = vld [vmem:[#allocation14 + $0x7ec] ss:$28 sps:$4 sm:$0xff]  }
 0x38b   :  { %5743 = vmatprep.subr.bf16.mxu1 %v7482_v32  ;;  %v7549_v32 = vld [vmem:[#allocation14 + $0x468] ss:$28 sps:$4 sm:$0xff]  }
 0x38e   :  { %5744 = vmatpush1.bf16.msra.mxu1 %v7480_v33  ;;  %v7552_v33 = vld [vmem:[#allocation14 + $0x7e8] ss:$28 sps:$4 sm:$0xff]  }
 0x38f   :  { %5745 = vmatprep.subr.bf16.mxu1 %v7488_v34  ;;  %v7557_v34 = vld [vmem:[#allocation14 + $0x434] ss:$28 sps:$4 sm:$0xff]  }
 0x392   :  { %5746 = vmatpush2.bf16.msra.mxu1 %v7486_v35  ;;  %v7560_v35 = vld [vmem:[#allocation14 + $0x7b4] ss:$28 sps:$4 sm:$0xff]  }
 0x393   :  { %5747 = vmatprep.subr.bf16.mxu1 %v7494_v36  ;;  %v7555_v36 = vld [vmem:[#allocation14 + $0x430] ss:$28 sps:$4 sm:$0xff]  }
 0x396   :  { %5748 = vmatpush2.bf16.msra.mxu1 %v7492_v37  ;;  %v7558_v37 = vld [vmem:[#allocation14 + $0x7b0] ss:$28 sps:$4 sm:$0xff]  }
 0x397   :  { %5749 = vmatprep.subr.bf16.mxu1 %v7500_v38  ;;  %v7563_v38 = vld [vmem:[#allocation14 + $0x3fc] ss:$28 sps:$4 sm:$0xff]  }
 0x39a   :  { %5750 = vmatpush2.bf16.msra.mxu1 %v7498_v39  ;;  %v7566_v39 = vld [vmem:[#allocation14 + $0x77c] ss:$28 sps:$4 sm:$0xff]  }
 0x39b   :  { %5751 = vmatprep.subr.bf16.mxu1 %v7506_v40  ;;  %v7561_v40 = vld [vmem:[#allocation14 + $0x3f8] ss:$28 sps:$4 sm:$0xff]  }
 0x39e   :  { %5752 = vmatpush2.bf16.msra.mxu1 %v7504_v41  ;;  %v7564_v41 = vld [vmem:[#allocation14 + $0x778] ss:$28 sps:$4 sm:$0xff]  }
 0x39f   :  { %5753 = vmatprep.subr.bf16.mxu1 %v7512_v42  ;;  %v7569_v42 = vld [vmem:[#allocation14 + $0x3c4] ss:$28 sps:$4 sm:$0xff]  }
 0x3a2   :  { %5754 = vmatpush2.bf16.msra.mxu1 %v7510_v44  ;;  %v7572_v44 = vld [vmem:[#allocation14 + $0x744] ss:$28 sps:$4 sm:$0xff]  }
 0x3a3   :  { %5755 = vmatprep.subr.bf16.mxu1 %v7518_v46  ;;  %v7567_v46 = vld [vmem:[#allocation14 + $0x3c0] ss:$28 sps:$4 sm:$0xff]  }
 0x3a5   :  { %v2648_v57 = vpop.f32.mrf.mxu1 }
 0x3a6   :  { %v2649_v58 = vadd.f32 %v2648_v57, %v1075_v53  ;;  %v2689_v59 = vpop.f32.mrf.mxu0  ;;  %5756 = vmatpush2.bf16.msra.mxu1 %v7516_v51  ;;  %v7575_v51 = vld [vmem:[#allocation14 + $0x38c] ss:$28 sps:$4 sm:$0xff]   ;;  %v7581_v57 = vld [vmem:[#allocation14 + $0x6d4] ss:$28 sps:$4 sm:$0xff]  }
 0x3a7   :  { %v2650_v61 = vpop.f32.mrf.mxu1  ;;  %5757 = vmatprep.subr.bf16.mxu1 %v7524_v55  ;;  %v7578_v53 = vld [vmem:[#allocation14 + $0x70c] ss:$28 sps:$4 sm:$0xff]  }
 0x3a8   :  { %v2690_v0 = vadd.f32 %v2689_v59, %v2649_v58  ;;  %v2651_v1 = vadd.f32 %v2650_v61, %v1079_v56  ;;  %v2691_v2 = vpop.f32.mrf.mxu0  ;;  %v7573_v55 = vld [vmem:[#allocation14 + $0x388] ss:$28 sps:$4 sm:$0xff]   ;;  %v7584_v58 = vld [vmem:[#allocation14 + $0xa54] ss:$28 sps:$4 sm:$0xff]   ;;  %v7587_v61 = vld [vmem:[#allocation14 + $0x69c] ss:$28 sps:$4 sm:$0xff]  }
 0x3a9   :  { %v2652_v3 = vpop.f32.mrf.mxu1  ;;  %v7576_v56 = vld [vmem:[#allocation14 + $0x708] ss:$28 sps:$4 sm:$0xff]   ;;  %v7579_v59 = vld [vmem:[#allocation14 + $0x6d0] ss:$28 sps:$4 sm:$0xff]  }
 0x3aa   :  { %v2692_v6 = vadd.f32 %v2691_v2, %v2651_v1  ;;  %v2693_v7 = vpop.f32.mrf.mxu0  ;;  %5758 = vmatpush2.bf16.msra.mxu1 %v7522_v60  ;;  %v2702_v9 = vmax.f32 %v2690_v0, 0.0  ;;  %v7582_v60 = vld [vmem:[#allocation14 + $0xa50] ss:$28 sps:$4 sm:$0xff]   ;;  %v7585_v0 = vld [vmem:[#allocation14 + $0x698] ss:$28 sps:$4 sm:$0xff]  }
 0x3ab   :  { %v2653_v10 = vpop.f32.mrf.mxu1  ;;  %5759 = vmatprep.subr.bf16.mxu1 %v7530_v62  ;;  %v7590_v62 = vld [vmem:[#allocation14 + $0xa1c] ss:$28 sps:$4 sm:$0xff]   ;;  %v7593_v2 = vld [vmem:[#allocation14 + $0x664] ss:$28 sps:$4 sm:$0xff]  }
 0x3ac   :  { %v2703_v13 = vmax.f32 %v2692_v6, 0.0  ;;  %v2694_v11 = vpop.f32.mrf.mxu0  ;;  %v8349_v19 = vpack.c.bf16 %v2702_v9, %v2702_v9  ;;  %v7588_v1 = vld [vmem:[#allocation14 + $0xa18] ss:$28 sps:$4 sm:$0xff]   ;;  %v7596_v3 = vld [vmem:[#allocation14 + $0x9e4] ss:$28 sps:$4 sm:$0xff]  }
 0x3ad   :  { %v7591_v6 = vld [vmem:[#allocation14 + $0x660] ss:$28 sps:$4 sm:$0xff]   ;;  %v7602_v9 = vld [vmem:[#allocation14 + $0x9ac] ss:$28 sps:$4 sm:$0xff]   ;;  %v7608_v11 = vld [vmem:[#allocation14 + $0x974] ss:$28 sps:$4 sm:$0xff]  }
 0x3ae   :  { %v8347_v12 = vpack.c.bf16 %v2703_v13, %v2703_v13  ;;  %5760 = vmatpush2.bf16.msra.mxu1 %v7528_v8  ;;  %v7594_v7 = vld [vmem:[#allocation14 + $0x9e0] ss:$28 sps:$4 sm:$0xff]   ;;  %v7599_v8 = vld [vmem:[#allocation14 + $0x62c] ss:$28 sps:$4 sm:$0xff]   ;;  %v7605_v13 = vld [vmem:[#allocation14 + $0x5f4] ss:$28 sps:$4 sm:$0xff]  }
 0x3af   :  { %5811 = vmatprep.subr.bf16.mxu1 %v7536_v63  ;;  %v7597_v10 = vld [vmem:[#allocation14 + $0x628] ss:$28 sps:$4 sm:$0xff]  }
 0x3b0   :  { %5720 = vmatprep.mubr.bf16.mxu0 %v8347_v12  ;;  %v7600_v63 = vld [vmem:[#allocation14 + $0x9a8] ss:$28 sps:$4 sm:$0xff]  }
 0x3b1   :  { %5762 = vmatmul.mubr.bf16.vlgmr.msra.gmra.mxu1 %v8315_v25  ;;  %5721 = vmatmul.mubr.bf16.vlgmr.msra.gmra.mxu0 %v8349_v19 }
 0x3b2   :  { %5771 = vmatpush1.bf16.msra.mxu0 %v7531_v15  ;;  %5812 = vmatpush1.bf16.msra.mxu1 %v7534_v14  ;;  %v7603_v15 = vld [vmem:[#allocation14 + $0x5f0] ss:$28 sps:$4 sm:$0xff]  }
 0x3b3   :  { %5843 = vmatprep.mubr.bf16.mxu1 %v8334_v17  ;;  %5802 = vmatprep.mubr.bf16.mxu0 %v8320_v49  ;;  %v7606_v14 = vld [vmem:[#allocation14 + $0x970] ss:$28 sps:$4 sm:$0xff]  }
 0x3b4   :  { %5772 = vmatprep.subr.bf16.mxu0 %v7539_v16  ;;  %5813 = vmatprep.subr.bf16.mxu1 %v7542_v20  ;;  %v7611_v16 = vld [vmem:[#allocation14 + $0x5bc] ss:$28 sps:$4 sm:$0xff]  }
 0x3b5   :  { %v7614_v20 = vld [vmem:[#allocation14 + $0x93c] ss:$28 sps:$4 sm:$0xff]  }
 0x3b6   :  { %5773 = vmatpush1.bf16.msra.mxu0 %v7537_v4  ;;  %5814 = vmatpush1.bf16.msra.mxu1 %v7540_v21  ;;  %v7609_v4 = vld [vmem:[#allocation14 + $0x5b8] ss:$28 sps:$4 sm:$0xff]  }
 0x3b7   :  { %5774 = vmatprep.subr.bf16.mxu0 %v7545_v22  ;;  %5815 = vmatprep.subr.bf16.mxu1 %v7548_v24  ;;  %v7612_v21 = vld [vmem:[#allocation14 + $0x938] ss:$28 sps:$4 sm:$0xff]   ;;  %v7617_v22 = vld [vmem:[#allocation14 + $0x584] ss:$28 sps:$4 sm:$0xff]  }
 0x3b8   :  { %v7620_v24 = vld [vmem:[#allocation14 + $0x904] ss:$28 sps:$4 sm:$0xff]  }
 0x3ba   :  { %5775 = vmatpush1.bf16.msra.mxu0 %v7543_v5  ;;  %5816 = vmatpush1.bf16.msra.mxu1 %v7546_v26  ;;  %v7615_v26 = vld [vmem:[#allocation14 + $0x580] ss:$28 sps:$4 sm:$0xff]  }
 0x3bb   :  { %5776 = vmatprep.subr.bf16.mxu0 %v7551_v27  ;;  %5817 = vmatprep.subr.bf16.mxu1 %v7554_v29  ;;  %v7618_v27 = vld [vmem:[#allocation14 + $0x900] ss:$28 sps:$4 sm:$0xff]  }
 0x3be   :  { %5777 = vmatpush1.bf16.msra.mxu0 %v7549_v32  ;;  %5818 = vmatpush1.bf16.msra.mxu1 %v7552_v33  ;;  %v7623_v32 = vld [vmem:[#allocation14 + $0x54c] ss:$28 sps:$4 sm:$0xff]  }
 0x3bf   :  { %5778 = vmatprep.subr.bf16.mxu0 %v7557_v34  ;;  %5819 = vmatprep.subr.bf16.mxu1 %v7560_v35  ;;  %v7626_v33 = vld [vmem:[#allocation14 + $0x8cc] ss:$28 sps:$4 sm:$0xff]   ;;  %v8356_v34 = vld [vmem:[#allocation16] sm:$0xff] }
 0x3c2   :  { %5779 = vmatpush1.bf16.msra.mxu0 %v7555_v36  ;;  %5820 = vmatpush1.bf16.msra.mxu1 %v7558_v37  ;;  %v7621_v36 = vld [vmem:[#allocation14 + $0x548] ss:$28 sps:$4 sm:$0xff]  }
 0x3c3   :  { %5780 = vmatprep.subr.bf16.mxu0 %v7563_v38  ;;  %5821 = vmatprep.subr.bf16.mxu1 %v7566_v39  ;;  %v7624_v37 = vld [vmem:[#allocation14 + $0x8c8] ss:$28 sps:$4 sm:$0xff]   ;;  %v7629_v39 = vld [vmem:[#allocation14 + $0xc14] ss:$28 sps:$4 sm:$0xff]  }
 0x3c6   :  { %5781 = vmatpush1.bf16.msra.mxu0 %v7561_v40  ;;  %5822 = vmatpush1.bf16.msra.mxu1 %v7564_v41  ;;  %v7632_v40 = vld [vmem:[#allocation14 + $0x19c] ss:$28 sps:$4 sm:$0xff]   ;;  %v3229_v41 = vrot.slane %v8356_v34, %v8257_v30 }
 0x3c7   :  { %5782 = vmatprep.subr.bf16.mxu0 %v7569_v42  ;;  %5823 = vmatprep.subr.bf16.mxu1 %v7572_v44  ;;  %v3233_v42 = vrot.slane %v8356_v34, %v8260_v31  ;;  %v7627_v44 = vld [vmem:[#allocation14 + $0xc10] ss:$28 sps:$4 sm:$0xff]   ;;  %v7633_v30 = vld [vmem:[#allocation14 + $0xbd8] ss:$28 sps:$4 sm:$0xff]  }
 0x3ca   :  { %5783 = vmatpush1.bf16.msra.mxu0 %v7567_v46  ;;  %5824 = vmatpush1.bf16.msra.mxu1 %v7570_v47  ;;  %v7630_v46 = vld [vmem:[#allocation14 + $0x198] ss:$28 sps:$4 sm:$0xff]  }
 0x3cb   :  { %5784 = vmatprep.subr.bf16.mxu0 %v7575_v51  ;;  %5825 = vmatprep.subr.bf16.mxu1 %v7578_v53  ;;  %v7635_v51 = vld [vmem:[#allocation14 + $0xbdc] ss:$28 sps:$4 sm:$0xff]   ;;  %v7638_v53 = vld [vmem:[#allocation14 + $0x164] ss:$28 sps:$4 sm:$0xff]  }
 0x3ce   :  { %5785 = vmatpush1.bf16.msra.mxu0 %v7573_v55  ;;  %5826 = vmatpush1.bf16.msra.mxu1 %v7576_v56 }
 0x3cf   :  { %5786 = vmatprep.subr.bf16.mxu0 %v7581_v57  ;;  %5827 = vmatprep.subr.bf16.mxu1 %v7584_v58  ;;  %v7636_v58 = vld [vmem:[#allocation14 + $0x160] ss:$28 sps:$4 sm:$0xff]  }
 0x3d2   :  { %5787 = vmatpush2.bf16.msra.mxu0 %v7579_v59  ;;  %5828 = vmatpush2.bf16.msra.mxu1 %v7582_v60  ;;  %v7641_v59 = vld [vmem:[#allocation14 + $0xba4] ss:$28 sps:$4 sm:$0xff]  }
 0x3d3   :  { %5788 = vmatprep.subr.bf16.mxu0 %v7587_v61  ;;  %5829 = vmatprep.subr.bf16.mxu1 %v7590_v62  ;;  %v7644_v61 = vld [vmem:[#allocation14 + $0x12c] ss:$28 sps:$4 sm:$0xff]  }
 0x3d6   :  { %5789 = vmatpush2.bf16.msra.mxu0 %v7585_v0  ;;  %5830 = vmatpush2.bf16.msra.mxu1 %v7588_v1  ;;  %v7639_v0 = vld [vmem:[#allocation14 + $0xba0] ss:$28 sps:$4 sm:$0xff]  }
 0x3d7   :  { %5790 = vmatprep.subr.bf16.mxu0 %v7593_v2  ;;  %5831 = vmatprep.subr.bf16.mxu1 %v7596_v3  ;;  %v7642_v2 = vld [vmem:[#allocation14 + $0x128] ss:$28 sps:$4 sm:$0xff]  }
 0x3d8   :  { %v7647_v3 = vld [vmem:[#allocation14 + $0xb6c] ss:$28 sps:$4 sm:$0xff]  }
 0x3da   :  { %5791 = vmatpush2.bf16.msra.mxu0 %v7591_v6  ;;  %5832 = vmatpush2.bf16.msra.mxu1 %v7594_v7  ;;  %v7650_v6 = vld [vmem:[#allocation14 + $0xf4] ss:$28 sps:$4 sm:$0xff]   ;;  %v7645_v7 = vld [vmem:[#allocation14 + $0xb68] ss:$28 sps:$4 sm:$0xff]  }
 0x3db   :  { %5792 = vmatprep.subr.bf16.mxu0 %v7599_v8  ;;  %5833 = vmatprep.subr.bf16.mxu1 %v7602_v9  ;;  %v7648_v8 = vld [vmem:[#allocation14 + $0xf0] ss:$28 sps:$4 sm:$0xff]  }
 0x3dc   :  { %v7653_v9 = vld [vmem:[#allocation14 + $0xb34] ss:$28 sps:$4 sm:$0xff]  }
 0x3de   :  { %5793 = vmatpush2.bf16.msra.mxu0 %v7597_v10  ;;  %5834 = vmatpush2.bf16.msra.mxu1 %v7600_v63  ;;  %v7656_v10 = vld [vmem:[#allocation14 + $0xbc] ss:$28 sps:$4 sm:$0xff]   ;;  %v7651_v63 = vld [vmem:[#allocation14 + $0xb30] ss:$28 sps:$4 sm:$0xff]  }
 0x3df   :  { %5794 = vmatprep.subr.bf16.mxu0 %v7605_v13  ;;  %5835 = vmatprep.subr.bf16.mxu1 %v7608_v11  ;;  %v7654_v13 = vld [vmem:[#allocation14 + $0xb8] ss:$28 sps:$4 sm:$0xff]  }
 0x3e0   :  { %v7659_v11 = vld [vmem:[#allocation14 + $0xafc] ss:$28 sps:$4 sm:$0xff]  }
 0x3e2   :  { %5795 = vmatpush2.bf16.msra.mxu0 %v7603_v15  ;;  %5836 = vmatpush2.bf16.msra.mxu1 %v7606_v14  ;;  %v7662_v15 = vld [vmem:[#allocation14 + $0x84] ss:$28 sps:$4 sm:$0xff]   ;;  %v7657_v14 = vld [vmem:[#allocation14 + $0xaf8] ss:$28 sps:$4 sm:$0xff]  }
 0x3e3   :  { %5796 = vmatprep.subr.bf16.mxu0 %v7611_v16  ;;  %5837 = vmatprep.subr.bf16.mxu1 %v7614_v20  ;;  %v7660_v16 = vld [vmem:[#allocation14 + $0x80] ss:$28 sps:$4 sm:$0xff]  }
 0x3e4   :  { %v7665_v20 = vld [vmem:[#allocation14 + $0xac4] ss:$28 sps:$4 sm:$0xff]  }
 0x3e5   :  { %v5599_v5 = vpop.f32.mrf.mxu1 }
 0x3e6   :  { %5797 = vmatpush2.bf16.msra.mxu0 %v7609_v4  ;;  %5838 = vmatpush2.bf16.msra.mxu1 %v7612_v21  ;;  %v5600_v47 = vadd.f32 %v5599_v5, %v3229_v41  ;;  %v7668_v4 = vld [vmem:[#allocation14 + $0x4c] ss:$28 sps:$4 sm:$0xff]   ;;  %v7663_v21 = vld [vmem:[#allocation14 + $0xac0] ss:$28 sps:$4 sm:$0xff]   ;;  %v7674_v5 = vld [vmem:[#allocation14 + $0x14] ss:$28 sps:$4 sm:$0xff]  }
 0x3e7   :  { %v5601_v29 = vpop.f32.mrf.mxu1  ;;  %5798 = vmatprep.subr.bf16.mxu0 %v7617_v22  ;;  %5839 = vmatprep.subr.bf16.mxu1 %v7620_v24  ;;  %v7666_v22 = vld [vmem:[#allocation14 + $0x48] ss:$28 sps:$4 sm:$0xff]  }
 0x3e8   :  { %v5602_v56 = vadd.f32 %v5601_v29, %v3233_v42  ;;  %v7671_v24 = vld [vmem:[#allocation14 + $0xa8c] ss:$28 sps:$4 sm:$0xff]   ;;  %v7677_v29 = vld [vmem:[#allocation14 + $0xdd4] ss:$28 sps:$4 sm:$0xff]   ;;  %v7687_v42 = vld [vmem:[#allocation14 + $0xd60] ss:$28 sps:$4 sm:$0xff]  }
 0x3e9   :  { %v5603_v35 = vpop.f32.mrf.mxu1  ;;  %v7692_v41 = vld [vmem:[#allocation14 + $0x2ec] ss:$28 sps:$4 sm:$0xff]  }
 0x3ea   :  { %5799 = vmatpush2.bf16.msra.mxu0 %v7615_v26  ;;  %5840 = vmatpush2.bf16.msra.mxu1 %v7618_v27  ;;  %v7669_v26 = vld [vmem:[#allocation14 + $0xa88] ss:$28 sps:$4 sm:$0xff]   ;;  %v7672_v27 = vld [vmem:[#allocation14 + $0x10] ss:$28 sps:$4 sm:$0xff]   ;;  %v7678_v35 = vld [vmem:[#allocation14 + $0x358] ss:$28 sps:$4 sm:$0xff]  }
 0x3eb   :  { %v5604_v38 = vpop.f32.mrf.mxu1  ;;  %5800 = vmatprep.subr.bf16.mxu0 %v7623_v32  ;;  %5841 = vmatprep.subr.bf16.mxu1 %v7626_v33  ;;  %v7680_v32 = vld [vmem:[#allocation14 + $0x35c] ss:$28 sps:$4 sm:$0xff]   ;;  %v7675_v33 = vld [vmem:[#allocation14 + $0xdd0] ss:$28 sps:$4 sm:$0xff]  }
 0x3ec   :  { %v7681_v38 = vld [vmem:[#allocation14 + $0xd98] ss:$28 sps:$4 sm:$0xff]  }
 0x3ee   :  { %5801 = vmatpush2.bf16.msra.mxu0 %v7621_v36  ;;  %5842 = vmatpush2.bf16.msra.mxu1 %v7624_v37  ;;  %v7683_v36 = vld [vmem:[#allocation14 + $0xd9c] ss:$28 sps:$4 sm:$0xff]   ;;  %v7686_v37 = vld [vmem:[#allocation14 + $0x324] ss:$28 sps:$4 sm:$0xff]  }
 0x3ef   :  { %5852 = vmatprep.subr.bf16.mxu0 %v7629_v39  ;;  %5893 = vmatprep.subr.bf16.mxu1 %v7632_v40  ;;  %v7684_v39 = vld [vmem:[#allocation14 + $0x320] ss:$28 sps:$4 sm:$0xff]  }
 0x3f0   :  { %v7689_v40 = vld [vmem:[#allocation14 + $0xd64] ss:$28 sps:$4 sm:$0xff]  }
 0x3f1   :  { %5803 = vmatmul.mubr.bf16.vlgmr.msra.gmra.mxu0 %v8322_v54  ;;  %5844 = vmatmul.mubr.bf16.vlgmr.msra.gmra.mxu1 %v8336_v18  ;;  %v5640_v55 = vpop.f32.mrf.mxu0 }
 0x3f2   :  { %v8364_v57 = vadd.f32 %v5640_v55, %v5600_v47  ;;  %5853 = vmatpush1.bf16.msra.mxu0 %v7627_v44  ;;  %5884 = vmatprep.mubr.bf16.mxu0 %v8347_v12  ;;  %v7690_v44 = vld [vmem:[#allocation14 + $0x2e8] ss:$28 sps:$4 sm:$0xff]   ;;  %v7698_v47 = vld [vmem:[#allocation14 + $0x2b4] ss:$28 sps:$4 sm:$0xff]  }
 0x3f3   :  { %5894 = vmatpush1.bf16.msra.mxu1 %v7630_v46  ;;  %5925 = vmatprep.mubr.bf16.mxu1 %v8306_v23  ;;  %v5642_v31 = vpop.f32.mrf.mxu0  ;;  %v7695_v46 = vld [vmem:[#allocation14 + $0xd2c] ss:$28 sps:$4 sm:$0xff]   ;;  %v7701_v55 = vld [vmem:[#allocation14 + $0xcf4] ss:$28 sps:$4 sm:$0xff]  }
 0x3f4   :  { %v8368_v60 = vadd.f32 %v5642_v31, %v5602_v56  ;;  %5854 = vmatprep.subr.bf16.mxu0 %v7635_v51  ;;  %5895 = vmatprep.subr.bf16.mxu1 %v7638_v53  ;;  %v7693_v51 = vld [vmem:[#allocation14 + $0xd28] ss:$28 sps:$4 sm:$0xff]   ;;  %v7696_v53 = vld [vmem:[#allocation14 + $0x2b0] ss:$28 sps:$4 sm:$0xff]   ;;  %v7704_v56 = vld [vmem:[#allocation14 + $0x27c] ss:$28 sps:$4 sm:$0xff]  }
 0x3f5   :  { %v5644_v62 = vpop.f32.mrf.mxu0  ;;  %v7702_v31 = vld [vmem:[#allocation14 + $0x278] ss:$28 sps:$4 sm:$0xff]  }
 0x3f6   :  { %5855 = vmatpush1.bf16.msra.mxu0 %v7633_v30  ;;  %v7699_v30 = vld [vmem:[#allocation14 + $0xcf0] ss:$28 sps:$4 sm:$0xff]   ;;  %v7708_v62 = vld [vmem:[#allocation14 + $0x240] ss:$28 sps:$4 sm:$0xff]  }
 0x3f7   :  { %5896 = vmatpush1.bf16.msra.mxu1 %v7636_v58  ;;  %v5645_v1 = vpop.f32.mrf.mxu0  ;;  %5856 = vmatprep.subr.bf16.mxu0 %v7641_v59  ;;  %v7707_v58 = vld [vmem:[#allocation14 + $0xcbc] ss:$28 sps:$4 sm:$0xff]   ;;  %v7710_v59 = vld [vmem:[#allocation14 + $0x244] ss:$28 sps:$4 sm:$0xff]  }
 0x3f8   :  { %5897 = vmatprep.subr.bf16.mxu1 %v7644_v61  ;;  %v7705_v61 = vld [vmem:[#allocation14 + $0xcb8] ss:$28 sps:$4 sm:$0xff]   ;;  %v7716_v1 = vld [vmem:[#allocation14 + $0x20c] ss:$28 sps:$4 sm:$0xff]  }
 0x3fa   :  { %5857 = vmatpush1.bf16.msra.mxu0 %v7639_v0  ;;  %v7713_v0 = vld [vmem:[#allocation14 + $0xc84] ss:$28 sps:$4 sm:$0xff]  }
 0x3fb   :  { %5898 = vmatpush1.bf16.msra.mxu1 %v7642_v2  ;;  %5858 = vmatprep.subr.bf16.mxu0 %v7647_v3  ;;  %v7711_v2 = vld [vmem:[#allocation14 + $0xc80] ss:$28 sps:$4 sm:$0xff]   ;;  %v7714_v3 = vld [vmem:[#allocation14 + $0x208] ss:$28 sps:$4 sm:$0xff]  }
 0x3fc   :  { %5899 = vmatprep.subr.bf16.mxu1 %v7650_v6  ;;  %v7719_v6 = vld [vmem:[#allocation14 + $0xc4c] ss:$28 sps:$4 sm:$0xff]  }
 0x3fe   :  { %5859 = vmatpush1.bf16.msra.mxu0 %v7645_v7  ;;  %v7722_v7 = vld [vmem:[#allocation14 + $0x1d4] ss:$28 sps:$4 sm:$0xff]  }
 0x3ff   :  { %5900 = vmatpush1.bf16.msra.mxu1 %v7648_v8  ;;  %5860 = vmatprep.subr.bf16.mxu0 %v7653_v9  ;;  %v7717_v8 = vld [vmem:[#allocation14 + $0xc48] ss:$28 sps:$4 sm:$0xff]   ;;  %v7720_v9 = vld [vmem:[#allocation14 + $0x1d0] ss:$28 sps:$4 sm:$0xff]  }
 0x400   :  { %5901 = vmatprep.subr.bf16.mxu1 %v7656_v10  ;;  %v7725_v10 = vld [vmem:[#allocation14 + $0x51c] ss:$28 sps:$4 sm:$0xff]  }
 0x402   :  { %5861 = vmatpush1.bf16.msra.mxu0 %v7651_v63  ;;  %v7728_v63 = vld [vmem:[#allocation14 + $0x89c] ss:$28 sps:$4 sm:$0xff]  }
 0x403   :  { %5902 = vmatpush1.bf16.msra.mxu1 %v7654_v13  ;;  %5862 = vmatprep.subr.bf16.mxu0 %v7659_v11  ;;  %v7723_v13 = vld [vmem:[#allocation14 + $0x518] ss:$28 sps:$4 sm:$0xff]  }
 0x404   :  { %5903 = vmatprep.subr.bf16.mxu1 %v7662_v15  ;;  %v7726_v11 = vld [vmem:[#allocation14 + $0x898] ss:$28 sps:$4 sm:$0xff]   ;;  %v7731_v15 = vld [vmem:[#allocation14 + $0x4e4] ss:$28 sps:$4 sm:$0xff]  }
 0x406   :  { %5863 = vmatpush1.bf16.msra.mxu0 %v7657_v14 }
 0x407   :  { %5904 = vmatpush1.bf16.msra.mxu1 %v7660_v16  ;;  %5864 = vmatprep.subr.bf16.mxu0 %v7665_v20  ;;  %v7734_v16 = vld [vmem:[#allocation14 + $0x864] ss:$28 sps:$4 sm:$0xff]  }
 0x408   :  { %5905 = vmatprep.subr.bf16.mxu1 %v7668_v4  ;;  %v7729_v4 = vld [vmem:[#allocation14 + $0x4e0] ss:$28 sps:$4 sm:$0xff]  }
 0x40a   :  { %5865 = vmatpush1.bf16.msra.mxu0 %v7663_v21 }
 0x40b   :  { %5906 = vmatpush1.bf16.msra.mxu1 %v7666_v22  ;;  %5866 = vmatprep.subr.bf16.mxu0 %v7671_v24  ;;  %v7732_v22 = vld [vmem:[#allocation14 + $0x860] ss:$28 sps:$4 sm:$0xff]   ;;  %v7737_v24 = vld [vmem:[#allocation14 + $0x4ac] ss:$28 sps:$4 sm:$0xff]  }
 0x40c   :  { %5907 = vmatprep.subr.bf16.mxu1 %v7674_v5  ;;  %v7740_v5 = vld [vmem:[#allocation14 + $0x82c] ss:$28 sps:$4 sm:$0xff]  }
 0x40e   :  { %5867 = vmatpush1.bf16.msra.mxu0 %v7669_v26 }
 0x40f   :  { %5908 = vmatpush1.bf16.msra.mxu1 %v7672_v27  ;;  %5868 = vmatprep.subr.bf16.mxu0 %v7677_v29  ;;  %v7735_v27 = vld [vmem:[#allocation14 + $0x4a8] ss:$28 sps:$4 sm:$0xff]  }
 0x410   :  { %5909 = vmatprep.subr.bf16.mxu1 %v7680_v32  ;;  %v7738_v29 = vld [vmem:[#allocation14 + $0x828] ss:$28 sps:$4 sm:$0xff]   ;;  %v7743_v32 = vld [vmem:[#allocation14 + $0x474] ss:$28 sps:$4 sm:$0xff]  }
 0x412   :  { %5869 = vmatpush2.bf16.msra.mxu0 %v7675_v33  ;;  %v7746_v33 = vld [vmem:[#allocation14 + $0x7f4] ss:$28 sps:$4 sm:$0xff]  }
 0x413   :  { %5910 = vmatpush2.bf16.msra.mxu1 %v7678_v35  ;;  %5870 = vmatprep.subr.bf16.mxu0 %v7683_v36  ;;  %v7741_v35 = vld [vmem:[#allocation14 + $0x470] ss:$28 sps:$4 sm:$0xff]  }
 0x414   :  { %5911 = vmatprep.subr.bf16.mxu1 %v7686_v37  ;;  %v7744_v36 = vld [vmem:[#allocation14 + $0x7f0] ss:$28 sps:$4 sm:$0xff]   ;;  %v7749_v37 = vld [vmem:[#allocation14 + $0x43c] ss:$28 sps:$4 sm:$0xff]  }
 0x416   :  { %5871 = vmatpush2.bf16.msra.mxu0 %v7681_v38  ;;  %v7752_v38 = vld [vmem:[#allocation14 + $0x7bc] ss:$28 sps:$4 sm:$0xff]  }
 0x417   :  { %5912 = vmatpush2.bf16.msra.mxu1 %v7684_v39  ;;  %5872 = vmatprep.subr.bf16.mxu0 %v7689_v40  ;;  %v7747_v39 = vld [vmem:[#allocation14 + $0x438] ss:$28 sps:$4 sm:$0xff]  }
 0x418   :  { %5913 = vmatprep.subr.bf16.mxu1 %v7692_v41  ;;  %v7750_v40 = vld [vmem:[#allocation14 + $0x7b8] ss:$28 sps:$4 sm:$0xff]   ;;  %v7755_v41 = vld [vmem:[#allocation14 + $0x404] ss:$28 sps:$4 sm:$0xff]  }
 0x41a   :  { %5873 = vmatpush2.bf16.msra.mxu0 %v7687_v42  ;;  %v7758_v42 = vld [vmem:[#allocation14 + $0x784] ss:$28 sps:$4 sm:$0xff]  }
 0x41b   :  { %5914 = vmatpush2.bf16.msra.mxu1 %v7690_v44  ;;  %5874 = vmatprep.subr.bf16.mxu0 %v7695_v46  ;;  %v7753_v44 = vld [vmem:[#allocation14 + $0x400] ss:$28 sps:$4 sm:$0xff]  }
 0x41c   :  { %5915 = vmatprep.subr.bf16.mxu1 %v7698_v47  ;;  %v7756_v46 = vld [vmem:[#allocation14 + $0x780] ss:$28 sps:$4 sm:$0xff]   ;;  %v7761_v47 = vld [vmem:[#allocation14 + $0x3cc] ss:$28 sps:$4 sm:$0xff]  }
 0x41e   :  { %5875 = vmatpush2.bf16.msra.mxu0 %v7693_v51  ;;  %v7764_v51 = vld [vmem:[#allocation14 + $0x74c] ss:$28 sps:$4 sm:$0xff]  }
 0x41f   :  { %5916 = vmatpush2.bf16.msra.mxu1 %v7696_v53  ;;  %5876 = vmatprep.subr.bf16.mxu0 %v7701_v55  ;;  %v7759_v53 = vld [vmem:[#allocation14 + $0x3c8] ss:$28 sps:$4 sm:$0xff]  }
 0x420   :  { %5917 = vmatprep.subr.bf16.mxu1 %v7704_v56  ;;  %v7762_v55 = vld [vmem:[#allocation14 + $0x748] ss:$28 sps:$4 sm:$0xff]   ;;  %v7767_v56 = vld [vmem:[#allocation14 + $0x394] ss:$28 sps:$4 sm:$0xff]  }
 0x422   :  { %5877 = vmatpush2.bf16.msra.mxu0 %v7699_v30  ;;  %v7770_v30 = vld [vmem:[#allocation14 + $0x714] ss:$28 sps:$4 sm:$0xff]  }
 0x423   :  { %5918 = vmatpush2.bf16.msra.mxu1 %v7702_v31  ;;  %5878 = vmatprep.subr.bf16.mxu0 %v7707_v58  ;;  %v7765_v31 = vld [vmem:[#allocation14 + $0x390] ss:$28 sps:$4 sm:$0xff]  }
 0x424   :  { %5919 = vmatprep.subr.bf16.mxu1 %v7710_v59  ;;  %v7768_v58 = vld [vmem:[#allocation14 + $0x710] ss:$28 sps:$4 sm:$0xff]   ;;  %v7773_v59 = vld [vmem:[#allocation14 + $0x6dc] ss:$28 sps:$4 sm:$0xff]  }
 0x426   :  { %5879 = vmatpush2.bf16.msra.mxu0 %v7705_v61  ;;  %v7776_v61 = vld [vmem:[#allocation14 + $0xa5c] ss:$28 sps:$4 sm:$0xff]  }
 0x427   :  { %5920 = vmatpush2.bf16.msra.mxu1 %v7708_v62  ;;  %5880 = vmatprep.subr.bf16.mxu0 %v7713_v0  ;;  %v7771_v62 = vld [vmem:[#allocation14 + $0x6d8] ss:$28 sps:$4 sm:$0xff]  }
 0x428   :  { %5921 = vmatprep.subr.bf16.mxu1 %v7716_v1  ;;  %v7774_v0 = vld [vmem:[#allocation14 + $0xa58] ss:$28 sps:$4 sm:$0xff]   ;;  %v7779_v1 = vld [vmem:[#allocation14 + $0x6a4] ss:$28 sps:$4 sm:$0xff]  }
 0x42a   :  { %5881 = vmatpush2.bf16.msra.mxu0 %v7711_v2  ;;  %v7782_v2 = vld [vmem:[#allocation14 + $0xa24] ss:$28 sps:$4 sm:$0xff]  }
 0x42b   :  { %5922 = vmatpush2.bf16.msra.mxu1 %v7714_v3  ;;  %5882 = vmatprep.subr.bf16.mxu0 %v7719_v6  ;;  %v7777_v3 = vld [vmem:[#allocation14 + $0x6a0] ss:$28 sps:$4 sm:$0xff]  }
 0x42c   :  { %5923 = vmatprep.subr.bf16.mxu1 %v7722_v7  ;;  %v7780_v6 = vld [vmem:[#allocation14 + $0xa20] ss:$28 sps:$4 sm:$0xff]   ;;  %v7785_v7 = vld [vmem:[#allocation14 + $0x66c] ss:$28 sps:$4 sm:$0xff]  }
 0x42e   :  { %5883 = vmatpush2.bf16.msra.mxu0 %v7717_v8  ;;  %v7788_v8 = vld [vmem:[#allocation14 + $0x9ec] ss:$28 sps:$4 sm:$0xff]  }
 0x42f   :  { %5924 = vmatpush2.bf16.msra.mxu1 %v7720_v9  ;;  %5934 = vmatprep.subr.bf16.mxu0 %v7725_v10  ;;  %v7783_v9 = vld [vmem:[#allocation14 + $0x668] ss:$28 sps:$4 sm:$0xff]  }
 0x430   :  { %5975 = vmatprep.subr.bf16.mxu1 %v7728_v63  ;;  %v7786_v10 = vld [vmem:[#allocation14 + $0x9e8] ss:$28 sps:$4 sm:$0xff]   ;;  %v7791_v63 = vld [vmem:[#allocation14 + $0x634] ss:$28 sps:$4 sm:$0xff]  }
 0x431   :  { %5885 = vmatmul.mubr.bf16.vlgmr.msra.gmra.mxu0 %v8349_v19  ;;  %v5681_v14 = vpop.f32.mrf.mxu1 }
 0x432   :  { %5926 = vmatmul.mubr.bf16.vlgmr.msra.gmra.mxu1 %v8315_v25  ;;  %v8373_v20 = vadd.f32 %v5681_v14, %v8364_v57  ;;  %5935 = vmatpush1.bf16.msra.mxu0 %v7723_v13  ;;  %v7794_v13 = vld [vmem:[#allocation14 + $0x9b4] ss:$28 sps:$4 sm:$0xff]   ;;  %v7797_v14 = vld [vmem:[#allocation14 + $0x5fc] ss:$28 sps:$4 sm:$0xff]  }
 0x433   :  { %5966 = vmatprep.mubr.bf16.mxu0 %v8320_v49  ;;  %5976 = vmatpush1.bf16.msra.mxu1 %v7726_v11  ;;  %v8376_v21 = vpop.f32.mrf.mxu1  ;;  %v7789_v11 = vld [vmem:[#allocation14 + $0x630] ss:$28 sps:$4 sm:$0xff]  }
 0x434   :  { %6007 = vmatprep.mubr.bf16.mxu1 %v8334_v17  ;;  %5936 = vmatprep.subr.bf16.mxu0 %v7731_v15  ;;  %v7792_v15 = vld [vmem:[#allocation14 + $0x9b0] ss:$28 sps:$4 sm:$0xff]  }
 0x435   :  { %5977 = vmatprep.subr.bf16.mxu1 %v7734_v16  ;;  %v5685_v26 = vpop.f32.mrf.mxu1  ;;  %v7800_v16 = vld [vmem:[#allocation14 + $0x97c] ss:$28 sps:$4 sm:$0xff]  }
 0x436   :  { %5937 = vmatpush1.bf16.msra.mxu0 %v7729_v4  ;;  %v7795_v4 = vld [vmem:[#allocation14 + $0x5f8] ss:$28 sps:$4 sm:$0xff]   ;;  %v7801_v26 = vld [vmem:[#allocation14 + $0x5c0] ss:$28 sps:$4 sm:$0xff]  }
 0x437   :  { %5978 = vmatpush1.bf16.msra.mxu1 %v7732_v22  ;;  %v5686_v57 = vpop.f32.mrf.mxu1  ;;  %5938 = vmatprep.subr.bf16.mxu0 %v7737_v24  ;;  %v7798_v22 = vld [vmem:[#allocation14 + $0x978] ss:$28 sps:$4 sm:$0xff]   ;;  %v7803_v24 = vld [vmem:[#allocation14 + $0x5c4] ss:$28 sps:$4 sm:$0xff]  }
 0x438   :  { %5979 = vmatprep.subr.bf16.mxu1 %v7740_v5  ;;  %v7806_v5 = vld [vmem:[#allocation14 + $0x944] ss:$28 sps:$4 sm:$0xff]   ;;  %v7809_v57 = vld [vmem:[#allocation14 + $0x58c] ss:$28 sps:$4 sm:$0xff]  }
 0x43a   :  { %5939 = vmatpush1.bf16.msra.mxu0 %v7735_v27  ;;  %v7804_v27 = vld [vmem:[#allocation14 + $0x940] ss:$28 sps:$4 sm:$0xff]  }
 0x43b   :  { %5980 = vmatpush1.bf16.msra.mxu1 %v7738_v29  ;;  %5940 = vmatprep.subr.bf16.mxu0 %v7743_v32  ;;  %v7812_v29 = vld [vmem:[#allocation14 + $0x90c] ss:$28 sps:$4 sm:$0xff]  }
 0x43c   :  { %5981 = vmatprep.subr.bf16.mxu1 %v7746_v33  ;;  %v7807_v32 = vld [vmem:[#allocation14 + $0x588] ss:$28 sps:$4 sm:$0xff]  }
 0x43d   :  { %v7810_v33 = vld [vmem:[#allocation14 + $0x908] ss:$28 sps:$4 sm:$0xff]  }
 0x43e   :  { %5941 = vmatpush1.bf16.msra.mxu0 %v7741_v35  ;;  %v7815_v35 = vld [vmem:[#allocation14 + $0x554] ss:$28 sps:$4 sm:$0xff]  }
 0x43f   :  { %5982 = vmatpush1.bf16.msra.mxu1 %v7744_v36  ;;  %5942 = vmatprep.subr.bf16.mxu0 %v7749_v37  ;;  %v7818_v36 = vld [vmem:[#allocation14 + $0x8d4] ss:$28 sps:$4 sm:$0xff]  }
 0x440   :  { %5983 = vmatprep.subr.bf16.mxu1 %v7752_v38  ;;  %v7813_v37 = vld [vmem:[#allocation14 + $0x550] ss:$28 sps:$4 sm:$0xff]  }
 0x441   :  { %v7816_v38 = vld [vmem:[#allocation14 + $0x8d0] ss:$28 sps:$4 sm:$0xff]  }
 0x442   :  { %5943 = vmatpush1.bf16.msra.mxu0 %v7747_v39  ;;  %v7821_v39 = vld [vmem:[#allocation14 + $0xc1c] ss:$28 sps:$4 sm:$0xff]  }
 0x443   :  { %5984 = vmatpush1.bf16.msra.mxu1 %v7750_v40  ;;  %5944 = vmatprep.subr.bf16.mxu0 %v7755_v41  ;;  %v7822_v40 = vld [vmem:[#allocation14 + $0x360] ss:$28 sps:$4 sm:$0xff]   ;;  %v7819_v41 = vld [vmem:[#allocation14 + $0xc18] ss:$28 sps:$4 sm:$0xff]  }
 0x444   :  { %5985 = vmatprep.subr.bf16.mxu1 %v7758_v42  ;;  %v7823_v42 = vld [vmem:[#allocation14 + $0x1a0] ss:$28 sps:$4 sm:$0xff]  }
 0x446   :  { %5945 = vmatpush1.bf16.msra.mxu0 %v7753_v44  ;;  %v7826_v44 = vld [vmem:[#allocation14 + $0xbe4] ss:$28 sps:$4 sm:$0xff]  }
 0x447   :  { %5986 = vmatpush1.bf16.msra.mxu1 %v7756_v46  ;;  %5946 = vmatprep.subr.bf16.mxu0 %v7761_v47 }
 0x448   :  { %5987 = vmatprep.subr.bf16.mxu1 %v7764_v51  ;;  %v7827_v51 = vld [vmem:[#allocation14 + $0x328] ss:$28 sps:$4 sm:$0xff]  }
 0x44a   :  { %5947 = vmatpush1.bf16.msra.mxu0 %v7759_v53  ;;  %v5684_v53 = vadd.f32 %v8376_v21, %v8368_v60 }
 0x44b   :  { %5988 = vmatpush1.bf16.msra.mxu1 %v7762_v55  ;;  %5948 = vmatprep.subr.bf16.mxu0 %v7767_v56  ;;  %v7824_v56 = vld [vmem:[#allocation14 + $0xbe0] ss:$28 sps:$4 sm:$0xff]  }
 0x44c   :  { %5989 = vmatprep.subr.bf16.mxu1 %v7770_v30 }
 0x44e   :  { %5949 = vmatpush1.bf16.msra.mxu0 %v7765_v31 }
 0x44f   :  { %5990 = vmatpush1.bf16.msra.mxu1 %v7768_v58  ;;  %5950 = vmatprep.subr.bf16.mxu0 %v7773_v59  ;;  %v7828_v58 = vld [vmem:[#allocation14 + $0x168] ss:$28 sps:$4 sm:$0xff]  }
 0x450   :  { %5991 = vmatprep.subr.bf16.mxu1 %v7776_v61  ;;  %v7831_v59 = vld [vmem:[#allocation14 + $0xbac] ss:$28 sps:$4 sm:$0xff]  }
 0x452   :  { %5951 = vmatpush2.bf16.msra.mxu0 %v7771_v62  ;;  %v7832_v62 = vld [vmem:[#allocation14 + $0x2f0] ss:$28 sps:$4 sm:$0xff]  }
 0x453   :  { %5992 = vmatpush2.bf16.msra.mxu1 %v7774_v0  ;;  %5952 = vmatprep.subr.bf16.mxu0 %v7779_v1 }
 0x454   :  { %5993 = vmatprep.subr.bf16.mxu1 %v7782_v2  ;;  %v7833_v2 = vld [vmem:[#allocation14 + $0x130] ss:$28 sps:$4 sm:$0xff]  }
 0x456   :  { %5953 = vmatpush2.bf16.msra.mxu0 %v7777_v3  ;;  %v7836_v3 = vld [vmem:[#allocation14 + $0xb74] ss:$28 sps:$4 sm:$0xff]  }
 0x457   :  { %5994 = vmatpush2.bf16.msra.mxu1 %v7780_v6  ;;  %5954 = vmatprep.subr.bf16.mxu0 %v7785_v7  ;;  %v7837_v6 = vld [vmem:[#allocation14 + $0x2b8] ss:$28 sps:$4 sm:$0xff]  }
 0x458   :  { %5995 = vmatprep.subr.bf16.mxu1 %v7788_v8  ;;  %v7838_v7 = vld [vmem:[#allocation14 + $0xf8] ss:$28 sps:$4 sm:$0xff]  }
 0x459   :  { %v7841_v8 = vld [vmem:[#allocation14 + $0xb3c] ss:$28 sps:$4 sm:$0xff]  }
 0x45a   :  { %5955 = vmatpush2.bf16.msra.mxu0 %v7783_v9  ;;  %v7842_v9 = vld [vmem:[#allocation14 + $0x280] ss:$28 sps:$4 sm:$0xff]  }
 0x45b   :  { %5996 = vmatpush2.bf16.msra.mxu1 %v7786_v10  ;;  %5956 = vmatprep.subr.bf16.mxu0 %v7791_v63  ;;  %v7839_v10 = vld [vmem:[#allocation14 + $0xb38] ss:$28 sps:$4 sm:$0xff]   ;;  %v7843_v63 = vld [vmem:[#allocation14 + $0xc0] ss:$28 sps:$4 sm:$0xff]  }
 0x45c   :  { %5997 = vmatprep.subr.bf16.mxu1 %v7794_v13  ;;  %v7846_v13 = vld [vmem:[#allocation14 + $0xb04] ss:$28 sps:$4 sm:$0xff]  }
 0x45e   :  { %5957 = vmatpush2.bf16.msra.mxu0 %v7789_v11  ;;  %v7847_v11 = vld [vmem:[#allocation14 + $0x248] ss:$28 sps:$4 sm:$0xff]  }
 0x45f   :  { %5998 = vmatpush2.bf16.msra.mxu1 %v7792_v15  ;;  %5958 = vmatprep.subr.bf16.mxu0 %v7797_v14  ;;  %v7844_v14 = vld [vmem:[#allocation14 + $0xb00] ss:$28 sps:$4 sm:$0xff]  }
 0x460   :  { %5999 = vmatprep.subr.bf16.mxu1 %v7800_v16 }
 0x462   :  { %5959 = vmatpush2.bf16.msra.mxu0 %v7795_v4  ;;  %v7848_v4 = vld [vmem:[#allocation14 + $0x88] ss:$28 sps:$4 sm:$0xff]  }
 0x463   :  { %6000 = vmatpush2.bf16.msra.mxu1 %v7798_v22  ;;  %5960 = vmatprep.subr.bf16.mxu0 %v7803_v24  ;;  %v7851_v22 = vld [vmem:[#allocation14 + $0xacc] ss:$28 sps:$4 sm:$0xff]  }
 0x464   :  { %6001 = vmatprep.subr.bf16.mxu1 %v7806_v5  ;;  %v7852_v24 = vld [vmem:[#allocation14 + $0x210] ss:$28 sps:$4 sm:$0xff]  }
 0x466   :  { %5961 = vmatpush2.bf16.msra.mxu0 %v7801_v26  ;;  %v7849_v26 = vld [vmem:[#allocation14 + $0xac8] ss:$28 sps:$4 sm:$0xff]  }
 0x467   :  { %6002 = vmatpush2.bf16.msra.mxu1 %v7804_v27  ;;  %5962 = vmatprep.subr.bf16.mxu0 %v7809_v57  ;;  %v7853_v27 = vld [vmem:[#allocation14 + $0x50] ss:$28 sps:$4 sm:$0xff]  }
 0x468   :  { %6003 = vmatprep.subr.bf16.mxu1 %v7812_v29  ;;  %v7856_v57 = vld [vmem:[#allocation14 + $0xa94] ss:$28 sps:$4 sm:$0xff]  }
 0x469   :  { %v7857_v29 = vld [vmem:[#allocation14 + $0x1d8] ss:$28 sps:$4 sm:$0xff]  }
 0x46a   :  { %5963 = vmatpush2.bf16.msra.mxu0 %v7807_v32  ;;  %v7854_v32 = vld [vmem:[#allocation14 + $0xa90] ss:$28 sps:$4 sm:$0xff]  }
 0x46b   :  { %6004 = vmatpush2.bf16.msra.mxu1 %v7810_v33  ;;  %5964 = vmatprep.subr.bf16.mxu0 %v7815_v35  ;;  %v7858_v33 = vld [vmem:[#allocation14 + $0x18] ss:$28 sps:$4 sm:$0xff]  }
 0x46c   :  { %6005 = vmatprep.subr.bf16.mxu1 %v7818_v36  ;;  %v7861_v35 = vld [vmem:[#allocation14 + $0xddc] ss:$28 sps:$4 sm:$0xff]  }
 0x46d   :  { %v7862_v36 = vld [vmem:[#allocation14 + $0xa60] ss:$28 sps:$4 sm:$0xff]  }
 0x46e   :  { %5965 = vmatpush2.bf16.msra.mxu0 %v7813_v37  ;;  %v7859_v37 = vld [vmem:[#allocation14 + $0xdd8] ss:$28 sps:$4 sm:$0xff]  }
 0x46f   :  { %6006 = vmatpush2.bf16.msra.mxu1 %v7816_v38  ;;  %6016 = vmatprep.subr.bf16.mxu0 %v7821_v39  ;;  %v7863_v38 = vld [vmem:[#allocation14 + $0x8a0] ss:$28 sps:$4 sm:$0xff]  }
 0x470   :  { %7068 = vmatprep.subr.bf16.mxu1 %v7822_v40  ;;  %v7866_v39 = vld [vmem:[#allocation14 + $0xda4] ss:$28 sps:$4 sm:$0xff]  }
 0x471   :  { %v8379_v46 = vpop.f32.mrf.mxu1  ;;  %5967 = vmatmul.mubr.bf16.vlgmr.msra.gmra.mxu0 %v8322_v54  ;;  %v5722_v47 = vpop.f32.mrf.mxu0  ;;  %v7867_v40 = vld [vmem:[#allocation14 + $0xa28] ss:$28 sps:$4 sm:$0xff]  }
 0x472   :  { %6008 = vmatmul.mubr.bf16.vlgmr.msra.gmra.mxu1 %v8336_v18  ;;  %v5723_v55 = vadd.f32 %v5722_v47, %v8373_v20  ;;  %6017 = vmatpush1.bf16.msra.mxu0 %v7819_v41  ;;  %v7829_v20 = vld [vmem:[#allocation14 + $0xba8] ss:$28 sps:$4 sm:$0xff]   ;;  %v7864_v41 = vld [vmem:[#allocation14 + $0xda0] ss:$28 sps:$4 sm:$0xff]   ;;  %v7872_v47 = vld [vmem:[#allocation14 + $0x9f0] ss:$28 sps:$4 sm:$0xff]  }
 0x473   :  { %6048 = vmatprep.mubr.bf16.mxu0 %v8347_v12  ;;  %7069 = vmatpush3.bf16.msra.mxu1 %v7823_v42  ;;  %v8387_v30 = vpop.f32.mrf.mxu1  ;;  %v5724_v31 = vpop.f32.mrf.mxu0  ;;  %v7868_v42 = vld [vmem:[#allocation14 + $0x868] ss:$28 sps:$4 sm:$0xff]  }
 0x474   :  { %6089 = vmatprep.mubr.bf16.mxu1 %v8306_v23  ;;  %v5725_v61 = vadd.f32 %v5724_v31, %v5684_v53  ;;  %6018 = vmatprep.subr.bf16.mxu0 %v7826_v44  ;;  %7931 = vtanh.f32 %v5723_v55  ;;  %v7834_v23 = vld [vmem:[#allocation14 + $0xb70] ss:$28 sps:$4 sm:$0xff]   ;;  %v7878_v31 = vld [vmem:[#allocation14 + $0x7f8] ss:$28 sps:$4 sm:$0xff]  }
 0x475   :  { %v5767_v60 = vpop.f32.mrf.mxu1  ;;  %7070 = vmatprep.subr.bf16.mxu1 %v7827_v51  ;;  %v5726_v21 = vpop.f32.mrf.mxu0  ;;  %v7871_v44 = vld [vmem:[#allocation14 + $0xd6c] ss:$28 sps:$4 sm:$0xff]   ;;  %v7876_v55 = vld [vmem:[#allocation14 + $0xd34] ss:$28 sps:$4 sm:$0xff]  }
 0x476   :  { %7933 = vtanh.f32 %v5725_v61  ;;  %6019 = vmatpush1.bf16.msra.mxu0 %v7824_v56  ;;  %v7869_v51 = vld [vmem:[#allocation14 + $0xd68] ss:$28 sps:$4 sm:$0xff]   ;;  %v7873_v53 = vld [vmem:[#allocation14 + $0x830] ss:$28 sps:$4 sm:$0xff]   ;;  %v7877_v56 = vld [vmem:[#allocation14 + $0x9b8] ss:$28 sps:$4 sm:$0xff]  }
 0x477   :  { %7071 = vmatpush3.bf16.msra.mxu1 %v7828_v58  ;;  %v5768_v0 = vpop.f32.mrf.mxu1  ;;  %v5727_v1 = vpop.f32.mrf.mxu0  ;;  %6020 = vmatprep.subr.bf16.mxu0 %v7831_v59  ;;  %v7881_v58 = vld [vmem:[#allocation14 + $0xcfc] ss:$28 sps:$4 sm:$0xff]   ;;  %v7887_v60 = vld [vmem:[#allocation14 + $0x948] ss:$28 sps:$4 sm:$0xff]  }
 0x478   :  { %7072 = vmatprep.subr.bf16.mxu1 %v7832_v62  ;;  %v7879_v59 = vld [vmem:[#allocation14 + $0xcf8] ss:$28 sps:$4 sm:$0xff]   ;;  %v7883_v61 = vld [vmem:[#allocation14 + $0x7c0] ss:$28 sps:$4 sm:$0xff]   ;;  %v7891_v0 = vld [vmem:[#allocation14 + $0xc8c] ss:$28 sps:$4 sm:$0xff]  }
 0x479   :  { %v7886_v62 = vld [vmem:[#allocation14 + $0xcc4] ss:$28 sps:$4 sm:$0xff]   ;;  %v7892_v1 = vld [vmem:[#allocation14 + $0x910] ss:$28 sps:$4 sm:$0xff]  }
 0x47a   :  { %6021 = vmatpush1.bf16.msra.mxu0 %v7829_v20  ;;  %v7884_v21 = vld [vmem:[#allocation14 + $0xcc0] ss:$28 sps:$4 sm:$0xff]   ;;  %v7888_v20 = vld [vmem:[#allocation14 + $0x788] ss:$28 sps:$4 sm:$0xff]  }
 0x47b   :  { %7073 = vmatpush3.bf16.msra.mxu1 %v7833_v2  ;;  %6022 = vmatprep.subr.bf16.mxu0 %v7836_v3  ;;  %v7889_v2 = vld [vmem:[#allocation14 + $0xc88] ss:$28 sps:$4 sm:$0xff]   ;;  %v7893_v3 = vld [vmem:[#allocation14 + $0x750] ss:$28 sps:$4 sm:$0xff]  }
 0x47c   :  { %7074 = vmatprep.subr.bf16.mxu1 %v7837_v6  ;;  %v7896_v6 = vld [vmem:[#allocation14 + $0xc54] ss:$28 sps:$4 sm:$0xff]  }
 0x47e   :  { %6023 = vmatpush1.bf16.msra.mxu0 %v7834_v23  ;;  %v7897_v23 = vld [vmem:[#allocation14 + $0x8d8] ss:$28 sps:$4 sm:$0xff]  }
 0x47f   :  { %7075 = vmatpush3.bf16.msra.mxu1 %v7838_v7  ;;  %6024 = vmatprep.subr.bf16.mxu0 %v7841_v8  ;;  %v7894_v7 = vld [vmem:[#allocation14 + $0xc50] ss:$28 sps:$4 sm:$0xff]   ;;  %v7898_v8 = vld [vmem:[#allocation14 + $0x718] ss:$28 sps:$4 sm:$0xff]  }
 0x480   :  { %7076 = vmatprep.subr.bf16.mxu1 %v7842_v9  ;;  %v7899_v9 = vld [vmem:[#allocation14 + $0x6e0] ss:$28 sps:$4 sm:$0xff]  }
 0x481   :  { %v7932_v15 = vpop.eup %7931 }
 0x482   :  { %6025 = vmatpush1.bf16.msra.mxu0 %v7839_v10  ;;  %v3237_v10 = vrot.slane %v8356_v34, %v8265_v50 }
 0x483   :  { %v7934_v16 = vpop.eup %7933  ;;  %7077 = vmatpush3.bf16.msra.mxu1 %v7843_v63  ;;  %6026 = vmatprep.subr.bf16.mxu0 %v7846_v13  ;;  %v7900_v63 = vld [vmem:[#allocation14 + $0x520] ss:$28 sps:$4 sm:$0xff]   ;;  %v7901_v13 = vld [vmem:[#allocation14 + $0x6a8] ss:$28 sps:$4 sm:$0xff]  }
 0x484   :  { %7078 = vmatprep.subr.bf16.mxu1 %v7847_v11  ;;  %v7064_v5 = vpack.c.bf16 %v7934_v16, %v7932_v15  ;;  %v5764_v11 = vadd.f32 %v8379_v46, %v3237_v10 }
 0x486   :  { %6027 = vmatpush1.bf16.msra.mxu0 %v7844_v14  ;;  %6253 = vst [vmem:[#allocation17] sm:$0xff] %v7064_v5 }
 0x487   :  { %7079 = vmatpush3.bf16.msra.mxu1 %v7848_v4  ;;  %6028 = vmatprep.subr.bf16.mxu0 %v7851_v22  ;;  %v7902_v4 = vld [vmem:[#allocation14 + $0x4e8] ss:$28 sps:$4 sm:$0xff]   ;;  %v7903_v22 = vld [vmem:[#allocation14 + $0x670] ss:$28 sps:$4 sm:$0xff]  }
 0x488   :  { %7080 = vmatprep.subr.bf16.mxu1 %v7852_v24 }
 0x48a   :  { %6029 = vmatpush1.bf16.msra.mxu0 %v7849_v26  ;;  %v7904_v26 = vld [vmem:[#allocation14 + $0x4b0] ss:$28 sps:$4 sm:$0xff]  }
 0x48b   :  { %7081 = vmatpush3.bf16.msra.mxu1 %v7853_v27  ;;  %6030 = vmatprep.subr.bf16.mxu0 %v7856_v57 }
 0x48c   :  { %7082 = vmatprep.subr.bf16.mxu1 %v7857_v29  ;;  %v7906_v29 = vld [vmem:[#allocation14 + $0x478] ss:$28 sps:$4 sm:$0xff]  }
 0x48e   :  { %6031 = vmatpush1.bf16.msra.mxu0 %v7854_v32  ;;  %v7908_v32 = vld [vmem:[#allocation14 + $0x440] ss:$28 sps:$4 sm:$0xff]  }
 0x48f   :  { %7083 = vmatpush3.bf16.msra.mxu1 %v7858_v33  ;;  %6032 = vmatprep.subr.bf16.mxu0 %v7861_v35  ;;  %v7909_v33 = vld [vmem:[#allocation14 + $0x5c8] ss:$28 sps:$4 sm:$0xff]  }
 0x490   :  { %7112 = vmatprep.subr.bf16.mxu1 %v7862_v36  ;;  %v7910_v35 = vld [vmem:[#allocation14 + $0x408] ss:$28 sps:$4 sm:$0xff]   ;;  %v7911_v36 = vld [vmem:[#allocation14 + $0x590] ss:$28 sps:$4 sm:$0xff]  }
 0x492   :  { %6090 = vmatmul.mubr.bf16.vlgmr.msra.gmra.mxu1 %v8315_v25  ;;  %6033 = vmatpush2.bf16.msra.mxu0 %v7859_v37  ;;  %v7874_v25 = vld [vmem:[#allocation14 + $0xd30] ss:$28 sps:$4 sm:$0xff]  }
 0x493   :  { %7113 = vmatpush3.bf16.msra.mxu1 %v7863_v38  ;;  %6169 = vmatprep.mubr.bf16.mxu1 %v8334_v17  ;;  %v7882_v17 = vld [vmem:[#allocation14 + $0x980] ss:$28 sps:$4 sm:$0xff]   ;;  %v7912_v37 = vld [vmem:[#allocation14 + $0x3d0] ss:$28 sps:$4 sm:$0xff]   ;;  %v7913_v38 = vld [vmem:[#allocation14 + $0x558] ss:$28 sps:$4 sm:$0xff]  }
 0x494   :  { %6034 = vmatprep.subr.bf16.mxu0 %v7866_v39  ;;  %7114 = vmatprep.subr.bf16.mxu1 %v7867_v40  ;;  %v7914_v39 = vld [vmem:[#allocation14 + $0x398] ss:$28 sps:$4 sm:$0xff]   ;;  %v7915_v40 = vld [vmem:[#allocation14 + $0xde0] ss:$28 sps:$4 sm:$0xff]  }
 0x496   :  { %6035 = vmatpush2.bf16.msra.mxu0 %v7864_v41  ;;  %v7916_v41 = vld [vmem:[#allocation14 + $0xc20] ss:$28 sps:$4 sm:$0xff]  }
 0x497   :  { %7115 = vmatpush3.bf16.msra.mxu1 %v7868_v42  ;;  %6036 = vmatprep.subr.bf16.mxu0 %v7871_v44  ;;  %v7917_v42 = vld [vmem:[#allocation14 + $0xda8] ss:$28 sps:$4 sm:$0xff]  }
 0x498   :  { %7116 = vmatprep.subr.bf16.mxu1 %v7872_v47  ;;  %v7918_v44 = vld [vmem:[#allocation14 + $0xbe8] ss:$28 sps:$4 sm:$0xff]   ;;  %v7919_v47 = vld [vmem:[#allocation14 + $0xd70] ss:$28 sps:$4 sm:$0xff]  }
 0x49a   :  { %6037 = vmatpush2.bf16.msra.mxu0 %v7869_v51  ;;  %v7920_v51 = vld [vmem:[#allocation14 + $0xbb0] ss:$28 sps:$4 sm:$0xff]  }
 0x49b   :  { %7117 = vmatpush3.bf16.msra.mxu1 %v7873_v53  ;;  %6038 = vmatprep.subr.bf16.mxu0 %v7876_v55  ;;  %v7921_v53 = vld [vmem:[#allocation14 + $0xd38] ss:$28 sps:$4 sm:$0xff]  }
 0x49c   :  { %7118 = vmatprep.subr.bf16.mxu1 %v7877_v56  ;;  %v7922_v55 = vld [vmem:[#allocation14 + $0xb78] ss:$28 sps:$4 sm:$0xff]   ;;  %v7923_v56 = vld [vmem:[#allocation14 + $0xd00] ss:$28 sps:$4 sm:$0xff]  }
 0x49e   :  { %6039 = vmatpush2.bf16.msra.mxu0 %v7874_v25  ;;  %v7924_v25 = vld [vmem:[#allocation14 + $0xb40] ss:$28 sps:$4 sm:$0xff]  }
 0x49f   :  { %7119 = vmatpush3.bf16.msra.mxu1 %v7878_v31  ;;  %6040 = vmatprep.subr.bf16.mxu0 %v7881_v58  ;;  %v7925_v31 = vld [vmem:[#allocation14 + $0xcc8] ss:$28 sps:$4 sm:$0xff]   ;;  %v7927_v58 = vld [vmem:[#allocation14 + $0xc90] ss:$28 sps:$4 sm:$0xff]  }
 0x4a0   :  { %7120 = vmatprep.subr.bf16.mxu1 %v7882_v17  ;;  %v7929_v17 = vld [vmem:[#allocation14 + $0xc58] ss:$28 sps:$4 sm:$0xff]  }
 0x4a2   :  { %6041 = vmatpush2.bf16.msra.mxu0 %v7879_v59  ;;  %v8406_v59 = vld [vmem:[#allocation16] sm:$0xff] }
 0x4a3   :  { %7121 = vmatpush3.bf16.msra.mxu1 %v7883_v61  ;;  %6042 = vmatprep.subr.bf16.mxu0 %v7886_v62  ;;  %v3241_v61 = vrot.slane %v8406_v59, %v8268_v52  ;;  %v7930_v62 = vld [vmem:[#allocation14 + $0xa98] ss:$28 sps:$4 sm:$0xff]  }
 0x4a4   :  { %7122 = vmatprep.subr.bf16.mxu1 %v7887_v60 }
 0x4a5   :  { %v5766_v60 = vadd.f32 %v8387_v30, %v3241_v61 }
 0x4a6   :  { %6043 = vmatpush2.bf16.msra.mxu0 %v7884_v21 }
 0x4a7   :  { %7123 = vmatpush3.bf16.msra.mxu1 %v7888_v20  ;;  %6044 = vmatprep.subr.bf16.mxu0 %v7891_v0 }
 0x4a8   :  { %7124 = vmatprep.subr.bf16.mxu1 %v7892_v1 }
 0x4aa   :  { %6045 = vmatpush2.bf16.msra.mxu0 %v7889_v2 }
 0x4ab   :  { %7125 = vmatpush3.bf16.msra.mxu1 %v7893_v3  ;;  %6046 = vmatprep.subr.bf16.mxu0 %v7896_v6 }
 0x4ac   :  { %7126 = vmatprep.subr.bf16.mxu1 %v7897_v23 }
 0x4ae   :  { %6047 = vmatpush2.bf16.msra.mxu0 %v7894_v7 }
 0x4af   :  { %7127 = vmatpush3.bf16.msra.mxu1 %v7898_v8  ;;  %7090 = vmatprep.subr.bf16.mxu0 %v7899_v9 }
 0x4b1   :  { %v5804_v15 = vpop.f32.mrf.mxu0  ;;  %v5845_v14 = vpop.f32.mrf.mxu1  ;;  %6049 = vmatmul.mubr.bf16.vlgmr.msra.gmra.mxu0 %v8349_v19 }
 0x4b2   :  { %v5805_v16 = vadd.f32 %v5804_v15, %v5764_v11  ;;  %6170 = vmatmul.mubr.bf16.vlgmr.msra.gmra.mxu1 %v8336_v18  ;;  %7091 = vmatpush3.bf16.msra.mxu0 %v7900_v63  ;;  %v7905_v18 = vld [vmem:[#allocation14 + $0x638] ss:$28 sps:$4 sm:$0xff]  }
 0x4b3   :  { %6129 = vmatprep.mubr.bf16.mxu0 %v8320_v49  ;;  %v8398_v50 = vpop.f32.mrf.mxu0  ;;  %v8400_v34 = vpop.f32.mrf.mxu1  ;;  %7092 = vmatprep.subr.bf16.mxu0 %v7901_v13  ;;  %v7907_v49 = vld [vmem:[#allocation14 + $0x600] ss:$28 sps:$4 sm:$0xff]  }
 0x4b4   :  { %v8402_v24 = vadd.f32 %v5845_v14, %v5805_v16  ;;  %v5807_v21 = vadd.f32 %v8398_v50, %v5766_v60 }
 0x4b5   :  { %v5808_v46 = vpop.f32.mrf.mxu0  ;;  %v5849_v5 = vpop.f32.mrf.mxu1 }
 0x4b6   :  { %7093 = vmatpush3.bf16.msra.mxu0 %v7902_v4  ;;  %v5848_v0 = vadd.f32 %v8400_v34, %v5807_v21 }
 0x4b7   :  { %v5809_v27 = vpop.f32.mrf.mxu0  ;;  %v5850_v57 = vpop.f32.mrf.mxu1  ;;  %7094 = vmatprep.subr.bf16.mxu0 %v7903_v22 }
 0x4b8   :  { %v3249_v27 = vrot.slane %v8406_v59, %v1070_v48 }
 0x4ba   :  { %7095 = vmatpush3.bf16.msra.mxu0 %v7904_v26  ;;  %v3245_v26 = vrot.slane %v8406_v59, %v1066_v43 }
 0x4bb   :  { %7096 = vmatprep.subr.bf16.mxu0 %v7905_v18 }
 0x4be   :  { %7097 = vmatpush3.bf16.msra.mxu0 %v7906_v29 }
 0x4bf   :  { %7098 = vmatprep.subr.bf16.mxu0 %v7907_v49 }
 0x4c2   :  { %7099 = vmatpush3.bf16.msra.mxu0 %v7908_v32 }
 0x4c3   :  { %7100 = vmatprep.subr.bf16.mxu0 %v7909_v33 }
 0x4c6   :  { %7101 = vmatpush3.bf16.msra.mxu0 %v7910_v35 }
 0x4c7   :  { %7102 = vmatprep.subr.bf16.mxu0 %v7911_v36 }
 0x4ca   :  { %7103 = vmatpush3.bf16.msra.mxu0 %v7912_v37 }
 0x4cb   :  { %7104 = vmatprep.subr.bf16.mxu0 %v7913_v38 }
 0x4ce   :  { %7105 = vmatpush3.bf16.msra.mxu0 %v7914_v39 }
 0x4cf   :  { %7134 = vmatprep.subr.bf16.mxu0 %v7915_v40 }
 0x4d1   :  { %6130 = vmatmul.mubr.bf16.vlgmr.msra.gmra.mxu0 %v8322_v54  ;;  %v7926_v54 = vld [vmem:[#allocation14 + $0xb08] ss:$28 sps:$4 sm:$0xff]  }
 0x4d2   :  { %7135 = vmatpush3.bf16.msra.mxu0 %v7916_v41  ;;  %6209 = vmatprep.mubr.bf16.mxu0 %v8347_v12  ;;  %v7928_v12 = vld [vmem:[#allocation14 + $0xad0] ss:$28 sps:$4 sm:$0xff]  }
 0x4d3   :  { %7136 = vmatprep.subr.bf16.mxu0 %v7917_v42 }
 0x4d6   :  { %7137 = vmatpush3.bf16.msra.mxu0 %v7918_v44 }
 0x4d7   :  { %7138 = vmatprep.subr.bf16.mxu0 %v7919_v47 }
 0x4da   :  { %7139 = vmatpush3.bf16.msra.mxu0 %v7920_v51 }
 0x4db   :  { %7140 = vmatprep.subr.bf16.mxu0 %v7921_v53 }
 0x4de   :  { %7141 = vmatpush3.bf16.msra.mxu0 %v7922_v55 }
 0x4df   :  { %7142 = vmatprep.subr.bf16.mxu0 %v7923_v56 }
 0x4e2   :  { %7143 = vmatpush3.bf16.msra.mxu0 %v7924_v25 }
 0x4e3   :  { %7144 = vmatprep.subr.bf16.mxu0 %v7925_v31  ;;  %v3253_v31 = vrot.slane %v8406_v59, %v1074_v45 }
 0x4e6   :  { %7145 = vmatpush3.bf16.msra.mxu0 %v7926_v54 }
 0x4e7   :  { %7146 = vmatprep.subr.bf16.mxu0 %v7927_v58 }
 0x4ea   :  { %7147 = vmatpush3.bf16.msra.mxu0 %v7928_v12 }
 0x4eb   :  { %7148 = vmatprep.subr.bf16.mxu0 %v7929_v17 }
 0x4ee   :  { %7149 = vmatpush3.bf16.msra.mxu0 %v7930_v62 }
 0x4f1   :  { %v5886_v20 = vpop.f32.mrf.mxu0  ;;  %6210 = vmatmul.mubr.bf16.vlgmr.msra.gmra.mxu0 %v8349_v19 }
 0x4f2   :  { %v5887_v1 = vadd.f32 %v5886_v20, %v8402_v24  ;;  %v5927_v2 = vpop.f32.mrf.mxu1 }
 0x4f3   :  { %v5888_v3 = vpop.f32.mrf.mxu0  ;;  %v5928_v57 = vadd.f32 %v5927_v2, %v3245_v26 }
 0x4f4   :  { %v5889_v6 = vadd.f32 %v5888_v3, %v5848_v0  ;;  %v5929_v23 = vpop.f32.mrf.mxu1  ;;  %7935 = vtanh.f32 %v5887_v1 }
 0x4f5   :  { %v5890_v52 = vpop.f32.mrf.mxu0  ;;  %v5930_v18 = vadd.f32 %v5929_v23, %v3249_v27 }
 0x4f6   :  { %7937 = vtanh.f32 %v5889_v6  ;;  %v5931_v7 = vpop.f32.mrf.mxu1 }
 0x4f7   :  { %v5891_v8 = vpop.f32.mrf.mxu0 }
 0x4f8   :  { %v5932_v30 = vpop.f32.mrf.mxu1 }
 0x501   :  { %v7936_v9 = vpop.eup %7935 }
 0x503   :  { %v7938_v10 = vpop.eup %7937 }
 0x504   :  { %v7065_v63 = vpack.c.bf16 %v7938_v10, %v7936_v9 }
 0x506   :  { %6254 = vst [vmem:[#allocation17 + $0x8] sm:$0xff] %v7065_v63 }
 0x531   :  { %v5968_v13 = vpop.f32.mrf.mxu0 }
 0x532   :  { %v6009_v19 = vpop.f32.mrf.mxu1  ;;  %v5969_v29 = vadd.f32 %v5968_v13, %v5928_v57 }
 0x533   :  { %v5970_v11 = vpop.f32.mrf.mxu0 }
 0x534   :  { %v6011_v15 = vpop.f32.mrf.mxu1  ;;  %v5971_v49 = vadd.f32 %v5970_v11, %v5930_v18  ;;  %v6010_v32 = vadd.f32 %v6009_v19, %v5969_v29 }
 0x535   :  { %v5972_v14 = vpop.f32.mrf.mxu0 }
 0x536   :  { %v6013_v16 = vpop.f32.mrf.mxu1  ;;  %v6012_v35 = vadd.f32 %v6011_v15, %v5971_v49 }
 0x537   :  { %v5973_v4 = vpop.f32.mrf.mxu0 }
 0x538   :  { %v6014_v50 = vpop.f32.mrf.mxu1 }
 0x552   :  { %v7084_v34 = vpop.f32.mrf.mxu1 }
 0x554   :  { %v7085_v22 = vpop.f32.mrf.mxu1 }
 0x555   :  { %v7086_v24 = vadd.f32 %v7085_v22, %v7084_v34 }
 0x556   :  { %v7087_v46 = vpop.f32.mrf.mxu1 }
 0x557   :  { %v6092_v58 = vadd.f32 %v7086_v24, %v3253_v31 }
 0x558   :  { %v7088_v5 = vpop.f32.mrf.mxu1 }
 0x571   :  { %v6050_v33 = vpop.f32.mrf.mxu0 }
 0x572   :  { %v6051_v36 = vadd.f32 %v6050_v33, %v6010_v32  ;;  %v7128_v37 = vpop.f32.mrf.mxu1 }
 0x573   :  { %v6052_v38 = vpop.f32.mrf.mxu0 }
 0x574   :  { %v6053_v39 = vadd.f32 %v6052_v38, %v6012_v35  ;;  %v7129_v40 = vpop.f32.mrf.mxu1  ;;  %7939 = vtanh.f32 %v6051_v36 }
 0x575   :  { %v6054_v41 = vpop.f32.mrf.mxu0  ;;  %v7130_v61 = vadd.f32 %v7129_v40, %v7128_v37 }
 0x576   :  { %7941 = vtanh.f32 %v6053_v39  ;;  %v7131_v43 = vpop.f32.mrf.mxu1 }
 0x577   :  { %v6055_v42 = vpop.f32.mrf.mxu0 }
 0x578   :  { %v7132_v44 = vpop.f32.mrf.mxu1 }
 0x581   :  { %v7940_v47 = vpop.eup %7939 }
 0x583   :  { %v7942_v48 = vpop.eup %7941 }
 0x584   :  { %v7066_v51 = vpack.c.bf16 %v7942_v48, %v7940_v47 }
 0x586   :  { %6255 = vst [vmem:[#allocation17 + $0x10] sm:$0xff] %v7066_v51 }
 0x591   :  { %v7106_v53 = vpop.f32.mrf.mxu0 }
 0x593   :  { %v7107_v55 = vpop.f32.mrf.mxu0 }
 0x594   :  { %v7108_v54 = vadd.f32 %v7107_v55, %v7106_v53 }
 0x595   :  { %v7109_v56 = vpop.f32.mrf.mxu0 }
 0x596   :  { %v6132_v12 = vadd.f32 %v7108_v54, %v6092_v58 }
 0x597   :  { %v7110_v25 = vpop.f32.mrf.mxu0 }
 0x598   :  { %v6172_v60 = vadd.f32 %v7130_v61, %v6132_v12 }
 0x5b1   :  { %v7150_v17 = vpop.f32.mrf.mxu0 }
 0x5b3   :  { %v7151_v62 = vpop.f32.mrf.mxu0 }
 0x5b4   :  { %v7152_v21 = vadd.f32 %v7151_v62, %v7150_v17 }
 0x5b5   :  { %v7153_v20 = vpop.f32.mrf.mxu0 }
 0x5b6   :  { %v6212_v0 = vadd.f32 %v7152_v21, %v6172_v60 }
 0x5b7   :  { %v7154_v1 = vpop.f32.mrf.mxu0 }
 0x5b8   :  { %7943 = vtanh.f32 %v6212_v0 }
 0x5c5   :  { %v7944_v2 = vpop.eup %7943 }
 0x5c6   :  { %v7067_v3 = vpack.c.bf16 %v7944_v2, %v7944_v2 }
 0x5c8   :  { %6256 = vst [vmem:[#allocation17 + $0x18] sm:$0xf] %v7067_v3 }
 0x5c9   :  { %8137 = shalt.err (!%p8134_p7)
}
 0x5ca   :  { %6266 = dma.vmem_to_hbm [thread:$0]  %s6264_s8, 448, %s8436_s9, [#allocation4]  }
 0x5cb   :  { %8156 = dma.done.wait [#allocation4], 448  }
 0x5cc   :  { %8157 = vsyncadd [#allocation4], 4294966848 }
 0x5cd   :  { %6270 = vsyncpa [#allocation3], 1 }
 0x5ce   :  { %6271 = vsyncpa [#allocation6], 1 }
 0x5cf   :  { %6272 = vsyncpa [#allocation9], 1 }
 0x5d0   :  { %6273 = vsyncpa [#allocation12], 1 }
 0x5d1   :  { %6274 = vsyncpa [#allocation15], 1 }
 0x5d2   :  { %6275 = vsyncpa [#allocation4], 1 }

</bundles_post_ra>
